<compile_context>
chip_gen: v7x
topology: tpu7x:2x2x1
jax: 0.10.0
libtpu: 0.0.40
codegen_flags: <defaults>
</compile_context>

<pallas_src>
import jax
import jax.numpy as jnp
from jax.experimental import pallas as pl
from jax.experimental.pallas import tpu as pltpu


def tcl_kernel(x_ref, w_ref, b_ref, o_ref):
    # x_ref: (1, C, T, ts)       raw input tile (caller dtype, e.g. f32/bf16)
    # w_ref: (5, 64, C)          fused taps (branch1 zero-padded to 5 taps), bf16
    # b_ref: (64, 1)             fused bias, f32
    # o_ref: (1, 64, T_out, ts)  output tile, f32
    _, C, T, ts = x_ref.shape
    OC = o_ref.shape[1]
    T_out = o_ref.shape[2]
    cdt = w_ref.dtype

    b = b_ref[...]                                  # (64, 1)  -- hoisted
    w = [w_ref[j] for j in range(5)]                # (64, C) per tap -- hoisted

    # Static unroll over pooled output times (video clips: T is small).
    # TODO(synk): for very large T switch this to a fori_loop to bound code size.
    for tp in range(T_out):
        t0 = 2 * tp                                 # conv times t0, t0+1 feed pool tp
        acc0 = jnp.zeros((OC, ts), jnp.float32)
        acc1 = jnp.zeros((OC, ts), jnp.float32)
        # Union of input times needed by conv outputs t0 and t0+1 (5 taps, pad 2);
        # out-of-range taps are simply skipped (== zero padding in time).
        for u in range(max(0, t0 - 2), min(T, t0 + 4)):
            xu = x_ref[0, :, u, :].astype(cdt)      # (C, ts), cast in-register
            j0 = u - t0 + 2                         # tap index for conv time t0
            j1 = j0 - 1                             # tap index for conv time t0 + 1
            if 0 <= j0 < 5:
                acc0 = acc0 + jnp.dot(w[j0], xu, preferred_element_type=jnp.float32)
            if 0 <= j1 < 5:
                acc1 = acc1 + jnp.dot(w[j1], xu, preferred_element_type=jnp.float32)
        # ReLU + MaxPool(2,1,1):  max(relu(a0+b), relu(a1+b)) == relu(max(a0,a1)+b)
        o_ref[0, :, tp, :] = jnp.maximum(jnp.maximum(acc0, acc1) + b, 0.0)


def _pick_tile(hw, max_tile):
    """Largest lane-dense (multiple of 128) tile <= max_tile that divides HW."""
    if hw % 128 != 0:
        # TODO(synk): for very large HW not divisible by 128, pad HW instead of
        # falling back to a full-extent spatial block (VMEM may get tight).
        return hw
    best = 128
    t = 128
    while t <= min(hw, max_tile):
        if hw % t == 0:
            best = t
        t += 128
    return best


def tcl_forward(x, w1, b1, w2, b2, *, compute_dtype=jnp.bfloat16, max_tile=1024):
    """x : (N, C, T, H, W) float (PyTorch NCDHW).
    w1: (32, C, 3), b1: (32,)  -- Conv3d k=(3,1,1), pad=(1,0,0)
    w2: (32, C, 5), b2: (32,)  -- Conv3d k=(5,1,1), pad=(2,0,0)
    Returns (N, 64, T//2, H, W) float32."""
    N, C, T, H, W = x.shape
    assert T >= 2, "MaxPool(2) over time requires T >= 2"
    HW = H * W
    T_out = T // 2                                   # MaxPool floor semantics

    # ---- fuse both branches into one 5-tap weight stack (5, 64, C) ----
    w1_5 = jnp.pad(w1, ((0, 0), (0, 0), (1, 1)))     # (32, C, 5): [0,w1_0,w1_1,w1_2,0]
    w_cat = jnp.concatenate([w1_5, w2], axis=0)      # (64, C, 5)
    w_taps = jnp.transpose(w_cat, (2, 0, 1)).astype(compute_dtype)   # (5, 64, C)
    bias = jnp.concatenate([b1, b2]).reshape(64, 1).astype(jnp.float32)

    x4 = x.reshape(N, C, T, HW)                      # free reshape, no HBM pass
    tile = _pick_tile(HW, max_tile)
    n_sp = HW // tile

    out = pl.pallas_call(
        tcl_kernel,
        out_shape=jax.ShapeDtypeStruct((N, 64, T_out, HW), jnp.float32),
        grid_spec=pltpu.PrefetchScalarGridSpec(
            num_scalar_prefetch=0,
            grid=(N, n_sp),
            in_specs=[
                pl.BlockSpec((1, C, T, tile), lambda n, j: (n, 0, 0, j)),
                pl.BlockSpec((5, 64, C), lambda n, j: (0, 0, 0)),
                pl.BlockSpec((64, 1), lambda n, j: (0, 0)),
            ],
            out_specs=pl.BlockSpec((1, 64, T_out, tile), lambda n, j: (n, 0, 0, j)),
        ),
        compiler_params=pltpu.CompilerParams(
            dimension_semantics=("parallel", "parallel"),
            vmem_limit_bytes=48 * 1024 * 1024),
    )(x4, w_taps, bias)

    # (N, 64, T_out, HW) -> (N, 64, T_out, H, W): pure reshape, no transpose.
    return out.reshape(N, 64, T_out, H, W)


def tcl_reference(x, w1, b1, w2, b2):
    """Pure-JAX reference of TCL.forward (correctness check only)."""
    N, C, T, H, W = x.shape

    def branch(w, b, k, pad):
        xp = jnp.pad(x, ((0, 0), (0, 0), (pad, pad), (0, 0), (0, 0)))
        outs = []
        for t in range(T):
            win = xp[:, :, t:t + k]                          # (N, C, k, H, W)
            y = jnp.einsum('nckhw,ock->nohw', win, w) + b[None, :, None, None]
            outs.append(y)
        conv = jnp.maximum(jnp.stack(outs, axis=2), 0.0)     # (N, 32, T, H, W)
        T_out = T // 2
        return conv[:, :, :2 * T_out].reshape(N, 32, T_out, 2, H, W).max(axis=3)

    r1 = branch(w1, b1, 3, 1)
    r2 = branch(w2, b2, 5, 2)
    return jnp.concatenate([r1, r2], axis=1)


def xavier_uniform(key, shape, fan_in, fan_out):
    bound = (6.0 / (fan_in + fan_out)) ** 0.5
    return jax.random.uniform(key, shape, jnp.float32, -bound, bound)


if __name__ == "__main__":
    # Small shapes consistent with the module: NCDHW input.
    N, C, T, H, W = 2, 4, 8, 16, 16
    key = jax.random.PRNGKey(0)
    kx, kw1, kw2, kb1, kb2 = jax.random.split(key, 5)

    def q(a):
        # Keep demo values bf16-representable so the in-kernel bf16 MXU path is
        # bit-exact against the f32 reference (only summation order differs).
        return a.astype(jnp.bfloat16).astype(jnp.float32)

    x = q(jax.random.normal(kx, (N, C, T, H, W), jnp.float32))
    # Conv3d(in=C, out=32, k=(3,1,1)) weight (32, C, 3, 1, 1) -> squeezed (32, C, 3)
    w1 = q(xavier_uniform(kw1, (32, C, 3), fan_in=C * 3, fan_out=32 * 3))
    # Conv3d(in=C, out=32, k=(5,1,1)) weight (32, C, 5, 1, 1) -> squeezed (32, C, 5)
    w2 = q(xavier_uniform(kw2, (32, C, 5), fan_in=C * 5, fan_out=32 * 5))
    # (module inits biases to 0; small random biases here to exercise the bias path)
    b1 = q(0.1 * jax.random.normal(kb1, (32,), jnp.float32))
    b2 = q(0.1 * jax.random.normal(kb2, (32,), jnp.float32))

    out = jax.block_until_ready(tcl_forward(x, w1, b1, w2, b2))
    ref = tcl_reference(x, w1, b1, w2, b2)

    assert out.shape == (N, 64, T // 2, H, W), out.shape
    max_err = float(jnp.max(jnp.abs(out - ref)))
    assert jnp.allclose(out, ref, atol=1e-4, rtol=1e-4), max_err

    print("KERNEL_OK")
</pallas_src>

<mosaic_0001>
module attributes {stable_mosaic.version = 11 : i64} {
  func.func @tcl_kernel(%arg0: i32, %arg1: i32, %arg2: memref<1x4x8x256xf32, #tpu.memory_space<vmem>>, %arg3: memref<5x64x4xbf16, #tpu.memory_space<vmem>>, %arg4: memref<64x1xf32, #tpu.memory_space<vmem>>, %arg5: memref<1x64x4x256xf32, #tpu.memory_space<vmem>>) attributes {dimension_semantics = [#tpu.dimension_semantics<parallel>, #tpu.dimension_semantics<parallel>], iteration_bounds = array<i64: 2, 1>, scalar_prefetch = 0 : i64, scratch_operands = 0 : i64, tpu.core_type = #tpu.core_type<tc>, window_params = [{transform_indices = @transform_0, window_bounds = array<i64: 1, 4, 8, 256>}, {pipeline_mode = #tpu.pipeline_mode<synchronous>, transform_indices = @transform_1, window_bounds = array<i64: 5, 64, 4>}, {pipeline_mode = #tpu.pipeline_mode<synchronous>, transform_indices = @transform_2, window_bounds = array<i64: 64, 1>}, {transform_indices = @transform_3, window_bounds = array<i64: 1, 64, 4, 256>}]} {
    %c0 = arith.constant 0 : index
    %c0_0 = arith.constant 0 : index
    %0 = vector.load %arg4[%c0, %c0_0] : memref<64x1xf32, #tpu.memory_space<vmem>>, vector<64x1xf32>
    %c0_1 = arith.constant 0 : index
    %c0_2 = arith.constant 0 : index
    %c0_3 = arith.constant 0 : index
    %1 = vector.load %arg3[%c0_1, %c0_2, %c0_3] : memref<5x64x4xbf16, #tpu.memory_space<vmem>>, vector<1x64x4xbf16>
    %2 = vector.shape_cast %1 : vector<1x64x4xbf16> to vector<64x4xbf16>
    %c1 = arith.constant 1 : index
    %c0_4 = arith.constant 0 : index
    %c0_5 = arith.constant 0 : index
    %3 = vector.load %arg3[%c1, %c0_4, %c0_5] : memref<5x64x4xbf16, #tpu.memory_space<vmem>>, vector<1x64x4xbf16>
    %4 = vector.shape_cast %3 : vector<1x64x4xbf16> to vector<64x4xbf16>
    %c2 = arith.constant 2 : index
    %c0_6 = arith.constant 0 : index
    %c0_7 = arith.constant 0 : index
    %5 = vector.load %arg3[%c2, %c0_6, %c0_7] : memref<5x64x4xbf16, #tpu.memory_space<vmem>>, vector<1x64x4xbf16>
    %6 = vector.shape_cast %5 : vector<1x64x4xbf16> to vector<64x4xbf16>
    %c3 = arith.constant 3 : index
    %c0_8 = arith.constant 0 : index
    %c0_9 = arith.constant 0 : index
    %7 = vector.load %arg3[%c3, %c0_8, %c0_9] : memref<5x64x4xbf16, #tpu.memory_space<vmem>>, vector<1x64x4xbf16>
    %8 = vector.shape_cast %7 : vector<1x64x4xbf16> to vector<64x4xbf16>
    %c4 = arith.constant 4 : index
    %c0_10 = arith.constant 0 : index
    %c0_11 = arith.constant 0 : index
    %9 = vector.load %arg3[%c4, %c0_10, %c0_11] : memref<5x64x4xbf16, #tpu.memory_space<vmem>>, vector<1x64x4xbf16>
    %10 = vector.shape_cast %9 : vector<1x64x4xbf16> to vector<64x4xbf16>
    %cst = arith.constant 0.000000e+00 : f32
    %11 = vector.broadcast %cst : f32 to vector<64x256xf32>
    %cst_12 = arith.constant 0.000000e+00 : f32
    %12 = vector.broadcast %cst_12 : f32 to vector<64x256xf32>
    %c0_13 = arith.constant 0 : index
    %c0_14 = arith.constant 0 : index
    %c0_15 = arith.constant 0 : index
    %c0_16 = arith.constant 0 : index
    %13 = vector.load %arg2[%c0_13, %c0_14, %c0_15, %c0_16] : memref<1x4x8x256xf32, #tpu.memory_space<vmem>>, vector<1x4x1x256xf32>
    %14 = vector.shape_cast %13 : vector<1x4x1x256xf32> to vector<4x256xf32>
    %15 = arith.truncf %14 : vector<4x256xf32> to vector<4x256xbf16>
    %cst_17 = arith.constant dense<0.000000e+00> : vector<64x256xf32>
    %16 = tpu.matmul %6, %15, %cst_17 {dimension_numbers = #tpu.dot_dimension_numbers<[1], [0], [0], [1], [0, 0, 1, 1], [], []>} : vector<64x4xbf16>, vector<4x256xbf16>, vector<64x256xf32> -> vector<64x256xf32>
    %17 = arith.addf %11, %16 : vector<64x256xf32>
    %cst_18 = arith.constant dense<0.000000e+00> : vector<64x256xf32>
    %18 = tpu.matmul %4, %15, %cst_18 {dimension_numbers = #tpu.dot_dimension_numbers<[1], [0], [0], [1], [0, 0, 1, 1], [], []>} : vector<64x4xbf16>, vector<4x256xbf16>, vector<64x256xf32> -> vector<64x256xf32>
    %19 = arith.addf %12, %18 : vector<64x256xf32>
    %c0_19 = arith.constant 0 : index
    %c0_20 = arith.constant 0 : index
    %c1_21 = arith.constant 1 : index
    %c0_22 = arith.constant 0 : index
    %20 = vector.load %arg2[%c0_19, %c0_20, %c1_21, %c0_22] : memref<1x4x8x256xf32, #tpu.memory_space<vmem>>, vector<1x4x1x256xf32>
    %21 = vector.shape_cast %20 : vector<1x4x1x256xf32> to vector<4x256xf32>
    %22 = arith.truncf %21 : vector<4x256xf32> to vector<4x256xbf16>
    %cst_23 = arith.constant dense<0.000000e+00> : vector<64x256xf32>
    %23 = tpu.matmul %8, %22, %cst_23 {dimension_numbers = #tpu.dot_dimension_numbers<[1], [0], [0], [1], [0, 0, 1, 1], [], []>} : vector<64x4xbf16>, vector<4x256xbf16>, vector<64x256xf32> -> vector<64x256xf32>
    %24 = arith.addf %17, %23 : vector<64x256xf32>
    %cst_24 = arith.constant dense<0.000000e+00> : vector<64x256xf32>
    %25 = tpu.matmul %6, %22, %cst_24 {dimension_numbers = #tpu.dot_dimension_numbers<[1], [0], [0], [1], [0, 0, 1, 1], [], []>} : vector<64x4xbf16>, vector<4x256xbf16>, vector<64x256xf32> -> vector<64x256xf32>
    %26 = arith.addf %19, %25 : vector<64x256xf32>
    %c0_25 = arith.constant 0 : index
    %c0_26 = arith.constant 0 : index
    %c2_27 = arith.constant 2 : index
    %c0_28 = arith.constant 0 : index
    %27 = vector.load %arg2[%c0_25, %c0_26, %c2_27, %c0_28] : memref<1x4x8x256xf32, #tpu.memory_space<vmem>>, vector<1x4x1x256xf32>
    %28 = vector.shape_cast %27 : vector<1x4x1x256xf32> to vector<4x256xf32>
    %29 = arith.truncf %28 : vector<4x256xf32> to vector<4x256xbf16>
    %cst_29 = arith.constant dense<0.000000e+00> : vector<64x256xf32>
    %30 = tpu.matmul %10, %29, %cst_29 {dimension_numbers = #tpu.dot_dimension_numbers<[1], [0], [0], [1], [0, 0, 1, 1], [], []>} : vector<64x4xbf16>, vector<4x256xbf16>, vector<64x256xf32> -> vector<64x256xf32>
    %31 = arith.addf %24, %30 : vector<64x256xf32>
    %cst_30 = arith.constant dense<0.000000e+00> : vector<64x256xf32>
    %32 = tpu.matmul %8, %29, %cst_30 {dimension_numbers = #tpu.dot_dimension_numbers<[1], [0], [0], [1], [0, 0, 1, 1], [], []>} : vector<64x4xbf16>, vector<4x256xbf16>, vector<64x256xf32> -> vector<64x256xf32>
    %33 = arith.addf %26, %32 : vector<64x256xf32>
    %c0_31 = arith.constant 0 : index
    %c0_32 = arith.constant 0 : index
    %c3_33 = arith.constant 3 : index
    %c0_34 = arith.constant 0 : index
    %34 = vector.load %arg2[%c0_31, %c0_32, %c3_33, %c0_34] : memref<1x4x8x256xf32, #tpu.memory_space<vmem>>, vector<1x4x1x256xf32>
    %35 = vector.shape_cast %34 : vector<1x4x1x256xf32> to vector<4x256xf32>
    %36 = arith.truncf %35 : vector<4x256xf32> to vector<4x256xbf16>
    %cst_35 = arith.constant dense<0.000000e+00> : vector<64x256xf32>
    %37 = tpu.matmul %10, %36, %cst_35 {dimension_numbers = #tpu.dot_dimension_numbers<[1], [0], [0], [1], [0, 0, 1, 1], [], []>} : vector<64x4xbf16>, vector<4x256xbf16>, vector<64x256xf32> -> vector<64x256xf32>
    %38 = arith.addf %33, %37 : vector<64x256xf32>
    %39 = arith.maximumf %31, %38 : vector<64x256xf32>
    %40 = vector.broadcast %0 : vector<64x1xf32> to vector<64x256xf32>
    %41 = arith.addf %39, %40 : vector<64x256xf32>
    %cst_36 = arith.constant 0.000000e+00 : f32
    %42 = vector.broadcast %cst_36 : f32 to vector<64x256xf32>
    %43 = arith.maximumf %41, %42 : vector<64x256xf32>
    %c0_37 = arith.constant 0 : index
    %c0_38 = arith.constant 0 : index
    %c0_39 = arith.constant 0 : index
    %c0_40 = arith.constant 0 : index
    %44 = vector.load %arg5[%c0_37, %c0_38, %c0_39, %c0_40] : memref<1x64x4x256xf32, #tpu.memory_space<vmem>>, vector<1x64x1x256xf32>
    %45 = vector.shape_cast %44 : vector<1x64x1x256xf32> to vector<64x256xf32>
    %46 = vector.shape_cast %43 : vector<64x256xf32> to vector<1x64x1x256xf32>
    tpu.vector_store %arg5[%c0_37, %c0_38, %c0_39, %c0_40], %46 {strides = array<i32>} : memref<1x64x4x256xf32, #tpu.memory_space<vmem>>, vector<1x64x1x256xf32>,
    %cst_41 = arith.constant 0.000000e+00 : f32
    %47 = vector.broadcast %cst_41 : f32 to vector<64x256xf32>
    %cst_42 = arith.constant 0.000000e+00 : f32
    %48 = vector.broadcast %cst_42 : f32 to vector<64x256xf32>
    %c0_43 = arith.constant 0 : index
    %c0_44 = arith.constant 0 : index
    %c0_45 = arith.constant 0 : index
    %c0_46 = arith.constant 0 : index
    %49 = vector.load %arg2[%c0_43, %c0_44, %c0_45, %c0_46] : memref<1x4x8x256xf32, #tpu.memory_space<vmem>>, vector<1x4x1x256xf32>
    %50 = vector.shape_cast %49 : vector<1x4x1x256xf32> to vector<4x256xf32>
    %51 = arith.truncf %50 : vector<4x256xf32> to vector<4x256xbf16>
    %cst_47 = arith.constant dense<0.000000e+00> : vector<64x256xf32>
    %52 = tpu.matmul %2, %51, %cst_47 {dimension_numbers = #tpu.dot_dimension_numbers<[1], [0], [0], [1], [0, 0, 1, 1], [], []>} : vector<64x4xbf16>, vector<4x256xbf16>, vector<64x256xf32> -> vector<64x256xf32>
    %53 = arith.addf %47, %52 : vector<64x256xf32>
    %c0_48 = arith.constant 0 : index
    %c0_49 = arith.constant 0 : index
    %c1_50 = arith.constant 1 : index
    %c0_51 = arith.constant 0 : index
    %54 = vector.load %arg2[%c0_48, %c0_49, %c1_50, %c0_51] : memref<1x4x8x256xf32, #tpu.memory_space<vmem>>, vector<1x4x1x256xf32>
    %55 = vector.shape_cast %54 : vector<1x4x1x256xf32> to vector<4x256xf32>
    %56 = arith.truncf %55 : vector<4x256xf32> to vector<4x256xbf16>
    %cst_52 = arith.constant dense<0.000000e+00> : vector<64x256xf32>
    %57 = tpu.matmul %4, %56, %cst_52 {dimension_numbers = #tpu.dot_dimension_numbers<[1], [0], [0], [1], [0, 0, 1, 1], [], []>} : vector<64x4xbf16>, vector<4x256xbf16>, vector<64x256xf32> -> vector<64x256xf32>
    %58 = arith.addf %53, %57 : vector<64x256xf32>
    %cst_53 = arith.constant dense<0.000000e+00> : vector<64x256xf32>
    %59 = tpu.matmul %2, %56, %cst_53 {dimension_numbers = #tpu.dot_dimension_numbers<[1], [0], [0], [1], [0, 0, 1, 1], [], []>} : vector<64x4xbf16>, vector<4x256xbf16>, vector<64x256xf32> -> vector<64x256xf32>
    %60 = arith.addf %48, %59 : vector<64x256xf32>
    %c0_54 = arith.constant 0 : index
    %c0_55 = arith.constant 0 : index
    %c2_56 = arith.constant 2 : index
    %c0_57 = arith.constant 0 : index
    %61 = vector.load %arg2[%c0_54, %c0_55, %c2_56, %c0_57] : memref<1x4x8x256xf32, #tpu.memory_space<vmem>>, vector<1x4x1x256xf32>
    %62 = vector.shape_cast %61 : vector<1x4x1x256xf32> to vector<4x256xf32>
    %63 = arith.truncf %62 : vector<4x256xf32> to vector<4x256xbf16>
    %cst_58 = arith.constant dense<0.000000e+00> : vector<64x256xf32>
    %64 = tpu.matmul %6, %63, %cst_58 {dimension_numbers = #tpu.dot_dimension_numbers<[1], [0], [0], [1], [0, 0, 1, 1], [], []>} : vector<64x4xbf16>, vector<4x256xbf16>, vector<64x256xf32> -> vector<64x256xf32>
    %65 = arith.addf %58, %64 : vector<64x256xf32>
    %cst_59 = arith.constant dense<0.000000e+00> : vector<64x256xf32>
    %66 = tpu.matmul %4, %63, %cst_59 {dimension_numbers = #tpu.dot_dimension_numbers<[1], [0], [0], [1], [0, 0, 1, 1], [], []>} : vector<64x4xbf16>, vector<4x256xbf16>, vector<64x256xf32> -> vector<64x256xf32>
    %67 = arith.addf %60, %66 : vector<64x256xf32>
    %c0_60 = arith.constant 0 : index
    %c0_61 = arith.constant 0 : index
    %c3_62 = arith.constant 3 : index
    %c0_63 = arith.constant 0 : index
    %68 = vector.load %arg2[%c0_60, %c0_61, %c3_62, %c0_63] : memref<1x4x8x256xf32, #tpu.memory_space<vmem>>, vector<1x4x1x256xf32>
    %69 = vector.shape_cast %68 : vector<1x4x1x256xf32> to vector<4x256xf32>
    %70 = arith.truncf %69 : vector<4x256xf32> to vector<4x256xbf16>
    %cst_64 = arith.constant dense<0.000000e+00> : vector<64x256xf32>
    %71 = tpu.matmul %8, %70, %cst_64 {dimension_numbers = #tpu.dot_dimension_numbers<[1], [0], [0], [1], [0, 0, 1, 1], [], []>} : vector<64x4xbf16>, vector<4x256xbf16>, vector<64x256xf32> -> vector<64x256xf32>
    %72 = arith.addf %65, %71 : vector<64x256xf32>
    %cst_65 = arith.constant dense<0.000000e+00> : vector<64x256xf32>
    %73 = tpu.matmul %6, %70, %cst_65 {dimension_numbers = #tpu.dot_dimension_numbers<[1], [0], [0], [1], [0, 0, 1, 1], [], []>} : vector<64x4xbf16>, vector<4x256xbf16>, vector<64x256xf32> -> vector<64x256xf32>
    %74 = arith.addf %67, %73 : vector<64x256xf32>
    %c0_66 = arith.constant 0 : index
    %c0_67 = arith.constant 0 : index
    %c4_68 = arith.constant 4 : index
    %c0_69 = arith.constant 0 : index
    %75 = vector.load %arg2[%c0_66, %c0_67, %c4_68, %c0_69] : memref<1x4x8x256xf32, #tpu.memory_space<vmem>>, vector<1x4x1x256xf32>
    %76 = vector.shape_cast %75 : vector<1x4x1x256xf32> to vector<4x256xf32>
    %77 = arith.truncf %76 : vector<4x256xf32> to vector<4x256xbf16>
    %cst_70 = arith.constant dense<0.000000e+00> : vector<64x256xf32>
    %78 = tpu.matmul %10, %77, %cst_70 {dimension_numbers = #tpu.dot_dimension_numbers<[1], [0], [0], [1], [0, 0, 1, 1], [], []>} : vector<64x4xbf16>, vector<4x256xbf16>, vector<64x256xf32> -> vector<64x256xf32>
    %79 = arith.addf %72, %78 : vector<64x256xf32>
    %cst_71 = arith.constant dense<0.000000e+00> : vector<64x256xf32>
    %80 = tpu.matmul %8, %77, %cst_71 {dimension_numbers = #tpu.dot_dimension_numbers<[1], [0], [0], [1], [0, 0, 1, 1], [], []>} : vector<64x4xbf16>, vector<4x256xbf16>, vector<64x256xf32> -> vector<64x256xf32>
    %81 = arith.addf %74, %80 : vector<64x256xf32>
    %c0_72 = arith.constant 0 : index
    %c0_73 = arith.constant 0 : index
    %c5 = arith.constant 5 : index
    %c0_74 = arith.constant 0 : index
    %82 = vector.load %arg2[%c0_72, %c0_73, %c5, %c0_74] : memref<1x4x8x256xf32, #tpu.memory_space<vmem>>, vector<1x4x1x256xf32>
    %83 = vector.shape_cast %82 : vector<1x4x1x256xf32> to vector<4x256xf32>
    %84 = arith.truncf %83 : vector<4x256xf32> to vector<4x256xbf16>
    %cst_75 = arith.constant dense<0.000000e+00> : vector<64x256xf32>
    %85 = tpu.matmul %10, %84, %cst_75 {dimension_numbers = #tpu.dot_dimension_numbers<[1], [0], [0], [1], [0, 0, 1, 1], [], []>} : vector<64x4xbf16>, vector<4x256xbf16>, vector<64x256xf32> -> vector<64x256xf32>
    %86 = arith.addf %81, %85 : vector<64x256xf32>
    %87 = arith.maximumf %79, %86 : vector<64x256xf32>
    %88 = vector.broadcast %0 : vector<64x1xf32> to vector<64x256xf32>
    %89 = arith.addf %87, %88 : vector<64x256xf32>
    %cst_76 = arith.constant 0.000000e+00 : f32
    %90 = vector.broadcast %cst_76 : f32 to vector<64x256xf32>
    %91 = arith.maximumf %89, %90 : vector<64x256xf32>
    %c0_77 = arith.constant 0 : index
    %c0_78 = arith.constant 0 : index
    %c1_79 = arith.constant 1 : index
    %c0_80 = arith.constant 0 : index
    %92 = vector.load %arg5[%c0_77, %c0_78, %c1_79, %c0_80] : memref<1x64x4x256xf32, #tpu.memory_space<vmem>>, vector<1x64x1x256xf32>
    %93 = vector.shape_cast %92 : vector<1x64x1x256xf32> to vector<64x256xf32>
    %94 = vector.shape_cast %91 : vector<64x256xf32> to vector<1x64x1x256xf32>
    tpu.vector_store %arg5[%c0_77, %c0_78, %c1_79, %c0_80], %94 {strides = array<i32>} : memref<1x64x4x256xf32, #tpu.memory_space<vmem>>, vector<1x64x1x256xf32>,
    %cst_81 = arith.constant 0.000000e+00 : f32
    %95 = vector.broadcast %cst_81 : f32 to vector<64x256xf32>
    %cst_82 = arith.constant 0.000000e+00 : f32
    %96 = vector.broadcast %cst_82 : f32 to vector<64x256xf32>
    %c0_83 = arith.constant 0 : index
    %c0_84 = arith.constant 0 : index
    %c2_85 = arith.constant 2 : index
    %c0_86 = arith.constant 0 : index
    %97 = vector.load %arg2[%c0_83, %c0_84, %c2_85, %c0_86] : memref<1x4x8x256xf32, #tpu.memory_space<vmem>>, vector<1x4x1x256xf32>
    %98 = vector.shape_cast %97 : vector<1x4x1x256xf32> to vector<4x256xf32>
    %99 = arith.truncf %98 : vector<4x256xf32> to vector<4x256xbf16>
    %cst_87 = arith.constant dense<0.000000e+00> : vector<64x256xf32>
    %100 = tpu.matmul %2, %99, %cst_87 {dimension_numbers = #tpu.dot_dimension_numbers<[1], [0], [0], [1], [0, 0, 1, 1], [], []>} : vector<64x4xbf16>, vector<4x256xbf16>, vector<64x256xf32> -> vector<64x256xf32>
    %101 = arith.addf %95, %100 : vector<64x256xf32>
    %c0_88 = arith.constant 0 : index
    %c0_89 = arith.constant 0 : index
    %c3_90 = arith.constant 3 : index
    %c0_91 = arith.constant 0 : index
    %102 = vector.load %arg2[%c0_88, %c0_89, %c3_90, %c0_91] : memref<1x4x8x256xf32, #tpu.memory_space<vmem>>, vector<1x4x1x256xf32>
    %103 = vector.shape_cast %102 : vector<1x4x1x256xf32> to vector<4x256xf32>
    %104 = arith.truncf %103 : vector<4x256xf32> to vector<4x256xbf16>
    %cst_92 = arith.constant dense<0.000000e+00> : vector<64x256xf32>
    %105 = tpu.matmul %4, %104, %cst_92 {dimension_numbers = #tpu.dot_dimension_numbers<[1], [0], [0], [1], [0, 0, 1, 1], [], []>} : vector<64x4xbf16>, vector<4x256xbf16>, vector<64x256xf32> -> vector<64x256xf32>
    %106 = arith.addf %101, %105 : vector<64x256xf32>
    %cst_93 = arith.constant dense<0.000000e+00> : vector<64x256xf32>
    %107 = tpu.matmul %2, %104, %cst_93 {dimension_numbers = #tpu.dot_dimension_numbers<[1], [0], [0], [1], [0, 0, 1, 1], [], []>} : vector<64x4xbf16>, vector<4x256xbf16>, vector<64x256xf32> -> vector<64x256xf32>
    %108 = arith.addf %96, %107 : vector<64x256xf32>
    %c0_94 = arith.constant 0 : index
    %c0_95 = arith.constant 0 : index
    %c4_96 = arith.constant 4 : index
    %c0_97 = arith.constant 0 : index
    %109 = vector.load %arg2[%c0_94, %c0_95, %c4_96, %c0_97] : memref<1x4x8x256xf32, #tpu.memory_space<vmem>>, vector<1x4x1x256xf32>
    %110 = vector.shape_cast %109 : vector<1x4x1x256xf32> to vector<4x256xf32>
    %111 = arith.truncf %110 : vector<4x256xf32> to vector<4x256xbf16>
    %cst_98 = arith.constant dense<0.000000e+00> : vector<64x256xf32>
    %112 = tpu.matmul %6, %111, %cst_98 {dimension_numbers = #tpu.dot_dimension_numbers<[1], [0], [0], [1], [0, 0, 1, 1], [], []>} : vector<64x4xbf16>, vector<4x256xbf16>, vector<64x256xf32> -> vector<64x256xf32>
    %113 = arith.addf %106, %112 : vector<64x256xf32>
    %cst_99 = arith.constant dense<0.000000e+00> : vector<64x256xf32>
    %114 = tpu.matmul %4, %111, %cst_99 {dimension_numbers = #tpu.dot_dimension_numbers<[1], [0], [0], [1], [0, 0, 1, 1], [], []>} : vector<64x4xbf16>, vector<4x256xbf16>, vector<64x256xf32> -> vector<64x256xf32>
    %115 = arith.addf %108, %114 : vector<64x256xf32>
    %c0_100 = arith.constant 0 : index
    %c0_101 = arith.constant 0 : index
    %c5_102 = arith.constant 5 : index
    %c0_103 = arith.constant 0 : index
    %116 = vector.load %arg2[%c0_100, %c0_101, %c5_102, %c0_103] : memref<1x4x8x256xf32, #tpu.memory_space<vmem>>, vector<1x4x1x256xf32>
    %117 = vector.shape_cast %116 : vector<1x4x1x256xf32> to vector<4x256xf32>
    %118 = arith.truncf %117 : vector<4x256xf32> to vector<4x256xbf16>
    %cst_104 = arith.constant dense<0.000000e+00> : vector<64x256xf32>
    %119 = tpu.matmul %8, %118, %cst_104 {dimension_numbers = #tpu.dot_dimension_numbers<[1], [0], [0], [1], [0, 0, 1, 1], [], []>} : vector<64x4xbf16>, vector<4x256xbf16>, vector<64x256xf32> -> vector<64x256xf32>
    %120 = arith.addf %113, %119 : vector<64x256xf32>
    %cst_105 = arith.constant dense<0.000000e+00> : vector<64x256xf32>
    %121 = tpu.matmul %6, %118, %cst_105 {dimension_numbers = #tpu.dot_dimension_numbers<[1], [0], [0], [1], [0, 0, 1, 1], [], []>} : vector<64x4xbf16>, vector<4x256xbf16>, vector<64x256xf32> -> vector<64x256xf32>
    %122 = arith.addf %115, %121 : vector<64x256xf32>
    %c0_106 = arith.constant 0 : index
    %c0_107 = arith.constant 0 : index
    %c6 = arith.constant 6 : index
    %c0_108 = arith.constant 0 : index
    %123 = vector.load %arg2[%c0_106, %c0_107, %c6, %c0_108] : memref<1x4x8x256xf32, #tpu.memory_space<vmem>>, vector<1x4x1x256xf32>
    %124 = vector.shape_cast %123 : vector<1x4x1x256xf32> to vector<4x256xf32>
    %125 = arith.truncf %124 : vector<4x256xf32> to vector<4x256xbf16>
    %cst_109 = arith.constant dense<0.000000e+00> : vector<64x256xf32>
    %126 = tpu.matmul %10, %125, %cst_109 {dimension_numbers = #tpu.dot_dimension_numbers<[1], [0], [0], [1], [0, 0, 1, 1], [], []>} : vector<64x4xbf16>, vector<4x256xbf16>, vector<64x256xf32> -> vector<64x256xf32>
    %127 = arith.addf %120, %126 : vector<64x256xf32>
    %cst_110 = arith.constant dense<0.000000e+00> : vector<64x256xf32>
    %128 = tpu.matmul %8, %125, %cst_110 {dimension_numbers = #tpu.dot_dimension_numbers<[1], [0], [0], [1], [0, 0, 1, 1], [], []>} : vector<64x4xbf16>, vector<4x256xbf16>, vector<64x256xf32> -> vector<64x256xf32>
    %129 = arith.addf %122, %128 : vector<64x256xf32>
    %c0_111 = arith.constant 0 : index
    %c0_112 = arith.constant 0 : index
    %c7 = arith.constant 7 : index
    %c0_113 = arith.constant 0 : index
    %130 = vector.load %arg2[%c0_111, %c0_112, %c7, %c0_113] : memref<1x4x8x256xf32, #tpu.memory_space<vmem>>, vector<1x4x1x256xf32>
    %131 = vector.shape_cast %130 : vector<1x4x1x256xf32> to vector<4x256xf32>
    %132 = arith.truncf %131 : vector<4x256xf32> to vector<4x256xbf16>
    %cst_114 = arith.constant dense<0.000000e+00> : vector<64x256xf32>
    %133 = tpu.matmul %10, %132, %cst_114 {dimension_numbers = #tpu.dot_dimension_numbers<[1], [0], [0], [1], [0, 0, 1, 1], [], []>} : vector<64x4xbf16>, vector<4x256xbf16>, vector<64x256xf32> -> vector<64x256xf32>
    %134 = arith.addf %129, %133 : vector<64x256xf32>
    %135 = arith.maximumf %127, %134 : vector<64x256xf32>
    %136 = vector.broadcast %0 : vector<64x1xf32> to vector<64x256xf32>
    %137 = arith.addf %135, %136 : vector<64x256xf32>
    %cst_115 = arith.constant 0.000000e+00 : f32
    %138 = vector.broadcast %cst_115 : f32 to vector<64x256xf32>
    %139 = arith.maximumf %137, %138 : vector<64x256xf32>
    %c0_116 = arith.constant 0 : index
    %c0_117 = arith.constant 0 : index
    %c2_118 = arith.constant 2 : index
    %c0_119 = arith.constant 0 : index
    %140 = vector.load %arg5[%c0_116, %c0_117, %c2_118, %c0_119] : memref<1x64x4x256xf32, #tpu.memory_space<vmem>>, vector<1x64x1x256xf32>
    %141 = vector.shape_cast %140 : vector<1x64x1x256xf32> to vector<64x256xf32>
    %142 = vector.shape_cast %139 : vector<64x256xf32> to vector<1x64x1x256xf32>
    tpu.vector_store %arg5[%c0_116, %c0_117, %c2_118, %c0_119], %142 {strides = array<i32>} : memref<1x64x4x256xf32, #tpu.memory_space<vmem>>, vector<1x64x1x256xf32>,
    %cst_120 = arith.constant 0.000000e+00 : f32
    %143 = vector.broadcast %cst_120 : f32 to vector<64x256xf32>
    %cst_121 = arith.constant 0.000000e+00 : f32
    %144 = vector.broadcast %cst_121 : f32 to vector<64x256xf32>
    %c0_122 = arith.constant 0 : index
    %c0_123 = arith.constant 0 : index
    %c4_124 = arith.constant 4 : index
    %c0_125 = arith.constant 0 : index
    %145 = vector.load %arg2[%c0_122, %c0_123, %c4_124, %c0_125] : memref<1x4x8x256xf32, #tpu.memory_space<vmem>>, vector<1x4x1x256xf32>
    %146 = vector.shape_cast %145 : vector<1x4x1x256xf32> to vector<4x256xf32>
    %147 = arith.truncf %146 : vector<4x256xf32> to vector<4x256xbf16>
    %cst_126 = arith.constant dense<0.000000e+00> : vector<64x256xf32>
    %148 = tpu.matmul %2, %147, %cst_126 {dimension_numbers = #tpu.dot_dimension_numbers<[1], [0], [0], [1], [0, 0, 1, 1], [], []>} : vector<64x4xbf16>, vector<4x256xbf16>, vector<64x256xf32> -> vector<64x256xf32>
    %149 = arith.addf %143, %148 : vector<64x256xf32>
    %c0_127 = arith.constant 0 : index
    %c0_128 = arith.constant 0 : index
    %c5_129 = arith.constant 5 : index
    %c0_130 = arith.constant 0 : index
    %150 = vector.load %arg2[%c0_127, %c0_128, %c5_129, %c0_130] : memref<1x4x8x256xf32, #tpu.memory_space<vmem>>, vector<1x4x1x256xf32>
    %151 = vector.shape_cast %150 : vector<1x4x1x256xf32> to vector<4x256xf32>
    %152 = arith.truncf %151 : vector<4x256xf32> to vector<4x256xbf16>
    %cst_131 = arith.constant dense<0.000000e+00> : vector<64x256xf32>
    %153 = tpu.matmul %4, %152, %cst_131 {dimension_numbers = #tpu.dot_dimension_numbers<[1], [0], [0], [1], [0, 0, 1, 1], [], []>} : vector<64x4xbf16>, vector<4x256xbf16>, vector<64x256xf32> -> vector<64x256xf32>
    %154 = arith.addf %149, %153 : vector<64x256xf32>
    %cst_132 = arith.constant dense<0.000000e+00> : vector<64x256xf32>
    %155 = tpu.matmul %2, %152, %cst_132 {dimension_numbers = #tpu.dot_dimension_numbers<[1], [0], [0], [1], [0, 0, 1, 1], [], []>} : vector<64x4xbf16>, vector<4x256xbf16>, vector<64x256xf32> -> vector<64x256xf32>
    %156 = arith.addf %144, %155 : vector<64x256xf32>
    %c0_133 = arith.constant 0 : index
    %c0_134 = arith.constant 0 : index
    %c6_135 = arith.constant 6 : index
    %c0_136 = arith.constant 0 : index
    %157 = vector.load %arg2[%c0_133, %c0_134, %c6_135, %c0_136] : memref<1x4x8x256xf32, #tpu.memory_space<vmem>>, vector<1x4x1x256xf32>
    %158 = vector.shape_cast %157 : vector<1x4x1x256xf32> to vector<4x256xf32>
    %159 = arith.truncf %158 : vector<4x256xf32> to vector<4x256xbf16>
    %cst_137 = arith.constant dense<0.000000e+00> : vector<64x256xf32>
    %160 = tpu.matmul %6, %159, %cst_137 {dimension_numbers = #tpu.dot_dimension_numbers<[1], [0], [0], [1], [0, 0, 1, 1], [], []>} : vector<64x4xbf16>, vector<4x256xbf16>, vector<64x256xf32> -> vector<64x256xf32>
    %161 = arith.addf %154, %160 : vector<64x256xf32>
    %cst_138 = arith.constant dense<0.000000e+00> : vector<64x256xf32>
    %162 = tpu.matmul %4, %159, %cst_138 {dimension_numbers = #tpu.dot_dimension_numbers<[1], [0], [0], [1], [0, 0, 1, 1], [], []>} : vector<64x4xbf16>, vector<4x256xbf16>, vector<64x256xf32> -> vector<64x256xf32>
    %163 = arith.addf %156, %162 : vector<64x256xf32>
    %c0_139 = arith.constant 0 : index
    %c0_140 = arith.constant 0 : index
    %c7_141 = arith.constant 7 : index
    %c0_142 = arith.constant 0 : index
    %164 = vector.load %arg2[%c0_139, %c0_140, %c7_141, %c0_142] : memref<1x4x8x256xf32, #tpu.memory_space<vmem>>, vector<1x4x1x256xf32>
    %165 = vector.shape_cast %164 : vector<1x4x1x256xf32> to vector<4x256xf32>
    %166 = arith.truncf %165 : vector<4x256xf32> to vector<4x256xbf16>
    %cst_143 = arith.constant dense<0.000000e+00> : vector<64x256xf32>
    %167 = tpu.matmul %8, %166, %cst_143 {dimension_numbers = #tpu.dot_dimension_numbers<[1], [0], [0], [1], [0, 0, 1, 1], [], []>} : vector<64x4xbf16>, vector<4x256xbf16>, vector<64x256xf32> -> vector<64x256xf32>
    %168 = arith.addf %161, %167 : vector<64x256xf32>
    %cst_144 = arith.constant dense<0.000000e+00> : vector<64x256xf32>
    %169 = tpu.matmul %6, %166, %cst_144 {dimension_numbers = #tpu.dot_dimension_numbers<[1], [0], [0], [1], [0, 0, 1, 1], [], []>} : vector<64x4xbf16>, vector<4x256xbf16>, vector<64x256xf32> -> vector<64x256xf32>
    %170 = arith.addf %163, %169 : vector<64x256xf32>
    %171 = arith.maximumf %168, %170 : vector<64x256xf32>
    %172 = vector.broadcast %0 : vector<64x1xf32> to vector<64x256xf32>
    %173 = arith.addf %171, %172 : vector<64x256xf32>
    %cst_145 = arith.constant 0.000000e+00 : f32
    %174 = vector.broadcast %cst_145 : f32 to vector<64x256xf32>
    %175 = arith.maximumf %173, %174 : vector<64x256xf32>
    %c0_146 = arith.constant 0 : index
    %c0_147 = arith.constant 0 : index
    %c3_148 = arith.constant 3 : index
    %c0_149 = arith.constant 0 : index
    %176 = vector.load %arg5[%c0_146, %c0_147, %c3_148, %c0_149] : memref<1x64x4x256xf32, #tpu.memory_space<vmem>>, vector<1x64x1x256xf32>
    %177 = vector.shape_cast %176 : vector<1x64x1x256xf32> to vector<64x256xf32>
    %178 = vector.shape_cast %175 : vector<64x256xf32> to vector<1x64x1x256xf32>
    tpu.vector_store %arg5[%c0_146, %c0_147, %c3_148, %c0_149], %178 {strides = array<i32>} : memref<1x64x4x256xf32, #tpu.memory_space<vmem>>, vector<1x64x1x256xf32>,
    return
  }
  func.func @transform_0(%arg0: i32, %arg1: i32) -> (i32, i32, i32, i32) {
    %c0_i32 = arith.constant 0 : i32
    %c0_i32_0 = arith.constant 0 : i32
    %c0_i32_1 = arith.constant 0 : i32
    return %arg0, %c0_i32, %c0_i32_0, %arg1 : i32, i32, i32, i32
  }
  func.func @transform_1(%arg0: i32, %arg1: i32) -> (i32, i32, i32) {
    %c0_i32 = arith.constant 0 : i32
    %c0_i32_0 = arith.constant 0 : i32
    %c0_i32_1 = arith.constant 0 : i32
    %c0_i32_2 = arith.constant 0 : i32
    return %c0_i32, %c0_i32_0, %c0_i32_1 : i32, i32, i32
  }
  func.func @transform_2(%arg0: i32, %arg1: i32) -> (i32, i32) {
    %c0_i32 = arith.constant 0 : i32
    %c0_i32_0 = arith.constant 0 : i32
    %c0_i32_1 = arith.constant 0 : i32
    return %c0_i32, %c0_i32_0 : i32, i32
  }
  func.func @transform_3(%arg0: i32, %arg1: i32) -> (i32, i32, i32, i32) {
    %c0_i32 = arith.constant 0 : i32
    %c0_i32_0 = arith.constant 0 : i32
    %c0_i32_1 = arith.constant 0 : i32
    return %arg0, %c0_i32, %c0_i32_0, %arg1 : i32, i32, i32, i32
  }
}

</mosaic_0001>

<bundles_post_ra>
// kernel: tpu_custom_call.1
= control target key start
LH: loop header
LB: loop body
LE: loop exit
PB: predicated region body
PF: predicated region fallthrough
CT: control target
= control target key end

     0   :  { %8 = vsyncpa [#allocation3], 0  ;;  %s11752_s0 = inlined_call_operand.vmem [shape: f32[2,4,8,256], index: 0, kind: input, shape index: {}]   ;;  %s11753_s1 = inlined_call_operand.vmem [shape: bf16[5,64,4], index: 1, kind: input, shape index: {}]   ;;  %s11754_s2 = inlined_call_operand.vmem [shape: f32[64,1], index: 2, kind: input, shape index: {}]   ;;  %s11755_s3 = inlined_call_operand.hbm [shape: f32[2,64,4,256], index: 3, kind: output, shape index: {}]  }
   0x1   :  { %10 = vsyncpa [#allocation3 + $0x1], 0  ;;  %s9031_s12 = smov 0   ;;  %s9033_s13 = smov 0  }
   0x2   :  { %s9035_s14 = smov 0   ;;  %s9037_s15 = smov 0  }
   0x3   :  { %s9039_s16 = smov 0   ;;  %s9041_s17 = smov 0  }
   0x4 LB: > { %s7821_s18 = sadd.s32 4294967295, %s9004_s17   ;;  %s7822_s19 = sadd.s32 4294967294, %s9004_s17   ;;  %s9004_s17 = sphi %s9041_s17, %s16_s17   ;;  %s9000_s16 = sphi %s9039_s16, %s11764_s16   ;;  %s8996_s15 = sphi %s9037_s15, %s11763_s15   ;;  %s8992_s14 = sphi %s9035_s14, %s11762_s14   ;;  %s8988_s13 = sphi %s9033_s13, %s11761_s13   ;;  %s8984_s12 = sphi %s9031_s12, %s11760_s12  }
   0x5   : > { %s28_s20 = sadd.s32 1, %s9000_s16  ;;  %s107_s21 = sadd.s32 1, %s8992_s14 }
   0x6   : > { %p30_p0 = scmp.ge.s32.totalorder %s28_s20, 2  ;;  %p117_p1 = scmp.ne.s32.totalorder %s8992_s14, %s8988_s13 }
   0x7   : > { %p118_p2 = scmp.eq.s32.totalorder %s7821_s18, 1  ;;  %p123_p3 = scmp.ne.s32.totalorder %s8988_s13, %s8984_s12 }
   0x8   : > { %s11766_s20 = smov (%p30_p0, %s28_s20), 0  ;;  %p124_p5 = scmp.eq.s32.totalorder %s7822_s19, 1 }
   0x9   : > { %p9071_p4 = por %p118_p2, %p117_p1  ;;  %s102_s23 = ssub.s32 %s9000_s16, %s11766_s20 }
   0xa   : > { %p7825_p6 = scmp.ge.s32.totalorder %s9004_s17, 1  ;;  %p105_p7 = scmp.eq.s32.totalorder %s102_s23, 0 }
   0xb   : > { %p9078_p8 = por %p124_p5, %p123_p3  ;;  %p161_p9 = scmp.lt.s32.totalorder %s9004_s17, 3 }
   0xc   : > { %s9084_s25 = scalar_select %p105_p7, %s8992_s14, %s107_s21  }
   0xd   : > { %p162_p10 = pnand %p7825_p6, %p161_p9 }
   0xe   : > { %p190_p11 = scmp.lt.s32.totalorder (!%p162_p10), %s8996_s15, 1  ;;  %v264_v0 = vlaneseq (!%p162_p10)  ;;  %v9006_v2 = vmov (!%p162_p10), 0   ;;  %vm409_vm0 = vcmask (!%p162_p10), 1041409   ;;  %vm412_vm1 = vcmask (!%p162_p10), 1042434   ;;  %s186_s21 = sand.u32 (!%p162_p10), 1, %s8988_s13  }
   0xf   : > { %165 = sbr.rel (%p162_p10) target bundleno = 848 (0x350), region = 32  ;;  %477 = vmatprep.mubr.bf16.mxu0 (!%p162_p10), %v9006_v2  ;;  %691 = vmatprep.mubr.bf16.mxu1 (!%p162_p10), %v9006_v2  ;;  %vm415_vm2 = vcmask (!%p162_p10), 1043459   ;;  %vm438_vm3 = vcmask (!%p162_p10), 1041408   ;;  %vm425_vm4 = vcmask (!%p162_p10), 31744   ;;  %s11706_s5 = scalar_lea.sflag (!%p162_p10), [#allocation3], %s186_s21 }
  0x10   : > { %v9089_v1 = vshrl.u32 (!%p162_p10), %v264_v0, 7  ;;  %8866 = vset.pattern.permute.xlu0 (!%p162_p10), %v9006_v2  ;;  %8867 = vset.pattern.permute.xlu1 (!%p162_p10), %v9006_v2  ;;  %vm10057_vm5 = vcmp.lt.s32.totalorder (!%p162_p10), %v264_v0, 256  ;;  %s9008_s7 = smov (!%p162_p10), [#allocation2]  }
  0x11   : > { %s8930_s8 = sshll.u32 (!%p162_p10), %s9008_s7, 4  ;;  %s8931_s8 = int_to_ptr.vmem [resolvable:$false] %s8930_s8 }
  0x12   : > { %v9096_v3 = vsub.s32 (!%p162_p10), 1, %v9089_v1  ;;  %v9099_v4 = vsub.s32 (!%p162_p10), 0, %v9089_v1  ;;  %s8932_s9 = scalar_lea.vmem (!%p162_p10), %s8931_s8, 16384 }
  0x16   : > { %s191_s26 = scalar_select %p190_p11, %s8996_s15, 1 }
  0x18   : > { %s8389_s27 = sshll.u32 %s191_s26, 6  ;;  %s8390_s26 = sshll.u32 %s8996_s15, 13 }
  0x19   : > { %s9104_s30 = scalar_lea.vmem %s11752_s0, %s8389_s27  ;;  %s10091_s27 = sshll.u32 %s186_s21, 9 }
  0x1a   : > { %v7864_v5 = vld [vmem:[%s9104_s30 + $0x1] ss:$8 sm:$0x3]  ;;  %v7865_v6 = vld [vmem:[%s9104_s30 + $0x11] ss:$8 sm:$0x3]  ;;  %s11682_s29 = scalar_lea.hbm %s11755_s3, %s8390_s26 }
  0x1b   : > { %v7866_v7 = vld [vmem:[%s9104_s30 + $0x21] ss:$8 sm:$0x3]  ;;  %v7867_v8 = vld [vmem:[%s9104_s30 + $0x31] ss:$8 sm:$0x3]  ;;  %v331_v9 = vrot.slane %v7864_v5, %v9096_v3  ;;  %v339_v10 = vrot.slane %v7865_v6, %v9096_v3  ;;  %v327_v11 = vrot.slane %v7864_v5, %v9099_v4  ;;  %v335_v12 = vrot.slane %v7865_v6, %v9099_v4 }
  0x1c   : > { %v347_v13 = vrot.slane %v7866_v7, %v9096_v3  ;;  %v355_v14 = vrot.slane %v7867_v8, %v9096_v3  ;;  %v343_v15 = vrot.slane %v7866_v7, %v9099_v4  ;;  %v351_v16 = vrot.slane %v7867_v8, %v9099_v4  ;;  %v253_v21 = vld [vmem:[%s9104_s30] ss:$8 sm:$0x3]  ;;  %v7861_v22 = vld [vmem:[%s9104_s30 + $0x10] ss:$8 sm:$0x3] }
  0x1d   : > { %v365_v17 = vpack.c.bf16 %v331_v9, %v331_v9  ;;  %v367_v18 = vpack.c.bf16 %v339_v10, %v339_v10  ;;  %v364_v19 = vpack.c.bf16 %v327_v11, %v327_v11  ;;  %v366_v20 = vpack.c.bf16 %v335_v12, %v335_v12  ;;  %v7862_v27 = vld [vmem:[%s9104_s30 + $0x20] ss:$8 sm:$0x3]  ;;  %v7863_v28 = vld [vmem:[%s9104_s30 + $0x30] ss:$8 sm:$0x3] }
  0x1e   : > { %v369_v23 = vpack.c.bf16 %v347_v13, %v347_v13  ;;  %v371_v24 = vpack.c.bf16 %v355_v14, %v355_v14  ;;  %v368_v25 = vpack.c.bf16 %v343_v15, %v343_v15  ;;  %v370_v26 = vpack.c.bf16 %v351_v16, %v351_v16  ;;  %v7900_v57 = vld [vmem:[%s9104_s30 + $0x2] ss:$8 sm:$0x3]  ;;  %v7901_v62 = vld [vmem:[%s9104_s30 + $0x12] ss:$8 sm:$0x3] }
  0x1f   : > { %v401_v29 = vunpack.c.l.b16 %v365_v17  ;;  %v403_v30 = vunpack.c.l.b16 %v367_v18  ;;  %v400_v31 = vunpack.c.l.b16 %v364_v19  ;;  %v402_v32 = vunpack.c.l.b16 %v366_v20  ;;  %v7902_v8 = vld [vmem:[%s9104_s30 + $0x22] ss:$8 sm:$0x3]  ;;  %s10127_s4 = scalar_lea.vmem [#allocation2], %s10091_s27 }
  0x20   : > { %v405_v33 = vunpack.c.l.b16 %v369_v23  ;;  %v407_v34 = vunpack.c.l.b16 %v371_v24  ;;  %v404_v35 = vunpack.c.l.b16 %v368_v25  ;;  %v406_v36 = vunpack.c.l.b16 %v370_v26  ;;  %v9143_v10 = vld [vmem:[%s11753_s1 + $0x60] sm:$0xff]   ;;  %s7742_s27 = sshll.u32 %s10127_s4, 4  ;;  %s11684_s27 = int_to_ptr.vmem [resolvable:$true] %s7742_s27 }
  0x21   : > { %v417_v37 = vrot.slane %v403_v30, 7  ;;  %v408_v38 = vrot.slane %v402_v32, 7  ;;  %v271_v39 = vrot.slane %v253_v21, %v9096_v3  ;;  %v279_v40 = vrot.slane %v7861_v22, %v9096_v3  ;;  %v9148_v12 = vld [vmem:[%s11753_s1 + $0x40] sm:$0xff]   ;;  %s8926_s6 = scalar_lea.vmem %s11684_s27, 8192  ;;  %p8933_p1 = scmp.lt.s32.totalorder %s11684_s27, %s8931_s8 }
  0x22   : > { %v419_v41 = vrot.slane %v405_v33, 6  ;;  %v421_v42 = vrot.slane %v407_v34, 5  ;;  %v411_v43 = vrot.slane %v404_v35, 6  ;;  %v414_v44 = vrot.slane %v406_v36, 5  ;;  %p8927_p12 = scmp.ne.s32.totalorder %s11684_s27, %s8926_s6  ;;  %p8934_p2 = scmp.lt.s32.totalorder %s8932_s9, %s8926_s6 }
  0x23   : > { %v418_v45 = vsel %vm409_vm0, %v417_v37, %v401_v29  ;;  %v410_v46 = vsel %vm409_vm0, %v408_v38, %v400_v31  ;;  %v287_v47 = vrot.slane %v7862_v27, %v9096_v3  ;;  %v295_v48 = vrot.slane %v7863_v28, %v9096_v3  ;;  %v9169_v38 = vld [vmem:[%s11753_s1 + $0x68] sm:$0xff]  }
  0x24   : > { %v420_v49 = vsel %vm412_vm1, %v419_v41, %v418_v45  ;;  %v413_v50 = vsel %vm412_vm1, %v411_v43, %v410_v46  ;;  %v305_v51 = vpack.c.bf16 %v271_v39, %v271_v39  ;;  %v307_v52 = vpack.c.bf16 %v279_v40, %v279_v40  ;;  %v9179_v46 = vld [vmem:[%s11753_s1 + $0x48] sm:$0xff]   ;;  %p8928_p13 = pnand %p8927_p12, %p9071_p4  ;;  %p8935_p3 = por %p8934_p2, %p8933_p1 }
  0x25   : > { %v422_v53 = vsel %vm415_vm2, %v421_v42, %v420_v49  ;;  %v416_v54 = vsel %vm415_vm2, %v414_v44, %v413_v50  ;;  %v309_v55 = vpack.c.bf16 %v287_v47, %v287_v47  ;;  %v311_v56 = vpack.c.bf16 %v295_v48, %v295_v48 }
  0x26   : > { %v424_v58 = vpack.c.b16 %v422_v53, %v422_v53  ;;  %v423_v59 = vpack.c.b16 %v416_v54, %v416_v54  ;;  %v547_v60 = vunpack.c.l.b16 %v305_v51  ;;  %v549_v61 = vunpack.c.l.b16 %v307_v52  ;;  %v9185_v53 = vld [vmem:[%s9104_s30 + $0x3] ss:$8 sm:$0x3]  ;;  %p8929_p0 = pneg %p8928_p13 }
  0x27   : > { %v551_v63 = vunpack.c.l.b16 %v309_v55  ;;  %v553_v5 = vunpack.c.l.b16 %v311_v56  ;;  %v267_v6 = vrot.slane %v253_v21, %v9099_v4  ;;  %v275_v7 = vrot.slane %v7861_v22, %v9099_v4  ;;  %v7903_v22 = vld [vmem:[%s9104_s30 + $0x32] ss:$8 sm:$0x3] }
  0x28   : > { %7872 = vmatprep.subr.msk.bf16.mxu0 %vm438_vm3, %v424_v58  ;;  %7886 = vmatprep.subr.msk.bf16.mxu1 %vm438_vm3, %v424_v58  ;;  %v440_v9 = vsel %vm438_vm3, %v423_v59, 0  ;;  %v560_v11 = vrot.slane %v549_v61, 7  ;;  %v283_v13 = vrot.slane %v7862_v27, %v9099_v4  ;;  %v291_v14 = vrot.slane %v7863_v28, %v9099_v4  ;;  %p8936_p5 = pnand %p8935_p3, %p8929_p0 }
  0x29   : > { %446 = vmatpush1.bf16.msra.mxu0 %v440_v9  ;;  %660 = vmatpush1.bf16.msra.mxu1 %v440_v9  ;;  %v562_v15 = vrot.slane %v551_v63, 6  ;;  %v564_v16 = vrot.slane %v553_v5, 5  ;;  %v304_v17 = vpack.c.bf16 %v267_v6, %v267_v6  ;;  %v306_v18 = vpack.c.bf16 %v275_v7, %v275_v7  ;;  %v9202_v9 = vld [vmem:[%s9104_s30 + $0x33] ss:$8 sm:$0x3] }
  0x2a   : > { %v561_v19 = vsel %vm409_vm0, %v560_v11, %v547_v60  ;;  %v308_v20 = vpack.c.bf16 %v283_v13, %v283_v13  ;;  %v310_v21 = vpack.c.bf16 %v291_v14, %v291_v14  ;;  %v856_v23 = vrot.slane %v7900_v57, %v9096_v3  ;;  %v9207_v13 = vld [vmem:[%s9104_s30 + $0x1] ss:$8 sm:$0x3] }
  0x2b   : > { %v563_v24 = vsel %vm412_vm1, %v562_v15, %v561_v19  ;;  %v546_v25 = vunpack.c.l.b16 %v304_v17  ;;  %v548_v26 = vunpack.c.l.b16 %v306_v18  ;;  %v864_v27 = vrot.slane %v7901_v62, %v9096_v3  ;;  %v9217_v17 = vld [vmem:[%s9104_s30 + $0x11] ss:$8 sm:$0x3]  ;;  %v9220_v18 = vld [vmem:[%s9104_s30 + $0x21] ss:$8 sm:$0x3] }
  0x2c   : > { %7873 = vmatmul.mubr.msk.bf16.vlgmr.msra.gmra.mrb[0].mxu0 %vm425_vm4, %v9143_v10  ;;  %v565_v28 = vsel %vm415_vm2, %v564_v16, %v563_v24  ;;  %7887 = vmatmul.mubr.msk.bf16.vlgmr.msra.gmra.mrb[0].mxu1 %vm425_vm4, %v9148_v12  ;;  %v550_v29 = vunpack.c.l.b16 %v308_v20  ;;  %v552_v30 = vunpack.c.l.b16 %v310_v21  ;;  %v872_v31 = vrot.slane %v7902_v8, %v9096_v3  ;;  %v9225_v19 = vld [vmem:[%s11753_s1 + $0x70] sm:$0xff]  }
  0x2d   : > { %v567_v32 = vpack.c.b16 %v565_v28, %v565_v28  ;;  %v554_v33 = vrot.slane %v548_v26, 7  ;;  %487 = vmatprep.mubr.bf16.mxu0 %v9006_v2  ;;  %701 = vmatprep.mubr.bf16.mxu1 %v9006_v2  ;;  %v880_v34 = vrot.slane %v7903_v22, %v9096_v3  ;;  %v890_v35 = vpack.c.bf16 %v856_v23, %v856_v23  ;;  %v9228_v23 = vld [vmem:[%s9104_s30 + $0x31] ss:$8 sm:$0x3] }
  0x2e   : > { %v556_v36 = vrot.slane %v550_v29, 6  ;;  %v558_v37 = vrot.slane %v552_v30, 5  ;;  %v892_v39 = vpack.c.bf16 %v864_v27, %v864_v27  ;;  %v894_v40 = vpack.c.bf16 %v872_v31, %v872_v31  ;;  %v9233_v24 = vld [vmem:[%s11753_s1 + $0x50] sm:$0xff]  }
  0x2f   : > { %7881 = vmatprep.subr.msk.bf16.mxu0 %vm438_vm3, %v567_v32  ;;  %7895 = vmatprep.subr.msk.bf16.mxu1 %vm438_vm3, %v567_v32  ;;  %v555_v41 = vsel %vm409_vm0, %v554_v33, %v546_v25  ;;  %v896_v42 = vpack.c.bf16 %v880_v34, %v880_v34  ;;  %v926_v43 = vunpack.c.l.b16 %v890_v35  ;;  %v852_v44 = vrot.slane %v7900_v57, %v9099_v4  ;;  %v9188_v57 = vld [vmem:[%s9104_s30 + $0x13] ss:$8 sm:$0x3] }
  0x30   : > { %v557_v45 = vsel %vm412_vm1, %v556_v36, %v555_v41  ;;  %v928_v47 = vunpack.c.l.b16 %v892_v39  ;;  %v930_v48 = vunpack.c.l.b16 %v894_v40  ;;  %v860_v49 = vrot.slane %v7901_v62, %v9099_v4  ;;  %v9192_v62 = vld [vmem:[%s9104_s30 + $0x23] ss:$8 sm:$0x3] }
  0x31   : > { %v559_v50 = vsel %vm415_vm2, %v558_v37, %v557_v45  ;;  %v932_v51 = vunpack.c.l.b16 %v896_v42  ;;  %v868_v52 = vrot.slane %v7902_v8, %v9099_v4  ;;  %v876_v59 = vrot.slane %v7903_v22, %v9099_v4 }
  0x32   : > { %v566_v54 = vpack.c.b16 %v559_v50, %v559_v50  ;;  %v939_v55 = vrot.slane %v928_v47, 7  ;;  %v941_v56 = vrot.slane %v930_v48, 6  ;;  %v889_v60 = vpack.c.bf16 %v852_v44, %v852_v44 }
  0x33   : > { %v943_v58 = vrot.slane %v932_v51, 5  ;;  %v891_v61 = vpack.c.bf16 %v860_v49, %v860_v49  ;;  %v893_v6 = vpack.c.bf16 %v868_v52, %v868_v52  ;;  %v1162_v11 = vrot.slane %v9185_v53, %v9096_v3 }
  0x34   : > { %v581_v63 = vsel %vm438_vm3, %v566_v54, 0  ;;  %7874 = vmatmul.mubr.msk.bf16.gmra.mrb[4].mxu0 %vm425_vm4, %v9169_v38  ;;  %7888 = vmatmul.mubr.msk.bf16.gmra.mrb[4].mxu1 %vm425_vm4, %v9179_v46  ;;  %v940_v5 = vsel %vm409_vm0, %v939_v55, %v926_v43  ;;  %v1170_v15 = vrot.slane %v9188_v57, %v9096_v3  ;;  %v1178_v16 = vrot.slane %v9192_v62, %v9096_v3  ;;  %v9257_v54 = vld [vmem:[%s11753_s1 + $0x78] sm:$0xff]  }
  0x35   : > { %587 = vmatpush1.bf16.msra.mxu0 %v581_v63  ;;  %765 = vmatpush1.bf16.msra.mxu1 %v581_v63  ;;  %v942_v7 = vsel %vm412_vm1, %v941_v56, %v940_v5  ;;  %v927_v8 = vunpack.c.l.b16 %v891_v61  ;;  %v895_v21 = vpack.c.bf16 %v876_v59, %v876_v59  ;;  %v925_v22 = vunpack.c.l.b16 %v889_v60  ;;  %v9262_v55 = vld [vmem:[%s11753_s1 + $0x58] sm:$0xff]  }
  0x36   : > { %497 = vmatprep.mubr.bf16.mxu0 %v9006_v2  ;;  %711 = vmatprep.mubr.bf16.mxu1 %v9006_v2  ;;  %v944_v14 = vsel %vm415_vm2, %v943_v58, %v942_v7  ;;  %v929_v25 = vunpack.c.l.b16 %v893_v6  ;;  %v1186_v27 = vrot.slane %v9202_v9, %v9096_v3  ;;  %v1198_v28 = vpack.c.bf16 %v1170_v15, %v1170_v15 }
  0x37   : > { %v946_v20 = vpack.c.b16 %v944_v14, %v944_v14  ;;  %v933_v26 = vrot.slane %v927_v8, 7  ;;  %v1200_v29 = vpack.c.bf16 %v1178_v16, %v1178_v16  ;;  %v2098_v30 = vrot.slane %v9207_v13, %v9096_v3 }
  0x38   : > { %v2106_v31 = vrot.slane %v9217_v17, %v9096_v3  ;;  %v1196_v32 = vpack.c.bf16 %v1162_v11, %v1162_v11  ;;  %v1214_v33 = vunpack.c.l.b16 %v1198_v28  ;;  %v931_v34 = vunpack.c.l.b16 %v895_v21 }
  0x39   : > { %7908 = vmatprep.subr.msk.bf16.mxu0 %vm438_vm3, %v946_v20  ;;  %7913 = vmatprep.subr.msk.bf16.mxu1 %vm438_vm3, %v946_v20  ;;  %v2114_v35 = vrot.slane %v9220_v18, %v9096_v3  ;;  %v2122_v36 = vrot.slane %v9228_v23, %v9096_v3  ;;  %v934_v37 = vsel %vm409_vm0, %v933_v26, %v925_v22  ;;  %v935_v39 = vrot.slane %v929_v25, 6  ;;  %v9279_v20 = vld [vmem:[%s11753_s1 + $0x20] sm:$0xff]  }
  0x3a   : > { %v1202_v40 = vpack.c.bf16 %v1186_v27, %v1186_v27  ;;  %v2132_v41 = vpack.c.bf16 %v2098_v30, %v2098_v30  ;;  %v1216_v42 = vunpack.c.l.b16 %v1200_v29  ;;  %v2134_v43 = vpack.c.bf16 %v2106_v31, %v2106_v31  ;;  %v9304_v31 = vld [vmem:[%s9104_s30 + $0x10] ss:$8 sm:$0x3] }
  0x3b   : > { %v2136_v44 = vpack.c.bf16 %v2114_v35, %v2114_v35  ;;  %v2138_v45 = vpack.c.bf16 %v2122_v36, %v2122_v36  ;;  %v1212_v47 = vunpack.c.l.b16 %v1196_v32  ;;  %v1225_v48 = vrot.slane %v1214_v33, 7  ;;  %v9312_v32 = vld [vmem:[%s11753_s1 + $0x28] sm:$0xff]  }
  0x3c   : > { %7875 = vmatmul.mubr.msk.bf16.gmra.mrb[8].mxu0 %vm425_vm4, %v9225_v19  ;;  %7889 = vmatmul.mubr.msk.bf16.gmra.mrb[8].mxu1 %vm425_vm4, %v9233_v24  ;;  %v937_v49 = vrot.slane %v931_v34, 5  ;;  %v2148_v50 = vunpack.c.l.b16 %v2132_v41  ;;  %v2150_v51 = vunpack.c.l.b16 %v2134_v43  ;;  %v936_v56 = vsel %vm412_vm1, %v935_v39, %v934_v37  ;;  %v9324_v37 = vld [vmem:[%s9104_s30 + $0x22] ss:$8 sm:$0x3] }
  0x3d   : > { %507 = vmatprep.mubr.bf16.mxu0 %v9006_v2  ;;  %721 = vmatprep.mubr.bf16.mxu1 %v9006_v2  ;;  %v2152_v52 = vunpack.c.l.b16 %v2136_v44  ;;  %v1218_v58 = vunpack.c.l.b16 %v1202_v40  ;;  %v2154_v59 = vunpack.c.l.b16 %v2138_v45  ;;  %v1227_v60 = vrot.slane %v1216_v42, 6  ;;  %v9333_v42 = vld [vmem:[%s9104_s30] ss:$8 sm:$0x3] }
  0x3e   : > { %v2161_v61 = vrot.slane %v2150_v51, 7  ;;  %v1226_v5 = vsel %vm409_vm0, %v1225_v48, %v1212_v47  ;;  %v938_v6 = vsel %vm415_vm2, %v937_v49, %v936_v56  ;;  %v1166_v28 = vrot.slane %v9188_v57, %v9099_v4  ;;  %v9336_v43 = vld [vmem:[%s9104_s30 + $0x2] ss:$8 sm:$0x3] }
  0x3f   : > { %v2163_v63 = vrot.slane %v2152_v52, 6  ;;  %v1229_v8 = vrot.slane %v1218_v58, 5  ;;  %v2165_v11 = vrot.slane %v2154_v59, 5  ;;  %v1228_v14 = vsel %vm412_vm1, %v1227_v60, %v1226_v5  ;;  %v9345_v48 = vld [vmem:[%s9104_s30 + $0x30] ss:$8 sm:$0x3] }
  0x40   : > { %v2162_v7 = vsel %vm409_vm0, %v2161_v61, %v2148_v50  ;;  %v945_v16 = vpack.c.b16 %v938_v6, %v938_v6  ;;  %v2102_v29 = vrot.slane %v9217_v17, %v9099_v4  ;;  %v1158_v30 = vrot.slane %v9185_v53, %v9099_v4  ;;  %v9307_v17 = vld [vmem:[%s9104_s30 + $0x12] ss:$8 sm:$0x3] }
  0x41   : > { %v2164_v15 = vsel %vm412_vm1, %v2163_v63, %v2162_v7  ;;  %v1230_v21 = vsel %vm415_vm2, %v1229_v8, %v1228_v14  ;;  %v1174_v57 = vrot.slane %v9192_v62, %v9099_v4  ;;  %v1197_v33 = vpack.c.bf16 %v1166_v28, %v1166_v28  ;;  %v9319_v62 = vld [vmem:[%s9104_s30 + $0x20] ss:$8 sm:$0x3]  ;;  %v9350_v49 = vld [vmem:[%s9104_s30 + $0x32] ss:$8 sm:$0x3] }
  0x42   : > { %v2166_v22 = vsel %vm415_vm2, %v2165_v11, %v2164_v15  ;;  %v960_v25 = vsel %vm438_vm3, %v945_v16, 0  ;;  %v1232_v26 = vpack.c.b16 %v1230_v21, %v1230_v21  ;;  %v2110_v34 = vrot.slane %v9220_v18, %v9099_v4  ;;  %v9361_v5 = vld [vmem:[%s11753_s1 + $0x30] sm:$0xff]  }
  0x43   : > { %v9284_v27 = vpack.c.b16 %v2166_v22, %v2166_v22  ;;  %v2094_v53 = vrot.slane %v9207_v13, %v9099_v4  ;;  %v2133_v35 = vpack.c.bf16 %v2102_v29, %v2102_v29  ;;  %v2050_v36 = vrot.slane %v9304_v31, %v9096_v3 }
  0x44   : > { %7876 = vmatmul.mubr.msk.bf16.gmra.mrb[12].mxu0 %vm425_vm4, %v9257_v54  ;;  %7890 = vmatmul.mubr.msk.bf16.gmra.mrb[12].mxu1 %vm425_vm4, %v9262_v55  ;;  %v2412_v39 = vrot.slane %v9307_v17, %v9096_v3  ;;  %v1182_v40 = vrot.slane %v9202_v9, %v9099_v4  ;;  %v1195_v18 = vpack.c.bf16 %v1158_v30, %v1158_v30  ;;  %v1213_v44 = vunpack.c.l.b16 %v1197_v33 }
  0x45   : > { %618 = vmatprep.mubr.bf16.mxu0 %v9006_v2  ;;  %796 = vmatprep.mubr.bf16.mxu1 %v9006_v2  ;;  %v1199_v41 = vpack.c.bf16 %v1174_v57, %v1174_v57  ;;  %v2118_v13 = vrot.slane %v9228_v23, %v9099_v4  ;;  %v2135_v45 = vpack.c.bf16 %v2110_v34, %v2110_v34  ;;  %v2149_v47 = vunpack.c.l.b16 %v2133_v35  ;;  %v201_v35 = vld [vmem:[%s11754_s2] sm:$0xff] }
  0x46   : > { %v2131_v9 = vpack.c.bf16 %v2094_v53, %v2094_v53  ;;  %v2058_v23 = vrot.slane %v9319_v62, %v9096_v3  ;;  %v2420_v50 = vrot.slane %v9324_v37, %v9096_v3  ;;  %v2042_v51 = vrot.slane %v9333_v42, %v9096_v3  ;;  %1346 = vperm.xlu0 %8866, %v201_v35  }
  0x47   : > { %v2078_v52 = vpack.c.bf16 %v2050_v36, %v2050_v36  ;;  %v2404_v56 = vrot.slane %v9336_v43, %v9096_v3  ;;  %v2440_v58 = vpack.c.bf16 %v2412_v39, %v2412_v39  ;;  %v1201_v59 = vpack.c.bf16 %v1182_v40, %v1182_v40 }
  0x48   : > { %v1211_v60 = vunpack.c.l.b16 %v1195_v18  ;;  %v1215_v61 = vunpack.c.l.b16 %v1199_v41  ;;  %v2137_v63 = vpack.c.bf16 %v2118_v13, %v2118_v13  ;;  %v1219_v6 = vrot.slane %v1213_v44, 7 }
  0x49   : > { %v2151_v7 = vunpack.c.l.b16 %v2135_v45  ;;  %v2066_v8 = vrot.slane %v9345_v48, %v9096_v3  ;;  %v2428_v11 = vrot.slane %v9350_v49, %v9096_v3  ;;  %v2147_v14 = vunpack.c.l.b16 %v2131_v9 }
  0x4a   : > { %v2155_v15 = vrot.slane %v2149_v47, 7  ;;  %v2080_v16 = vpack.c.bf16 %v2058_v23, %v2058_v23  ;;  %v2442_v21 = vpack.c.bf16 %v2420_v50, %v2420_v50  ;;  %v2076_v22 = vpack.c.bf16 %v2042_v51, %v2042_v51  ;;  %v202_v23 = vld [vmem:[%s11754_s2 + $0x8] sm:$0xff]  ;;  %v9384_v50 = vld [vmem:[%s11753_s1 + $0x38] sm:$0xff]  }
  0x4b   : > { %v2456_v28 = vunpack.c.l.b16 %v2440_v58  ;;  %v1217_v29 = vunpack.c.l.b16 %v1201_v59  ;;  %v2153_v30 = vunpack.c.l.b16 %v2137_v63  ;;  %v1221_v57 = vrot.slane %v1215_v61, 6  ;;  %1351 = vperm.xlu0 %8866, %v202_v23  }
  0x4c   : > { %7882 = vmatmul.mubr.msk.bf16.vlgmr.msra.gmra.mrb[0].mxu0 %vm425_vm4, %v9148_v12  ;;  %7896 = vmatmul.mubr.msk.bf16.vlgmr.msra.gmra.mrb[0].mxu1 %vm425_vm4, %v9279_v20  ;;  %v2157_v33 = vrot.slane %v2151_v7, 6  ;;  %v2082_v34 = vpack.c.bf16 %v2066_v8, %v2066_v8  ;;  %v2444_v53 = vpack.c.bf16 %v2428_v11, %v2428_v11  ;;  %v1220_v36 = vsel %vm409_vm0, %v1219_v6, %v1211_v60 }
  0x4d   : > { %966 = vmatpush1.bf16.msra.mxu0 %v960_v25  ;;  %1055 = vmatpush1.bf16.msra.mxu1 %v960_v25  ;;  %v2279_v25 = vunpack.c.l.b16 %v2078_v52  ;;  %v2156_v39 = vsel %vm409_vm0, %v2155_v15, %v2147_v14  ;;  %v2281_v40 = vunpack.c.l.b16 %v2080_v16  ;;  %v2458_v18 = vunpack.c.l.b16 %v2442_v21  ;;  %v203_v14 = vld [vmem:[%s11754_s2 + $0x10] sm:$0xff] }
  0x4e   : > { %628 = vmatprep.mubr.bf16.mxu0 %v9006_v2  ;;  %806 = vmatprep.mubr.bf16.mxu1 %v9006_v2  ;;  %v2277_v41 = vunpack.c.l.b16 %v2076_v22  ;;  %v2467_v45 = vrot.slane %v2456_v28, 7  ;;  %v1223_v9 = vrot.slane %v1217_v29, 5  ;;  %v2159_v47 = vrot.slane %v2153_v30, 5 }
  0x4f   : > { %7922 = vmatprep.subr.msk.bf16.mxu1 %vm438_vm3, %v1232_v26  ;;  %7997 = vmatprep.subr.msk.bf16.mxu0 %vm438_vm3, %v9284_v27  ;;  %v2438_v26 = vpack.c.bf16 %v2404_v56, %v2404_v56  ;;  %v2290_v13 = vrot.slane %v2279_v25, 7  ;;  %v1222_v51 = vsel %vm412_vm1, %v1221_v57, %v1220_v36  ;;  %v2158_v52 = vsel %vm412_vm1, %v2157_v33, %v2156_v39  ;;  %v204_v25 = vld [vmem:[%s11754_s2 + $0x18] sm:$0xff]  ;;  %v205_v36 = vld [vmem:[%s11754_s2 + $0x20] sm:$0xff] }
  0x50   : > { %v2283_v56 = vunpack.c.l.b16 %v2082_v34  ;;  %v2460_v58 = vunpack.c.l.b16 %v2444_v53  ;;  %v2292_v59 = vrot.slane %v2281_v40, 6  ;;  %v2469_v60 = vrot.slane %v2458_v18, 6  ;;  %1356 = vperm.xlu1 %8867, %v203_v14   ;;  %1366 = vperm.xlu0 %8866, %v205_v36   ;;  %v8032_v36 = vld [vmem:[%s9104_s30 + $0x23] ss:$8 sm:$0x3] }
  0x51   : > { %v2454_v44 = vunpack.c.l.b16 %v2438_v26  ;;  %v2291_v61 = vsel %vm409_vm0, %v2290_v13, %v2277_v41  ;;  %v1224_v6 = vsel %vm415_vm2, %v1223_v9, %v1222_v51  ;;  %v2160_v7 = vsel %vm415_vm2, %v2159_v47, %v2158_v52  ;;  %v9409_v26 = vld [vmem:[%s11753_s1 + $0x80] sm:$0xff]   ;;  %v208_v47 = vld [vmem:[%s11754_s2 + $0x38] sm:$0xff]  ;;  %v9471_v51 = vld [vmem:[%s11753_s1 + $0x90] sm:$0xff]  }
  0x52   : > { %v2294_v8 = vrot.slane %v2283_v56, 5  ;;  %v2471_v11 = vrot.slane %v2460_v58, 5  ;;  %v2293_v15 = vsel %vm412_vm1, %v2292_v59, %v2291_v61  ;;  %v1231_v21 = vpack.c.b16 %v1224_v6, %v1224_v6 }
  0x53   : > { %v2468_v63 = vsel %vm409_vm0, %v2467_v45, %v2454_v44  ;;  %v2167_v22 = vpack.c.b16 %v2160_v7, %v2160_v7  ;;  %v2046_v53 = vrot.slane %v9304_v31, %v9099_v4  ;;  %v2408_v35 = vrot.slane %v9307_v17, %v9099_v4  ;;  %v9442_v31 = vld [vmem:[%s11753_s1 + $0x88] sm:$0xff]  }
  0x54   : > { %7883 = vmatmul.mubr.msk.bf16.gmra.mrb[4].mxu0 %vm425_vm4, %v9179_v46  ;;  %7897 = vmatmul.mubr.msk.bf16.gmra.mrb[4].mxu1 %vm425_vm4, %v9312_v32  ;;  %v2470_v16 = vsel %vm412_vm1, %v2469_v60, %v2468_v63  ;;  %v2295_v28 = vsel %vm415_vm2, %v2294_v8, %v2293_v15  ;;  %v1234_v30 = vsel %vm438_vm3, %v1231_v21, 0  ;;  %v2054_v17 = vrot.slane %v9319_v62, %v9099_v4  ;;  %v9484_v21 = vld [vmem:[%s11753_s1 + $0x98] sm:$0xff]  }
  0x55   : > { %638 = vmatprep.mubr.bf16.mxu0 %v9006_v2  ;;  %816 = vmatprep.mubr.bf16.mxu1 %v9006_v2  ;;  %v2472_v29 = vsel %vm415_vm2, %v2471_v11, %v2470_v16  ;;  %v9415_v57 = vsel %vm438_vm3, %v2167_v22, 0  ;;  %v2297_v33 = vpack.c.b16 %v2295_v28, %v2295_v28  ;;  %v2416_v39 = vrot.slane %v9324_v37, %v9099_v4 }
  0x56   : > { %1361 = vperm.xlu1 %8867, %v204_v25   ;;  %v9417_v34 = vpack.c.b16 %v2472_v29, %v2472_v29  ;;  %v2038_v40 = vrot.slane %v9333_v42, %v9099_v4  ;;  %v2077_v18 = vpack.c.bf16 %v2046_v53, %v2046_v53  ;;  %v2400_v41 = vrot.slane %v9336_v43, %v9099_v4  ;;  %v207_v42 = vld [vmem:[%s11754_s2 + $0x30] sm:$0xff] }
  0x57   : > { %v2439_v13 = vpack.c.bf16 %v2408_v35, %v2408_v35  ;;  %v2062_v44 = vrot.slane %v9345_v48, %v9099_v4  ;;  %v2424_v45 = vrot.slane %v9350_v49, %v9099_v4  ;;  %v2079_v62 = vpack.c.bf16 %v2054_v17, %v2054_v17  ;;  %1376 = vperm.xlu0 %8866, %v207_v42   ;;  %v8031_v35 = vld [vmem:[%s9104_s30 + $0x13] ss:$8 sm:$0x3]  ;;  %v8030_v17 = vld [vmem:[%s9104_s30 + $0x3] ss:$8 sm:$0x3] }
  0x58   : > { %v2441_v37 = vpack.c.bf16 %v2416_v39, %v2416_v39  ;;  %v2075_v43 = vpack.c.bf16 %v2038_v40, %v2038_v40  ;;  %v2278_v48 = vunpack.c.l.b16 %v2077_v18  ;;  %v2437_v9 = vpack.c.bf16 %v2400_v41, %v2400_v41  ;;  %v8033_v39 = vld [vmem:[%s9104_s30 + $0x33] ss:$8 sm:$0x3] }
  0x59   : > { %v2455_v49 = vunpack.c.l.b16 %v2439_v13  ;;  %v2443_v23 = vpack.c.bf16 %v2424_v45, %v2424_v45  ;;  %v2280_v52 = vunpack.c.l.b16 %v2079_v62  ;;  %v2755_v18 = vrot.slane %v8033_v39, %v9096_v3 }
  0x5a   : > { %v2457_v56 = vunpack.c.l.b16 %v2441_v37  ;;  %v2276_v58 = vunpack.c.l.b16 %v2075_v43  ;;  %v2284_v59 = vrot.slane %v2278_v48, 7  ;;  %v2453_v60 = vunpack.c.l.b16 %v2437_v9 }
  0x5b   : > { %v2461_v61 = vrot.slane %v2455_v49, 7  ;;  %v2459_v6 = vunpack.c.l.b16 %v2443_v23  ;;  %v2286_v7 = vrot.slane %v2280_v52, 6  ;;  %v2771_v45 = vpack.c.bf16 %v2755_v18, %v2755_v18 }
  0x5c   : > { %7884 = vmatmul.mubr.msk.bf16.gmra.mrb[8].mxu0 %vm425_vm4, %v9233_v24  ;;  %7898 = vmatmul.mubr.msk.bf16.gmra.mrb[8].mxu1 %vm425_vm4, %v9361_v5  ;;  %v2463_v8 = vrot.slane %v2457_v56, 6  ;;  %v2285_v11 = vsel %vm409_vm0, %v2284_v59, %v2276_v58  ;;  %v2735_v56 = vrot.slane %v8031_v35, %v9099_v4  ;;  %v8045_v58 = vld [vmem:[%s9104_s30 + $0x14] ss:$8 sm:$0x3]  ;;  %v2743_v59 = vrot.slane %v8032_v36, %v9099_v4 }
  0x5d   : > { %648 = vmatprep.mubr.bf16.mxu0 %v9006_v2  ;;  %826 = vmatprep.mubr.bf16.mxu1 %v9006_v2  ;;  %v2462_v14 = vsel %vm409_vm0, %v2461_v61, %v2453_v60  ;;  %v2465_v16 = vrot.slane %v2459_v6, 5  ;;  %v2287_v22 = vsel %vm412_vm1, %v2286_v7, %v2285_v11  ;;  %v2787_v43 = vunpack.c.l.b16 %v2771_v45  ;;  %v9561_v61 = vld [vmem:[%s9104_s30 + $0x24] ss:$8 sm:$0x3] }
  0x5e   : > { %v2766_v60 = vpack.c.bf16 %v2735_v56, %v2735_v56  ;;  %v2751_v6 = vrot.slane %v8033_v39, %v9099_v4  ;;  %v8044_v7 = vld [vmem:[%s9104_s30 + $0x4] ss:$8 sm:$0x3]  ;;  %v3017_v56 = vrot.slane %v9561_v61, %v9099_v4 }
  0x5f   : > { %v2798_v49 = vrot.slane %v2787_v43, 5 }
  0x64   : > { %7885 = vmatmul.mubr.msk.bf16.gmra.mrb[12].mxu0 %vm425_vm4, %v9262_v55  ;;  %7899 = vmatmul.mubr.msk.bf16.gmra.mrb[12].mxu1 %vm425_vm4, %v9384_v50 }
  0x65   : > { %997 = vmatprep.mubr.bf16.mxu0 %v9006_v2  ;;  %1086 = vmatprep.mubr.bf16.mxu1 %v9006_v2 }
  0x6c   : > { %7909 = vmatmul.mubr.msk.bf16.vlgmr.msra.gmra.mrb[0].mxu0 %vm425_vm4, %v9409_v26  ;;  %7914 = vmatmul.mubr.msk.bf16.vlgmr.msra.gmra.mrb[0].mxu1 %vm425_vm4, %v9143_v10  ;;  %v206_v10 = vld [vmem:[%s11754_s2 + $0x28] sm:$0xff] }
  0x6d   : > { %1240 = vmatpush1.bf16.msra.mxu1 %v1234_v30  ;;  %2176 = vmatpush1.bf16.msra.mxu0 %v9415_v57 }
  0x6e   : > { %1007 = vmatprep.mubr.bf16.mxu0 %v9006_v2  ;;  %1096 = vmatprep.mubr.bf16.mxu1 %v9006_v2 }
  0x6f   : > { %8006 = vmatprep.subr.msk.bf16.mxu0 %vm438_vm3, %v2297_v33  ;;  %8020 = vmatprep.subr.msk.bf16.mxu1 %vm438_vm3, %v9417_v34 }
  0x70   : > { %1371 = vperm.xlu1 %8867, %v206_v10   ;;  %v2739_v10 = vrot.slane %v8031_v35, %v9096_v3 }
  0x72   : > { %v2767_v40 = vpack.c.bf16 %v2739_v10, %v2739_v10 }
  0x74   : > { %7910 = vmatmul.mubr.msk.bf16.gmra.mrb[4].mxu0 %vm425_vm4, %v9442_v31  ;;  %7915 = vmatmul.mubr.msk.bf16.gmra.mrb[4].mxu1 %vm425_vm4, %v9169_v38  ;;  %v2081_v38 = vpack.c.bf16 %v2062_v44, %v2062_v44  ;;  %v2783_v44 = vunpack.c.l.b16 %v2767_v40 }
  0x75   : > { %1017 = vmatprep.mubr.bf16.mxu0 %v9006_v2  ;;  %1106 = vmatprep.mubr.bf16.mxu1 %v9006_v2 }
  0x76   : > { %1381 = vperm.xlu1 %8867, %v208_v47   ;;  %v2282_v63 = vunpack.c.l.b16 %v2081_v38  ;;  %v2794_v42 = vrot.slane %v2783_v44, 7  ;;  %v9539_v38 = vld [vmem:[%s11753_s1] sm:$0xff]  }
  0x78   : > { %v2288_v15 = vrot.slane %v2282_v63, 5  ;;  %v3013_v63 = vrot.slane %v8045_v58, %v9096_v3 }
  0x7a   : > { %v2289_v25 = vsel %vm415_vm2, %v2288_v15, %v2287_v22  ;;  %v8047_v15 = vld [vmem:[%s9104_s30 + $0x34] ss:$8 sm:$0x3]  ;;  %v3005_v22 = vrot.slane %v8044_v7, %v9096_v3 }
  0x7b   : > { %v2296_v29 = vpack.c.b16 %v2289_v25, %v2289_v25  ;;  %v2770_v25 = vpack.c.bf16 %v2751_v6, %v2751_v6 }
  0x7c   : > { %7911 = vmatmul.mubr.msk.bf16.gmra.mrb[8].mxu0 %vm425_vm4, %v9471_v51  ;;  %7916 = vmatmul.mubr.msk.bf16.gmra.mrb[8].mxu1 %vm425_vm4, %v9225_v19  ;;  %v2464_v19 = vsel %vm412_vm1, %v2463_v8, %v2462_v14  ;;  %v2768_v8 = vpack.c.bf16 %v2743_v59, %v2743_v59  ;;  %v2782_v14 = vunpack.c.l.b16 %v2766_v60  ;;  %v3039_v35 = vpack.c.bf16 %v3005_v22, %v3005_v22  ;;  %v9648_v22 = vld [vmem:[%s9104_s30 + $0x35] ss:$8 sm:$0x3] }
  0x7d   : > { %1027 = vmatprep.mubr.bf16.mxu0 %v9006_v2  ;;  %1116 = vmatprep.mubr.bf16.mxu1 %v9006_v2  ;;  %v2466_v28 = vsel %vm415_vm2, %v2465_v16, %v2464_v19  ;;  %v2311_v33 = vsel %vm438_vm3, %v2296_v29, 0  ;;  %v3021_v16 = vrot.slane %v9561_v61, %v9096_v3  ;;  %v3041_v19 = vpack.c.bf16 %v3013_v63, %v3013_v63  ;;  %v9630_v63 = vld [vmem:[%s9104_s30 + $0x23] ss:$8 sm:$0x3] }
  0x7e   : > { %v2473_v30 = vpack.c.b16 %v2466_v28, %v2466_v28  ;;  %v9579_v28 = vld [vmem:[%s11753_s1 + $0x10] sm:$0xff]   ;;  %v3029_v29 = vrot.slane %v8047_v15, %v9096_v3  ;;  %v2786_v10 = vunpack.c.l.b16 %v2770_v25  ;;  %v3055_v40 = vunpack.c.l.b16 %v3039_v35  ;;  %v9639_v61 = vld [vmem:[%s9104_s30 + $0x3] ss:$8 sm:$0x3] }
  0x7f   : > { %v3001_v59 = vrot.slane %v8044_v7, %v9099_v4  ;;  %v3042_v7 = vpack.c.bf16 %v3017_v56, %v3017_v56  ;;  %v3303_v35 = vrot.slane %v9648_v22, %v9096_v3 }
  0x80   : > { %v2476_v53 = vsel %vm438_vm3, %v2473_v30, 0  ;;  %v3045_v39 = vpack.c.bf16 %v3029_v29, %v3029_v29  ;;  %v4172_v29 = vrot.slane %v9639_v61, %v9096_v3 }
  0x84   : > { %7912 = vmatmul.mubr.msk.bf16.gmra.mrb[12].mxu0 %vm425_vm4, %v9484_v21  ;;  %7917 = vmatmul.mubr.msk.bf16.gmra.mrb[12].mxu1 %vm425_vm4, %v9257_v54 }
  0x85   : > { %1271 = vmatprep.mubr.bf16.mxu1 %v9006_v2  ;;  %2207 = vmatprep.mubr.bf16.mxu0 %v9006_v2 }
  0x8c   : > { %7923 = vmatmul.mubr.msk.bf16.vlgmr.msra.gmra.mrb[0].mxu1 %vm425_vm4, %v9409_v26  ;;  %7998 = vmatmul.mubr.msk.bf16.vlgmr.msra.gmra.mrb[16].mxu0 %vm425_vm4, %v9279_v20 }
  0x8d   : > { %2317 = vmatpush1.bf16.msra.mxu0 %v2311_v33  ;;  %2571 = vmatpush1.bf16.msra.mxu1 %v2476_v53  ;;  %v2788_v33 = vrot.slane %v2782_v14, 7  ;;  %v3038_v14 = vpack.c.bf16 %v3001_v59, %v3001_v59 }
  0x8e   : > { %1281 = vmatprep.mubr.bf16.mxu1 %v9006_v2  ;;  %2217 = vmatprep.mubr.bf16.mxu0 %v9006_v2 }
  0x8f   : > { %8015 = vmatprep.subr.msk.bf16.mxu0 %vm438_vm3, %v9417_v34  ;;  %8025 = vmatprep.subr.msk.bf16.mxu1 %vm438_vm3, %v9284_v27  ;;  %v2747_v34 = vrot.slane %v8032_v36, %v9096_v3  ;;  %v2731_v27 = vrot.slane %v8030_v17, %v9096_v3  ;;  %v3057_v36 = vunpack.c.l.b16 %v3041_v19  ;;  %v9653_v19 = vld [vmem:[%s9104_s30 + $0x33] ss:$8 sm:$0x3] }
  0x91   : > { %v2769_v41 = vpack.c.bf16 %v2747_v34, %v2747_v34  ;;  %v2765_v13 = vpack.c.bf16 %v2731_v27, %v2731_v27  ;;  %v3068_v18 = vrot.slane %v3057_v36, 7  ;;  %v4196_v36 = vrot.slane %v9653_v19, %v9096_v3 }
  0x93   : > { %v2785_v62 = vunpack.c.l.b16 %v2769_v41  ;;  %v2781_v37 = vunpack.c.l.b16 %v2765_v13  ;;  %v2792_v41 = vrot.slane %v2786_v10, 5  ;;  %v9592_v13 = vld [vmem:[%s11753_s1 + $0x18] sm:$0xff]   ;;  %v3054_v10 = vunpack.c.l.b16 %v3038_v14 }
  0x94   : > { %7924 = vmatmul.mubr.msk.bf16.gmra.mrb[4].mxu1 %vm425_vm4, %v9442_v31  ;;  %7999 = vmatmul.mubr.msk.bf16.gmra.mrb[20].mxu0 %vm425_vm4, %v9312_v32 }
  0x95   : > { %1291 = vmatprep.mubr.bf16.mxu1 %v9006_v2  ;;  %2227 = vmatprep.mubr.bf16.mxu0 %v9006_v2  ;;  %v2796_v48 = vrot.slane %v2785_v62, 6  ;;  %v2795_v9 = vsel %vm409_vm0, %v2794_v42, %v2781_v37  ;;  %v3069_v62 = vsel %vm409_vm0, %v3068_v18, %v3055_v40  ;;  %v4206_v18 = vpack.c.bf16 %v4172_v29, %v4172_v29 }
  0x97   : > { %v2797_v47 = vsel %vm412_vm1, %v2796_v48, %v2795_v9 }
  0x98   : > { %v2799_v23 = vsel %vm415_vm2, %v2798_v49, %v2797_v47 }
  0x99   : > { %v2801_v52 = vpack.c.b16 %v2799_v23, %v2799_v23  ;;  %v3009_v23 = vrot.slane %v8045_v58, %v9099_v4 }
  0x9b   : > { %v3040_v58 = vpack.c.bf16 %v3009_v23, %v3009_v23 }
  0x9c   : > { %7925 = vmatmul.mubr.msk.bf16.gmra.mrb[8].mxu1 %vm425_vm4, %v9471_v51  ;;  %8000 = vmatmul.mubr.msk.bf16.gmra.mrb[24].mxu0 %vm425_vm4, %v9361_v5 }
  0x9d   : > { %1301 = vmatprep.mubr.bf16.mxu1 %v9006_v2  ;;  %2237 = vmatprep.mubr.bf16.mxu0 %v9006_v2 }
  0xa4   : > { %7926 = vmatmul.mubr.msk.bf16.gmra.mrb[12].mxu1 %vm425_vm4, %v9484_v21  ;;  %8001 = vmatmul.mubr.msk.bf16.gmra.mrb[28].mxu0 %vm425_vm4, %v9384_v50 }
  0xa5   : > { %2348 = vmatprep.mubr.bf16.mxu0 %v9006_v2  ;;  %2602 = vmatprep.mubr.bf16.mxu1 %v9006_v2 }
  0xac   : > { %8007 = vmatmul.mubr.msk.bf16.vlgmr.msra.gmra.mrb[16].mxu0 %vm425_vm4, %v9539_v38  ;;  %8021 = vmatmul.mubr.msk.bf16.vlgmr.msra.gmra.mrb[16].mxu1 %vm425_vm4, %v9279_v20  ;;  %v9556_v20 = vld [vmem:[%s11753_s1 + $0x8] sm:$0xff]  }
  0xad   : > { %2482 = vmatpush1.bf16.msra.mxu0 %v2476_v53  ;;  %2644 = vmatpush1.bf16.msra.mxu1 %v9415_v57  ;;  %v2727_v57 = vrot.slane %v8030_v17, %v9099_v4  ;;  %v3043_v53 = vpack.c.bf16 %v3021_v16, %v3021_v16  ;;  %v3056_v16 = vunpack.c.l.b16 %v3040_v58 }
  0xae   : > { %2358 = vmatprep.mubr.bf16.mxu0 %v9006_v2  ;;  %2612 = vmatprep.mubr.bf16.mxu1 %v9006_v2 }
  0xaf   : > { %8034 = vmatprep.subr.msk.bf16.mxu0 %vm438_vm3, %v2801_v52  ;;  %8039 = vmatprep.subr.msk.bf16.mxu1 %vm438_vm3, %v2801_v52  ;;  %v2764_v11 = vpack.c.bf16 %v2727_v57, %v2727_v57  ;;  %v3059_v27 = vunpack.c.l.b16 %v3043_v53  ;;  %v9616_v52 = vld [vmem:[%s9104_s30 + $0x15] ss:$8 sm:$0x3]  ;;  %v9625_v57 = vld [vmem:[%s9104_s30 + $0x25] ss:$8 sm:$0x3]  ;;  %v3058_v53 = vunpack.c.l.b16 %v3042_v7 }
  0xb0   : > { %v3287_v60 = vrot.slane %v9616_v52, %v9096_v3 }
  0xb1   : > { %v2780_v30 = vunpack.c.l.b16 %v2764_v11  ;;  %v3070_v45 = vrot.slane %v3059_v27, 6  ;;  %v9636_v11 = vld [vmem:[%s9104_s30 + $0x5] ss:$8 sm:$0x3] }
  0xb2   : > { %v3279_v25 = vrot.slane %v9636_v11, %v9096_v3 }
  0xb3   : > { %v2789_v34 = vsel %vm409_vm0, %v2788_v33, %v2780_v30  ;;  %v3071_v43 = vsel %vm412_vm1, %v3070_v45, %v3069_v62  ;;  %v3319_v45 = vpack.c.bf16 %v3303_v35, %v3303_v35  ;;  %v4212_v62 = vpack.c.bf16 %v4196_v36, %v4196_v36  ;;  %v9692_v36 = vld [vmem:[%s11753_s1 + $0x60] sm:$0xff]  }
  0xb4   : > { %8008 = vmatmul.mubr.msk.bf16.gmra.mrb[20].mxu0 %vm425_vm4, %v9556_v20  ;;  %8022 = vmatmul.mubr.msk.bf16.gmra.mrb[20].mxu1 %vm425_vm4, %v9312_v32  ;;  %v2784_v32 = vunpack.c.l.b16 %v2768_v8  ;;  %v3025_v8 = vrot.slane %v8047_v15, %v9099_v4  ;;  %v3295_v15 = vrot.slane %v9625_v57, %v9096_v3  ;;  %v3313_v27 = vpack.c.bf16 %v3279_v25, %v3279_v25 }
  0xb5   : > { %2368 = vmatprep.mubr.bf16.mxu0 %v9006_v2  ;;  %2622 = vmatprep.mubr.bf16.mxu1 %v9006_v2  ;;  %v3335_v59 = vunpack.c.l.b16 %v3319_v45  ;;  %v4228_v58 = vunpack.c.l.b16 %v4212_v62  ;;  %v9732_v45 = vld [vmem:[%s9104_s30 + $0x24] ss:$8 sm:$0x3]  ;;  %v3299_v62 = vrot.slane %v9648_v22, %v9099_v4 }
  0xb6   : > { %v2790_v17 = vrot.slane %v2784_v32, 6  ;;  %v3315_v32 = vpack.c.bf16 %v3287_v60, %v3287_v60  ;;  %v3044_v33 = vpack.c.bf16 %v3025_v8, %v3025_v8  ;;  %v9756_v22 = vld [vmem:[%s11753_s1 + $0x48] sm:$0xff]  }
  0xb8   : > { %v2791_v44 = vsel %vm412_vm1, %v2790_v17, %v2789_v34  ;;  %v3062_v17 = vrot.slane %v3056_v16, 7  ;;  %v3331_v40 = vunpack.c.l.b16 %v3315_v32  ;;  %v3346_v16 = vrot.slane %v3335_v59, 5  ;;  %v9768_v59 = vld [vmem:[%s9104_s30 + $0x34] ss:$8 sm:$0x3] }
  0xb9   : > { %v2793_v37 = vsel %vm415_vm2, %v2792_v41, %v2791_v44  ;;  %v3060_v44 = vunpack.c.l.b16 %v3044_v33 }
  0xba   : > { %v2800_v48 = vpack.c.b16 %v2793_v37, %v2793_v37  ;;  %v3063_v37 = vsel %vm409_vm0, %v3062_v17, %v3054_v10  ;;  %v9699_v10 = vld [vmem:[%s11753_s1 + $0x40] sm:$0xff]   ;;  %v3283_v17 = vrot.slane %v9616_v52, %v9099_v4  ;;  %v3291_v52 = vrot.slane %v9625_v57, %v9099_v4 }
  0xbb   : > { %v3066_v23 = vrot.slane %v3060_v44, 5 }
  0xbc   : > { %8009 = vmatmul.mubr.msk.bf16.gmra.mrb[24].mxu0 %vm425_vm4, %v9579_v28  ;;  %8023 = vmatmul.mubr.msk.bf16.gmra.mrb[24].mxu1 %vm425_vm4, %v9361_v5  ;;  %v3061_v5 = vunpack.c.l.b16 %v3045_v39  ;;  %v2803_v49 = vsel %vm438_vm3, %v2800_v48, 0  ;;  %v3317_v39 = vpack.c.bf16 %v3295_v15, %v3295_v15  ;;  %v3329_v48 = vunpack.c.l.b16 %v3313_v27  ;;  %v9717_v27 = vld [vmem:[%s9104_s30 + $0x12] ss:$8 sm:$0x3] }
  0xbd   : > { %2378 = vmatprep.mubr.bf16.mxu0 %v9006_v2  ;;  %2632 = vmatprep.mubr.bf16.mxu1 %v9006_v2  ;;  %v4239_v15 = vrot.slane %v4228_v58, 5  ;;  %v4462_v58 = vrot.slane %v9732_v45, %v9096_v3 }
  0xbe   : > { %v3072_v42 = vrot.slane %v3061_v5, 5  ;;  %v3064_v5 = vrot.slane %v3058_v53, 6 }
  0xc0   : > { %v3073_v9 = vsel %vm415_vm2, %v3072_v42, %v3071_v43  ;;  %v3333_v42 = vunpack.c.l.b16 %v3317_v39  ;;  %v3065_v56 = vsel %vm412_vm1, %v3064_v5, %v3063_v37  ;;  %v9727_v5 = vld [vmem:[%s9104_s30 + $0x22] ss:$8 sm:$0x3] }
  0xc1   : > { %v3075_v47 = vpack.c.b16 %v3073_v9, %v3073_v9  ;;  %v3342_v9 = vrot.slane %v3331_v40, 7  ;;  %v3067_v14 = vsel %vm415_vm2, %v3066_v23, %v3065_v56  ;;  %v3314_v40 = vpack.c.bf16 %v3283_v17, %v3283_v17  ;;  %v9763_v23 = vld [vmem:[%s9104_s30 + $0x32] ss:$8 sm:$0x3] }
  0xc2   : > { %v3344_v60 = vrot.slane %v3333_v42, 6  ;;  %v3074_v32 = vpack.c.b16 %v3067_v14, %v3067_v14  ;;  %v9741_v42 = vld [vmem:[%s9104_s30 + $0x2] ss:$8 sm:$0x3]  ;;  %v4132_v56 = vrot.slane %v9727_v5, %v9096_v3  ;;  %v3318_v14 = vpack.c.bf16 %v3299_v62, %v3299_v62 }
  0xc3   : > { %v3343_v8 = vsel %vm409_vm0, %v3342_v9, %v3329_v48  ;;  %v9749_v48 = vld [vmem:[%s11753_s1 + $0x68] sm:$0xff]  }
  0xc4   : > { %8010 = vmatmul.mubr.msk.bf16.gmra.mrb[28].mxu0 %vm425_vm4, %v9592_v13  ;;  %8024 = vmatmul.mubr.msk.bf16.gmra.mrb[28].mxu1 %vm425_vm4, %v9384_v50  ;;  %v3077_v33 = vsel %vm438_vm3, %v3074_v32, 0  ;;  %v4154_v17 = vpack.c.bf16 %v4132_v56, %v4132_v56 }
  0xc5   : > { %2513 = vmatprep.mubr.bf16.mxu0 %v9006_v2  ;;  %2675 = vmatprep.mubr.bf16.mxu1 %v9006_v2 }
  0xcc   : > { %8016 = vmatmul.mubr.msk.bf16.vlgmr.msra.gmra.mrb[16].mxu0 %vm425_vm4, %v9148_v12  ;;  %8026 = vmatmul.mubr.msk.bf16.vlgmr.msra.gmra.mrb[16].mxu1 %vm425_vm4, %v9539_v38  ;;  %v9619_v12 = vld [vmem:[%s9104_s30 + $0x13] ss:$8 sm:$0x3] }
  0xcd   : > { %2809 = vmatpush1.bf16.msra.mxu0 %v2803_v49  ;;  %2898 = vmatpush1.bf16.msra.mxu1 %v2803_v49  ;;  %v4180_v6 = vrot.slane %v9619_v12, %v9096_v3  ;;  %v4222_v49 = vunpack.c.l.b16 %v4206_v18  ;;  %v4176_v39 = vrot.slane %v9619_v12, %v9099_v4  ;;  %v9720_v12 = vld [vmem:[%s9104_s30 + $0x14] ss:$8 sm:$0x3]  ;;  %v4184_v18 = vrot.slane %v9630_v63, %v9099_v4 }
  0xce   : > { %2523 = vmatprep.mubr.bf16.mxu0 %v9006_v2  ;;  %2685 = vmatprep.mubr.bf16.mxu1 %v9006_v2  ;;  %v4454_v57 = vrot.slane %v9720_v12, %v9096_v3 }
  0xcf   : > { %8048 = vmatprep.subr.msk.bf16.mxu0 %vm438_vm3, %v3075_v47  ;;  %8053 = vmatprep.subr.msk.bf16.mxu1 %vm438_vm3, %v3075_v47  ;;  %v4208_v30 = vpack.c.bf16 %v4180_v6, %v4180_v6  ;;  %v4207_v44 = vpack.c.bf16 %v4176_v39, %v4176_v39  ;;  %v4209_v9 = vpack.c.bf16 %v4184_v18, %v4184_v18 }
  0xd0   : > { %v4484_v39 = vpack.c.bf16 %v4462_v58, %v4462_v58 }
  0xd1   : > { %v4224_v41 = vunpack.c.l.b16 %v4208_v30  ;;  %v4225_v32 = vunpack.c.l.b16 %v4209_v9  ;;  %v4335_v9 = vunpack.c.l.b16 %v4154_v17 }
  0xd3   : > { %v4235_v47 = vrot.slane %v4224_v41, 7  ;;  %v4168_v41 = vrot.slane %v9639_v61, %v9099_v4  ;;  %v4192_v61 = vrot.slane %v9653_v19, %v9099_v4  ;;  %v3330_v19 = vunpack.c.l.b16 %v3314_v40 }
  0xd4   : > { %8017 = vmatmul.mubr.msk.bf16.gmra.mrb[20].mxu0 %vm425_vm4, %v9179_v46  ;;  %8027 = vmatmul.mubr.msk.bf16.gmra.mrb[20].mxu1 %vm425_vm4, %v9556_v20  ;;  %v4188_v46 = vrot.slane %v9630_v63, %v9096_v3  ;;  %v3316_v63 = vpack.c.bf16 %v3291_v52, %v3291_v52  ;;  %v4231_v62 = vrot.slane %v4225_v32, 6 }
  0xd5   : > { %2533 = vmatprep.mubr.bf16.mxu0 %v9006_v2  ;;  %2695 = vmatprep.mubr.bf16.mxu1 %v9006_v2  ;;  %v4236_v7 = vsel %vm409_vm0, %v4235_v47, %v4222_v49  ;;  %v4205_v49 = vpack.c.bf16 %v4168_v41, %v4168_v41  ;;  %v4223_v47 = vunpack.c.l.b16 %v4207_v44  ;;  %v3334_v41 = vunpack.c.l.b16 %v3318_v14 }
  0xd6   : > { %v4210_v34 = vpack.c.bf16 %v4188_v46, %v4188_v46  ;;  %v3345_v46 = vsel %vm412_vm1, %v3344_v60, %v3343_v8  ;;  %v4116_v60 = vrot.slane %v9741_v42, %v9096_v3 }
  0xd7   : > { %v3347_v29 = vsel %vm415_vm2, %v3346_v16, %v3345_v46  ;;  %v4211_v46 = vpack.c.bf16 %v4192_v61, %v4192_v61 }
  0xd8   : > { %v4226_v43 = vunpack.c.l.b16 %v4210_v34  ;;  %v3349_v53 = vpack.c.b16 %v3347_v29, %v3347_v29  ;;  %v3275_v34 = vrot.slane %v9636_v11, %v9099_v4  ;;  %v4124_v11 = vrot.slane %v9717_v27, %v9096_v3 }
  0xd9   : > { %v4140_v29 = vrot.slane %v9763_v23, %v9096_v3  ;;  %v4227_v44 = vunpack.c.l.b16 %v4211_v46  ;;  %v4346_v46 = vrot.slane %v4335_v9, 6  ;;  %v4466_v9 = vrot.slane %v9768_v59, %v9099_v4 }
  0xda   : > { %v4237_v6 = vrot.slane %v4226_v43, 6  ;;  %v3312_v37 = vpack.c.bf16 %v3275_v34, %v3275_v34  ;;  %v9744_v43 = vld [vmem:[%s9104_s30 + $0x4] ss:$8 sm:$0x3]  ;;  %v4150_v34 = vpack.c.bf16 %v4116_v60, %v4116_v60 }
  0xdb   : > { %v4446_v8 = vrot.slane %v9744_v43, %v9096_v3 }
  0xdc   : > { %8018 = vmatmul.mubr.msk.bf16.gmra.mrb[24].mxu0 %vm425_vm4, %v9233_v24  ;;  %8028 = vmatmul.mubr.msk.bf16.gmra.mrb[24].mxu1 %vm425_vm4, %v9579_v28  ;;  %v4238_v25 = vsel %vm412_vm1, %v4237_v6, %v4236_v7  ;;  %v4152_v6 = vpack.c.bf16 %v4124_v11, %v4124_v11  ;;  %v4482_v7 = vpack.c.bf16 %v4454_v57, %v4454_v57  ;;  %v3328_v16 = vunpack.c.l.b16 %v3312_v37  ;;  %v9783_v11 = vld [vmem:[%s11753_s1 + $0x70] sm:$0xff]  }
  0xdd   : > { %2543 = vmatprep.mubr.bf16.mxu0 %v9006_v2  ;;  %2705 = vmatprep.mubr.bf16.mxu1 %v9006_v2  ;;  %v4240_v30 = vsel %vm415_vm2, %v4239_v15, %v4238_v25  ;;  %v3332_v15 = vunpack.c.l.b16 %v3316_v63  ;;  %v3336_v25 = vrot.slane %v3330_v19, 7  ;;  %v4480_v40 = vpack.c.bf16 %v4446_v8, %v4446_v8 }
  0xde   : > { %v9687_v35 = vpack.c.b16 %v4240_v30, %v4240_v30  ;;  %v4470_v30 = vrot.slane %v9768_v59, %v9096_v3  ;;  %v4333_v52 = vunpack.c.l.b16 %v4152_v6  ;;  %v4498_v18 = vunpack.c.l.b16 %v4482_v7 }
  0xdf   : > { %v3338_v57 = vrot.slane %v3332_v15, 6  ;;  %v4156_v37 = vpack.c.bf16 %v4140_v29, %v4140_v29  ;;  %v3337_v61 = vsel %vm409_vm0, %v3336_v25, %v3328_v16  ;;  %v4496_v58 = vunpack.c.l.b16 %v4480_v40 }
  0xe0   : > { %v4486_v63 = vpack.c.bf16 %v4470_v30, %v4470_v30  ;;  %v4344_v56 = vrot.slane %v4333_v52, 7  ;;  %v4509_v60 = vrot.slane %v4498_v18, 7  ;;  %v3340_v6 = vrot.slane %v3334_v41, 5 }
  0xe1   : > { %v3339_v8 = vsel %vm412_vm1, %v3338_v57, %v3337_v61  ;;  %v4337_v14 = vunpack.c.l.b16 %v4156_v37  ;;  %v4120_v57 = vrot.slane %v9717_v27, %v9099_v4  ;;  %v4458_v37 = vrot.slane %v9732_v45, %v9099_v4 }
  0xe2   : > { %v4502_v15 = vunpack.c.l.b16 %v4486_v63  ;;  %v4510_v25 = vsel %vm409_vm0, %v4509_v60, %v4496_v58  ;;  %v3341_v29 = vsel %vm415_vm2, %v3340_v6, %v3339_v8  ;;  %v4112_v27 = vrot.slane %v9741_v42, %v9099_v4 }
  0xe3   : > { %v4151_v63 = vpack.c.bf16 %v4120_v57, %v4120_v57  ;;  %v4483_v45 = vpack.c.bf16 %v4458_v37, %v4458_v37  ;;  %v9896_v57 = vld [vmem:[%s11753_s1 + $0x28] sm:$0xff]  }
  0xe4   : > { %8019 = vmatmul.mubr.msk.bf16.gmra.mrb[28].mxu0 %vm425_vm4, %v9262_v55  ;;  %8029 = vmatmul.mubr.msk.bf16.gmra.mrb[28].mxu1 %vm425_vm4, %v9592_v13  ;;  %v4149_v42 = vpack.c.bf16 %v4112_v27, %v4112_v27 }
  0xe5   : > { %2840 = vmatprep.mubr.bf16.mxu0 %v9006_v2  ;;  %2929 = vmatprep.mubr.bf16.mxu1 %v9006_v2  ;;  %v4499_v59 = vunpack.c.l.b16 %v4483_v45 }
  0xe6   : > { %v4330_v60 = vunpack.c.l.b16 %v4149_v42 }
  0xec   : > { %8035 = vmatmul.mubr.msk.bf16.vlgmr.msra.gmra.mrb[16].mxu0 %vm425_vm4, %v9692_v36  ;;  %8040 = vmatmul.mubr.msk.bf16.vlgmr.msra.gmra.mrb[16].mxu1 %vm425_vm4, %v9699_v10 }
  0xed   : > { %3083 = vmatpush1.bf16.msra.mxu0 %v3077_v33  ;;  %3172 = vmatpush1.bf16.msra.mxu1 %v3077_v33  ;;  %v4221_v33 = vunpack.c.l.b16 %v4205_v49  ;;  %v4500_v49 = vunpack.c.l.b16 %v4484_v39 }
  0xee   : > { %2850 = vmatprep.mubr.bf16.mxu0 %v9006_v2  ;;  %2939 = vmatprep.mubr.bf16.mxu1 %v9006_v2 }
  0xef   : > { %8062 = vmatprep.subr.msk.bf16.mxu1 %vm438_vm3, %v3349_v53  ;;  %8139 = vmatprep.subr.msk.bf16.mxu0 %vm438_vm3, %v9687_v35  ;;  %v4229_v53 = vrot.slane %v4223_v47, 7  ;;  %v4331_v47 = vunpack.c.l.b16 %v4150_v34  ;;  %v4511_v32 = vrot.slane %v4500_v49, 6  ;;  %v3348_v34 = vpack.c.b16 %v3341_v29, %v3341_v29 }
  0xf1   : > { %v4230_v19 = vsel %vm409_vm0, %v4229_v53, %v4221_v33  ;;  %v4345_v16 = vsel %vm409_vm0, %v4344_v56, %v4331_v47  ;;  %v4348_v33 = vrot.slane %v4337_v14, 5  ;;  %v4513_v53 = vrot.slane %v4502_v15, 5 }
  0xf2   : > { %v4232_v7 = vsel %vm412_vm1, %v4231_v62, %v4230_v19  ;;  %v4347_v17 = vsel %vm412_vm1, %v4346_v46, %v4345_v16  ;;  %v4512_v39 = vsel %vm412_vm1, %v4511_v32, %v4510_v25  ;;  %v4450_v62 = vrot.slane %v9720_v12, %v9099_v4 }
  0xf3   : > { %v4349_v40 = vsel %vm415_vm2, %v4348_v33, %v4347_v17  ;;  %v4514_v18 = vsel %vm415_vm2, %v4513_v53, %v4512_v39  ;;  %v4442_v12 = vrot.slane %v9744_v43, %v9099_v4  ;;  %v4136_v19 = vrot.slane %v9763_v23, %v9099_v4  ;;  %v8893_v53 = vld [vmem:[%s11753_s1 + $0x78] sm:$0xff]  }
  0xf4   : > { %8036 = vmatmul.mubr.msk.bf16.gmra.mrb[20].mxu0 %vm425_vm4, %v9749_v48  ;;  %8041 = vmatmul.mubr.msk.bf16.gmra.mrb[20].mxu1 %vm425_vm4, %v9756_v22  ;;  %v4351_v41 = vpack.c.b16 %v4349_v40, %v4349_v40  ;;  %v4481_v61 = vpack.c.bf16 %v4450_v62, %v4450_v62  ;;  %v4332_v43 = vunpack.c.l.b16 %v4151_v63  ;;  %v4485_v56 = vpack.c.bf16 %v4466_v9, %v4466_v9  ;;  %v9876_v40 = vld [vmem:[%s11753_s1 + $0x20] sm:$0xff]  }
  0xf5   : > { %2860 = vmatprep.mubr.bf16.mxu0 %v9006_v2  ;;  %2949 = vmatprep.mubr.bf16.mxu1 %v9006_v2  ;;  %v4479_v49 = vpack.c.bf16 %v4442_v12, %v4442_v12  ;;  %v4155_v23 = vpack.c.bf16 %v4136_v19, %v4136_v19  ;;  %v4505_v15 = vrot.slane %v4499_v59, 6  ;;  %v9911_v12 = vld [vmem:[%s11753_s1 + $0x30] sm:$0xff]  }
  0xf6   : > { %v4497_v47 = vunpack.c.l.b16 %v4481_v61  ;;  %v4338_v6 = vrot.slane %v4332_v43, 7 }
  0xf8   : > { %v4503_v8 = vrot.slane %v4497_v47, 7  ;;  %v4339_v46 = vsel %vm409_vm0, %v4338_v6, %v4330_v60  ;;  %v8183_v60 = vld [vmem:[%s9104_s30 + $0x16] ss:$8 sm:$0x3] }
  0xfc   : > { %8037 = vmatmul.mubr.msk.bf16.gmra.mrb[24].mxu0 %vm425_vm4, %v9783_v11  ;;  %8042 = vmatmul.mubr.msk.bf16.gmra.mrb[24].mxu1 %vm425_vm4, %v9233_v24  ;;  %v4233_v24 = vrot.slane %v4227_v44, 5  ;;  %v9813_v44 = vpack.c.b16 %v4514_v18, %v4514_v18  ;;  %v8170_v18 = vld [vmem:[%s9104_s30 + $0x25] ss:$8 sm:$0x3] }
  0xfd   : > { %2870 = vmatprep.mubr.bf16.mxu0 %v9006_v2  ;;  %2959 = vmatprep.mubr.bf16.mxu1 %v9006_v2 }
  0xfe   : > { %v4234_v30 = vsel %vm415_vm2, %v4233_v24, %v4232_v7  ;;  %v4495_v24 = vunpack.c.l.b16 %v4479_v49  ;;  %v4336_v7 = vunpack.c.l.b16 %v4155_v23 }
  0xff   : > { %v4241_v52 = vpack.c.b16 %v4234_v30, %v4234_v30 }
 0x100   : > { %v4504_v32 = vsel %vm409_vm0, %v4503_v8, %v4495_v24  ;;  %v4342_v16 = vrot.slane %v4336_v7, 5  ;;  %v4785_v8 = vrot.slane %v8170_v18, %v9099_v4 }
 0x101   : > { %v4506_v30 = vsel %vm412_vm1, %v4505_v15, %v4504_v32 }
 0x104   : > { %8038 = vmatmul.mubr.msk.bf16.gmra.mrb[28].mxu0 %vm425_vm4, %v9257_v54  ;;  %8043 = vmatmul.mubr.msk.bf16.gmra.mrb[28].mxu1 %vm425_vm4, %v9262_v55  ;;  %v3351_v54 = vsel %vm438_vm3, %v3348_v34, 0  ;;  %v9811_v55 = vsel %vm438_vm3, %v4241_v52, 0 }
 0x105   : > { %3114 = vmatprep.mubr.bf16.mxu0 %v9006_v2  ;;  %3203 = vmatprep.mubr.bf16.mxu1 %v9006_v2 }
 0x10c   : > { %8049 = vmatmul.mubr.msk.bf16.vlgmr.msra.gmra.mrb[16].mxu0 %vm425_vm4, %v9409_v26  ;;  %8054 = vmatmul.mubr.msk.bf16.vlgmr.msra.gmra.mrb[16].mxu1 %vm425_vm4, %v9692_v36  ;;  %v4128_v36 = vrot.slane %v9727_v5, %v9099_v4 }
 0x10d   : > { %3357 = vmatpush1.bf16.msra.mxu1 %v3351_v54  ;;  %4250 = vmatpush1.bf16.msra.mxu0 %v9811_v55 }
 0x10e   : > { %3124 = vmatprep.mubr.bf16.mxu0 %v9006_v2  ;;  %3213 = vmatprep.mubr.bf16.mxu1 %v9006_v2  ;;  %v4153_v5 = vpack.c.bf16 %v4128_v36, %v4128_v36 }
 0x10f   : > { %8144 = vmatprep.subr.msk.bf16.mxu0 %vm438_vm3, %v4351_v41  ;;  %8158 = vmatprep.subr.msk.bf16.mxu1 %vm438_vm3, %v9813_v44  ;;  %v8168_v41 = vld [vmem:[%s9104_s30 + $0x5] ss:$8 sm:$0x3] }
 0x110   : > { %v4334_v58 = vunpack.c.l.b16 %v4153_v5  ;;  %v4773_v62 = vrot.slane %v8168_v41, %v9096_v3 }
 0x112   : > { %v4340_v14 = vrot.slane %v4334_v58, 6  ;;  %v4807_v27 = vpack.c.bf16 %v4773_v62, %v4773_v62 }
 0x114   : > { %8050 = vmatmul.mubr.msk.bf16.gmra.mrb[20].mxu0 %vm425_vm4, %v9442_v31  ;;  %8055 = vmatmul.mubr.msk.bf16.gmra.mrb[20].mxu1 %vm425_vm4, %v9749_v48  ;;  %v4501_v48 = vunpack.c.l.b16 %v4485_v56  ;;  %v4341_v29 = vsel %vm412_vm1, %v4340_v14, %v4339_v46  ;;  %v4823_v9 = vunpack.c.l.b16 %v4807_v27  ;;  %v5055_v14 = vrot.slane %v8183_v60, %v9096_v3  ;;  %v8184_v46 = vld [vmem:[%s9104_s30 + $0x26] ss:$8 sm:$0x3] }
 0x115   : > { %3134 = vmatprep.mubr.bf16.mxu0 %v9006_v2  ;;  %3223 = vmatprep.mubr.bf16.mxu1 %v9006_v2  ;;  %v4343_v33 = vsel %vm415_vm2, %v4342_v16, %v4341_v29  ;;  %v5051_v29 = vrot.slane %v8183_v60, %v9099_v4 }
 0x116   : > { %v4507_v25 = vrot.slane %v4501_v48, 5  ;;  %v4350_v17 = vpack.c.b16 %v4343_v33, %v4343_v33  ;;  %v4810_v33 = vpack.c.bf16 %v4785_v8, %v4785_v8 }
 0x118   : > { %v4353_v34 = vsel %vm438_vm3, %v4350_v17, 0  ;;  %v5063_v17 = vrot.slane %v8184_v46, %v9096_v3 }
 0x11c   : > { %8051 = vmatmul.mubr.msk.bf16.gmra.mrb[24].mxu0 %vm425_vm4, %v9471_v51  ;;  %8056 = vmatmul.mubr.msk.bf16.gmra.mrb[24].mxu1 %vm425_vm4, %v9783_v11  ;;  %v4508_v11 = vsel %vm415_vm2, %v4507_v25, %v4506_v30  ;;  %v8182_v25 = vld [vmem:[%s9104_s30 + $0x6] ss:$8 sm:$0x3] }
 0x11d   : > { %3144 = vmatprep.mubr.bf16.mxu0 %v9006_v2  ;;  %3233 = vmatprep.mubr.bf16.mxu1 %v9006_v2  ;;  %v4515_v39 = vpack.c.b16 %v4508_v11, %v4508_v11 }
 0x11f   : > { %v9869_v52 = vsel %vm438_vm3, %v4515_v39, 0  ;;  %v5083_v39 = vpack.c.bf16 %v5055_v14, %v5055_v14  ;;  %v9998_v14 = vld [vmem:[%s9104_s30 + $0x37] ss:$8 sm:$0x3] }
 0x124   : > { %8052 = vmatmul.mubr.msk.bf16.gmra.mrb[28].mxu0 %vm425_vm4, %v9484_v21  ;;  %8057 = vmatmul.mubr.msk.bf16.gmra.mrb[28].mxu1 %vm425_vm4, %v8893_v53  ;;  %v8185_v53 = vld [vmem:[%s9104_s30 + $0x36] ss:$8 sm:$0x3] }
 0x125   : > { %3388 = vmatprep.mubr.bf16.mxu1 %v9006_v2  ;;  %4281 = vmatprep.mubr.bf16.mxu0 %v9006_v2 }
 0x12c   : > { %8063 = vmatmul.mubr.msk.bf16.vlgmr.msra.gmra.mrb[16].mxu1 %vm425_vm4, %v9409_v26  ;;  %8140 = vmatmul.mubr.msk.bf16.vlgmr.msra.gmra.mrb[32].mxu0 %vm425_vm4, %v9876_v40  ;;  %v8169_v26 = vld [vmem:[%s9104_s30 + $0x15] ss:$8 sm:$0x3] }
 0x12d   : > { %4359 = vmatpush1.bf16.msra.mxu0 %v4353_v34  ;;  %4613 = vmatpush1.bf16.msra.mxu1 %v9869_v52  ;;  %v4781_v54 = vrot.slane %v8169_v26, %v9096_v3  ;;  %v4777_v58 = vrot.slane %v8169_v26, %v9099_v4  ;;  %v5059_v34 = vrot.slane %v8184_v46, %v9099_v4  ;;  %v9007_v46 = vmov 1966171168  }
 0x12e   : > { %3398 = vmatprep.mubr.bf16.mxu1 %v9006_v2  ;;  %4291 = vmatprep.mubr.bf16.mxu0 %v9006_v2  ;;  %v5082_v26 = vpack.c.bf16 %v5051_v29, %v5051_v29 }
 0x12f   : > { %8153 = vmatprep.subr.msk.bf16.mxu0 %vm438_vm3, %v9813_v44  ;;  %8163 = vmatprep.subr.msk.bf16.mxu1 %vm438_vm3, %v9687_v35  ;;  %v8171_v35 = vld [vmem:[%s9104_s30 + $0x35] ss:$8 sm:$0x3]  ;;  %v4789_v44 = vrot.slane %v8170_v18, %v9096_v3  ;;  %v4809_v36 = vpack.c.bf16 %v4781_v54, %v4781_v54  ;;  %v4808_v7 = vpack.c.bf16 %v4777_v58, %v4777_v58 }
 0x130   : > { %v4793_v16 = vrot.slane %v8171_v35, %v9099_v4  ;;  %v9985_v58 = vld [vmem:[%s9104_s30 + $0x15] ss:$8 sm:$0x3] }
 0x131   : > { %v4811_v37 = vpack.c.bf16 %v4789_v44, %v4789_v44  ;;  %v4825_v63 = vunpack.c.l.b16 %v4809_v36  ;;  %v4824_v11 = vunpack.c.l.b16 %v4808_v7  ;;  %v5071_v44 = vrot.slane %v8185_v53, %v9096_v3  ;;  %v9995_v7 = vld [vmem:[%s9104_s30 + $0x7] ss:$8 sm:$0x3] }
 0x132   : > { %v5085_v36 = vpack.c.bf16 %v5063_v17, %v5063_v17 }
 0x133   : > { %v4827_v19 = vunpack.c.l.b16 %v4811_v37  ;;  %v4836_v5 = vrot.slane %v4825_v63, 7  ;;  %v5067_v37 = vrot.slane %v8185_v53, %v9099_v4 }
 0x134   : > { %8064 = vmatmul.mubr.msk.bf16.gmra.mrb[20].mxu1 %vm425_vm4, %v9442_v31  ;;  %8141 = vmatmul.mubr.msk.bf16.gmra.mrb[36].mxu0 %vm425_vm4, %v9896_v57  ;;  %v4797_v31 = vrot.slane %v8171_v35, %v9096_v3  ;;  %v4830_v35 = vrot.slane %v4824_v11, 7 }
 0x135   : > { %3408 = vmatprep.mubr.bf16.mxu1 %v9006_v2  ;;  %4301 = vmatprep.mubr.bf16.mxu0 %v9006_v2  ;;  %v4838_v49 = vrot.slane %v4827_v19, 6  ;;  %v4837_v23 = vsel %vm409_vm0, %v4836_v5, %v4823_v9  ;;  %v9977_v19 = vld [vmem:[%s9104_s30 + $0x17] ss:$8 sm:$0x3]  ;;  %v5098_v5 = vunpack.c.l.b16 %v5082_v26 }
 0x136   : > { %v4813_v61 = vpack.c.bf16 %v4797_v31, %v4797_v31  ;;  %v5099_v31 = vunpack.c.l.b16 %v5083_v39 }
 0x137   : > { %v4839_v59 = vsel %vm412_vm1, %v4838_v49, %v4837_v23  ;;  %v5104_v29 = vrot.slane %v5098_v5, 7 }
 0x138   : > { %v4829_v42 = vunpack.c.l.b16 %v4813_v61  ;;  %v5084_v61 = vpack.c.bf16 %v5059_v34, %v5059_v34  ;;  %v5110_v60 = vrot.slane %v5099_v31, 7  ;;  %v10013_v34 = vld [vmem:[%s9104_s30 + $0x5] ss:$8 sm:$0x3] }
 0x13a   : > { %v4840_v56 = vrot.slane %v4829_v42, 5  ;;  %v5100_v8 = vunpack.c.l.b16 %v5084_v61 }
 0x13c   : > { %8065 = vmatmul.mubr.msk.bf16.gmra.mrb[24].mxu1 %vm425_vm4, %v9471_v51  ;;  %8142 = vmatmul.mubr.msk.bf16.gmra.mrb[40].mxu0 %vm425_vm4, %v9911_v12  ;;  %v5106_v31 = vrot.slane %v5100_v8, 6 }
 0x13d   : > { %3418 = vmatprep.mubr.bf16.mxu1 %v9006_v2  ;;  %4311 = vmatprep.mubr.bf16.mxu0 %v9006_v2 }
 0x13f   : > { %v9917_v45 = vpop.f32.mrb[0].mxu0 }
 0x140   : > { %v9919_v51 = vpop.f32.mrb[1].mxu0 }
 0x141   : > { %v9921_v43 = vpop.f32.mrb[2].mxu0 }
 0x142   : > { %v9923_v47 = vpop.f32.mrb[3].mxu0 }
 0x144   : > { %8066 = vmatmul.mubr.msk.bf16.gmra.mrb[28].mxu1 %vm425_vm4, %v9484_v21  ;;  %8143 = vmatmul.mubr.msk.bf16.gmra.mrb[44].mxu0 %vm425_vm4, %v9384_v50  ;;  %v4841_v21 = vsel %vm415_vm2, %v4840_v56, %v4839_v59  ;;  %v4769_v50 = vrot.slane %v8168_v41, %v9099_v4  ;;  %v4826_v41 = vunpack.c.l.b16 %v4810_v33  ;;  %v5087_v56 = vpack.c.bf16 %v5071_v44, %v5071_v44 }
 0x145   : > { %4390 = vmatprep.mubr.bf16.mxu0 %v9006_v2  ;;  %4644 = vmatprep.mubr.bf16.mxu1 %v9006_v2  ;;  %v4843_v32 = vpack.c.b16 %v4841_v21, %v4841_v21  ;;  %v5101_v59 = vunpack.c.l.b16 %v5085_v36  ;;  %v9990_v21 = vld [vmem:[%s9104_s30 + $0x27] ss:$8 sm:$0x3]  ;;  %v6222_v33 = vrot.slane %v9985_v58, %v9096_v3 }
 0x146   : > { %v4806_v30 = vpack.c.bf16 %v4769_v50, %v4769_v50  ;;  %v4832_v23 = vrot.slane %v4826_v41, 6  ;;  %v5103_v39 = vunpack.c.l.b16 %v5087_v56 }
 0x147   : > { %v9935_v6 = vpop.f32.mrb[4].mxu0 }
 0x148   : > { %v9937_v24 = vpop.f32.mrb[5].mxu0  ;;  %v4822_v54 = vunpack.c.l.b16 %v4806_v30  ;;  %v10003_v30 = vld [vmem:[%s9104_s30 + $0x25] ss:$8 sm:$0x3]  ;;  %v5114_v56 = vrot.slane %v5103_v39, 5 }
 0x149   : > { %v9942_v48 = vpop.f32.mrb[6].mxu0 }
 0x14a   : > { %v9945_v15 = vpop.f32.mrb[7].mxu0  ;;  %v4831_v49 = vsel %vm409_vm0, %v4830_v35, %v4822_v54  ;;  %v5321_v54 = vrot.slane %v9995_v7, %v9096_v3  ;;  %v10020_v35 = vld [vmem:[%s9104_s30 + $0x35] ss:$8 sm:$0x3] }
 0x14b   : > { %v4833_v53 = vsel %vm412_vm1, %v4832_v23, %v4831_v49  ;;  %v6250_v49 = vpack.c.bf16 %v6222_v33, %v6222_v33 }
 0x14c   : > { %8145 = vmatmul.mubr.msk.bf16.vlgmr.msra.gmra.mrb[32].mxu0 %vm425_vm4, %v9539_v38  ;;  %8159 = vmatmul.mubr.msk.bf16.vlgmr.msra.gmra.mrb[32].mxu1 %vm425_vm4, %v9876_v40  ;;  %v5047_v38 = vrot.slane %v8182_v25, %v9096_v3 }
 0x14d   : > { %4524 = vmatpush1.bf16.msra.mxu0 %v9869_v52  ;;  %4686 = vmatpush1.bf16.msra.mxu1 %v9811_v55  ;;  %v4812_v55 = vpack.c.bf16 %v4793_v16, %v4793_v16  ;;  %v5043_v52 = vrot.slane %v8182_v25, %v9099_v4 }
 0x14e   : > { %4400 = vmatprep.mubr.bf16.mxu0 %v9006_v2  ;;  %4654 = vmatprep.mubr.bf16.mxu1 %v9006_v2  ;;  %v5081_v63 = vpack.c.bf16 %v5047_v38, %v5047_v38  ;;  %v5337_v38 = vrot.slane %v9990_v21, %v9096_v3 }
 0x14f   : > { %v9963_v40 = vpop.f32.mrb[8].mxu0  ;;  %8172 = vmatprep.subr.msk.bf16.mxu0 %vm438_vm3, %v4843_v32  ;;  %8177 = vmatprep.subr.msk.bf16.mxu1 %vm438_vm3, %v4843_v32  ;;  %v5080_v9 = vpack.c.bf16 %v5043_v52, %v5043_v52  ;;  %v4828_v42 = vunpack.c.l.b16 %v4812_v55  ;;  %v1435_v32 = vunpack.c.l.s4 %v9007_v46  ;;  %v5112_v52 = vrot.slane %v5101_v59, 6 }
 0x150   : > { %v9968_v18 = vpop.f32.mrb[9].mxu0  ;;  %v5097_v50 = vunpack.c.l.b16 %v5081_v63  ;;  %v6230_v63 = vrot.slane %v10003_v30, %v9096_v3  ;;  %v5359_v59 = vpack.c.bf16 %v5337_v38, %v5337_v38 }
 0x151   : > { %v9971_v62 = vpop.f32.mrb[10].mxu0  ;;  %v5096_v25 = vunpack.c.l.b16 %v5080_v9  ;;  %v4834_v17 = vrot.slane %v4828_v42, 5  ;;  %v1436_v61 = vunpack.c.0.s8 %v1435_v32  ;;  %v10029_v9 = vpop.permute.xlu0 %1346  ;;  %v6214_v42 = vrot.slane %v10013_v34, %v9096_v3 }
 0x152   : > { %v9974_v27 = vpop.f32.mrb[11].mxu0  ;;  %v5111_v36 = vsel %vm409_vm0, %v5110_v60, %v5097_v50  ;;  %v6238_v60 = vrot.slane %v10020_v35, %v9096_v3  ;;  %v5355_v50 = vpack.c.bf16 %v5321_v54, %v5321_v54 }
 0x153   : > { %v5105_v5 = vsel %vm409_vm0, %v5104_v29, %v5096_v25  ;;  %v4835_v23 = vsel %vm415_vm2, %v4834_v17, %v4833_v53  ;;  %v10046_v32 = vsub.s32 %v1436_v61, %v9089_v1  ;;  %v6248_v33 = vpack.c.bf16 %v6214_v42, %v6214_v42 }
 0x154   : > { %8146 = vmatmul.mubr.msk.bf16.gmra.mrb[36].mxu0 %vm425_vm4, %v9556_v20  ;;  %8160 = vmatmul.mubr.msk.bf16.gmra.mrb[36].mxu1 %vm425_vm4, %v9896_v57  ;;  %v5086_v20 = vpack.c.bf16 %v5067_v37, %v5067_v37  ;;  %v5329_v57 = vrot.slane %v9977_v19, %v9096_v3  ;;  %v5345_v37 = vrot.slane %v9998_v14, %v9096_v3  ;;  %v6266_v53 = vunpack.c.l.b16 %v6250_v49 }
 0x155   : > { %4410 = vmatprep.mubr.bf16.mxu0 %v9006_v2  ;;  %4664 = vmatprep.mubr.bf16.mxu1 %v9006_v2  ;;  %v4842_v29 = vpack.c.b16 %v4835_v23, %v4835_v23 }
 0x156   : > { %v5102_v26 = vunpack.c.l.b16 %v5086_v20  ;;  %v5357_v41 = vpack.c.bf16 %v5329_v57, %v5329_v57  ;;  %v5113_v20 = vsel %vm412_vm1, %v5112_v52, %v5111_v36  ;;  %v5361_v46 = vpack.c.bf16 %v5345_v37, %v5345_v37  ;;  %v10051_v36 = vpop.permute.xlu0 %1351 }
 0x157   : > { %v10000_v16 = vpop.f32.mrb[12].mxu0  ;;  %v5115_v38 = vsel %vm415_vm2, %v5114_v56, %v5113_v20  ;;  %v5375_v52 = vunpack.c.l.b16 %v5359_v59  ;;  %v6264_v56 = vunpack.c.l.b16 %v6248_v33  ;;  %v6277_v59 = vrot.slane %v6266_v53, 7 }
 0x158   : > { %v10007_v11 = vpop.f32.mrb[13].mxu0  ;;  %v5108_v57 = vrot.slane %v5102_v26, 5  ;;  %v5373_v8 = vunpack.c.l.b16 %v5357_v41  ;;  %v6254_v26 = vpack.c.bf16 %v6238_v60, %v6238_v60 }
 0x159   : > { %v10015_v55 = vpop.f32.mrb[14].mxu0  ;;  %v5386_v20 = vrot.slane %v5375_v52, 6  ;;  %v6278_v52 = vsel %vm409_vm0, %v6277_v59, %v6264_v56 }
 0x15a   : > { %v10022_v44 = vpop.f32.mrb[15].mxu0  ;;  %v5384_v37 = vrot.slane %v5373_v8, 7 }
 0x15c   : > { %8147 = vmatmul.mubr.msk.bf16.gmra.mrb[40].mxu0 %vm425_vm4, %v9579_v28  ;;  %8161 = vmatmul.mubr.msk.bf16.gmra.mrb[40].mxu1 %vm425_vm4, %v9911_v12  ;;  %v5107_v28 = vsel %vm412_vm1, %v5106_v31, %v5105_v5  ;;  %v6252_v12 = vpack.c.bf16 %v6230_v63, %v6230_v63  ;;  %v5371_v31 = vunpack.c.l.b16 %v5355_v50 }
 0x15d   : > { %4420 = vmatprep.mubr.bf16.mxu0 %v9006_v2  ;;  %4674 = vmatprep.mubr.bf16.mxu1 %v9006_v2  ;;  %v10054_v1 = vsel %vm415_vm2, %v5108_v57, %v5107_v28 }
 0x15e   : > { %v6268_v42 = vunpack.c.l.b16 %v6252_v12  ;;  %v5385_v8 = vsel %vm409_vm0, %v5384_v37, %v5371_v31  ;;  %v5116_v12 = vpack.c.b16 %v10054_v1, %v10054_v1  ;;  %v10415_v1 = vrot.slane %v9977_v19, %v9099_v4 }
 0x15f   : > { %v1273_v25 = vpop.f32.mrb[0].mxu1 }
 0x160   : > { %v1328_v17 = vmax.f32 %v9917_v45, %v1273_v25  ;;  %v1275_v39 = vpop.f32.mrb[1].mxu1  ;;  %v6279_v25 = vrot.slane %v6268_v42, 6 }
 0x161   : > { %v1329_v54 = vmax.f32 %v9919_v51, %v1275_v39  ;;  %v1277_v41 = vpop.f32.mrb[2].mxu1  ;;  %v10063_v51 = vunpack.c.l.b16 %v5361_v46  ;;  %v10085_v46 = vpack.c.b16 %v5115_v38, %v5115_v38  ;;  %v10098_v38 = vsel %vm412_vm1, %v5386_v20, %v5385_v8 }
 0x162   : > { %v1384_v45 = vadd.f32 %v10029_v9, %v1328_v17  ;;  %v1330_v61 = vmax.f32 %v9921_v43, %v1277_v41  ;;  %v1279_v5 = vpop.f32.mrb[3].mxu1  ;;  %v10074_v43 = vld [vmem:[%s11753_s1 + $0x38] sm:$0xff]   ;;  %v10108_v59 = vsel %vm412_vm1, %v6279_v25, %v6278_v52 }
 0x163   : > { %v1385_v49 = vadd.f32 %v10029_v9, %v1329_v54  ;;  %v1331_v23 = vmax.f32 %v9923_v47, %v1279_v5  ;;  %v10078_v47 = vunpack.c.l.b16 %v6254_v26  ;;  %v10094_v26 = vpop.permute.xlu1 %1356  ;;  %v5388_v41 = vrot.slane %v10063_v51, 5 }
 0x164   : > { %v1400_v60 = vmax.f32 %v1384_v45, 0.0  ;;  %v1386_v0 = vadd.f32 %v10051_v36, %v1330_v61  ;;  %8148 = vmatmul.mubr.msk.bf16.gmra.mrb[44].mxu0 %vm425_vm4, %v9592_v13  ;;  %8162 = vmatmul.mubr.msk.bf16.gmra.mrb[44].mxu1 %vm425_vm4, %v10074_v43  ;;  %v4845_v13 = vsel %vm438_vm3, %v4842_v29, 0  ;;  %v5119_v51 = vsel %vm438_vm3, %v5116_v12, 0 }
 0x165   : > { %v1401_v57 = vmax.f32 %v1385_v49, 0.0  ;;  %v1387_v50 = vadd.f32 %v10051_v36, %v1331_v23  ;;  %4555 = vmatprep.mubr.bf16.mxu0 %v9006_v2  ;;  %4717 = vmatprep.mubr.bf16.mxu1 %v9006_v2  ;;  %v6281_v31 = vrot.slane %v10078_v47, 5  ;;  %v10405_v47 = vrot.slane %v9995_v7, %v9099_v4 }
 0x166   : > { %v1402_v28 = vmax.f32 %v1386_v0, 0.0  ;;  %v10419_v7 = vrot.slane %v9985_v58, %v9099_v4  ;;  %v10428_v58 = vld [vmem:[%s11753_s1 + $0x60] sm:$0xff]  }
 0x167   : > { %v1432_v33 = vcombine.low %v1400_v60, %v1401_v57  ;;  %v1433_v53 = vcombine.high %v1400_v60, %v1401_v57  ;;  %v1403_v17 = vmax.f32 %v1387_v50, 0.0  ;;  %v1283_v39 = vpop.f32.mrb[4].mxu1 }
 0x168   : > { %v1332_v29 = vmax.f32 %v9935_v6, %v1283_v39  ;;  %v1285_v54 = vpop.f32.mrb[5].mxu1 }
 0x169   : > { %v1440_v37 = vrot.slane %v1432_v33, %v10046_v32  ;;  %v1447_v45 = vrot.slane %v1433_v53, %v10046_v32  ;;  %v1482_v61 = vcombine.low %v1402_v28, %v1403_v17  ;;  %v1483_v5 = vcombine.high %v1402_v28, %v1403_v17  ;;  %v1287_v42 = vpop.f32.mrb[6].mxu1 }
 0x16a   : > { %v1388_v49 = vadd.f32 %v10094_v26, %v1332_v29  ;;  %v1333_v23 = vmax.f32 %v9937_v24, %v1285_v54  ;;  %v1334_v6 = vmax.f32 %v9942_v48, %v1287_v42  ;;  %v1289_v56 = vpop.f32.mrb[7].mxu1  ;;  %v10120_v48 = vld [vmem:[%s11753_s1] sm:$0xff]   ;;  %v10137_v54 = vpop.permute.xlu1 %1361 }
 0x16b   : > { %v1448_v60 = vcombine.high %v1440_v37, %v1440_v37  ;;  %v1449_v0 = vcombine.high %v1447_v45, %v1447_v45  ;;  %v1456_v20 = vrot.slane %v1440_v37, %v10046_v32  ;;  %v1463_v57 = vrot.slane %v1447_v45, %v10046_v32 }
 0x16c   : > { %v1490_v50 = vrot.slane %v1482_v61, %v10046_v32  ;;  %v1497_v8 = vrot.slane %v1483_v5, %v10046_v32  ;;  %v1404_v28 = vmax.f32 %v1388_v49, 0.0  ;;  %v1389_v24 = vadd.f32 %v10094_v26, %v1333_v23  ;;  %8154 = vmatmul.mubr.msk.bf16.vlgmr.msra.gmra.mrb[32].mxu0 %vm425_vm4, %v9699_v10  ;;  %8164 = vmatmul.mubr.msk.bf16.vlgmr.msra.gmra.mrb[32].mxu1 %vm425_vm4, %v10120_v48 }
 0x16d   : > { %v1470_v25 = vrot.slane %v1448_v60, %v10046_v32  ;;  %v1477_v33 = vrot.slane %v1449_v0, %v10046_v32  ;;  %v1478_v53 = vcombine.high %v1456_v20, %v1456_v20  ;;  %v1479_v17 = vcombine.high %v1463_v57, %v1463_v57  ;;  %1900 = vst.msk [vmem:[%s10127_s4] ss:$4 sm:$0x3] %vm10057_vm5, %v1456_v20 }
 0x16e   : > { %7930 = vst.msk [vmem:[%s10127_s4 + $0x20] ss:$4 sm:$0x3] %vm10057_vm5, %v1463_v57  ;;  %4851 = vmatpush1.bf16.msra.mxu0 %v4845_v13  ;;  %v1498_v10 = vcombine.high %v1490_v50, %v1490_v50  ;;  %v1499_v39 = vcombine.high %v1497_v8, %v1497_v8  ;;  %v1506_v52 = vrot.slane %v1490_v50, %v10046_v32  ;;  %v1405_v61 = vmax.f32 %v1389_v24, 0.0  ;;  %v10172_v50 = vpop.permute.xlu0 %1366 }
 0x16f   : > { %v1513_v29 = vrot.slane %v1497_v8, %v10046_v32  ;;  %4940 = vmatpush1.bf16.msra.mxu1 %v4845_v13  ;;  %v1480_v37 = vcombine.high %v1470_v25, %v1470_v25  ;;  %v1481_v45 = vcombine.high %v1477_v33, %v1477_v33  ;;  %7927 = vst.msk [vmem:[%s10127_s4 + $0x8] ss:$4 sm:$0x3] %vm10057_vm5, %v1470_v25  ;;  %7928 = vst.msk [vmem:[%s10127_s4 + $0x10] ss:$4 sm:$0x3] %vm10057_vm5, %v1478_v53 }
 0x170   : > { %7931 = vst.msk [vmem:[%s10127_s4 + $0x28] ss:$4 sm:$0x3] %vm10057_vm5, %v1477_v33  ;;  %7932 = vst.msk [vmem:[%s10127_s4 + $0x30] ss:$4 sm:$0x3] %vm10057_vm5, %v1479_v17  ;;  %v1335_v13 = vmax.f32 %v9945_v15, %v1289_v56  ;;  %4565 = vmatprep.mubr.bf16.mxu0 %v9006_v2  ;;  %4727 = vmatprep.mubr.bf16.mxu1 %v9006_v2  ;;  %v1520_v42 = vrot.slane %v1498_v10, %v10046_v32 }
 0x171   : > { %v1293_v5 = vpop.f32.mrb[8].mxu1  ;;  %v1527_v49 = vrot.slane %v1499_v39, %v10046_v32  ;;  %v1528_v23 = vcombine.high %v1506_v52, %v1506_v52  ;;  %v1529_v60 = vcombine.high %v1513_v29, %v1513_v29  ;;  %7934 = vst.msk [vmem:[%s10127_s4 + $0x40] ss:$4 sm:$0x3] %vm10057_vm5, %v1506_v52  ;;  %8186 = vmatprep.subr.msk.bf16.mxu0 %vm438_vm3, %v10085_v46 }
 0x172   : > { %7938 = vst.msk [vmem:[%s10127_s4 + $0x60] ss:$4 sm:$0x3] %vm10057_vm5, %v1513_v29  ;;  %v1295_v15 = vpop.f32.mrb[9].mxu1  ;;  %v1532_v56 = vcombine.low %v1404_v28, %v1405_v61  ;;  %v1533_v0 = vcombine.high %v1404_v28, %v1405_v61  ;;  %v1390_v20 = vadd.f32 %v10137_v54, %v1334_v6  ;;  %v1391_v57 = vadd.f32 %v10137_v54, %v1335_v13  ;;  %v10209_v13 = vld [vmem:[%s11753_s1 + $0x8] sm:$0xff]  }
 0x173   : > { %7929 = vst.msk [vmem:[%s10127_s4 + $0x18] ss:$4 sm:$0x3] %vm10057_vm5, %v1480_v37  ;;  %7933 = vst.msk [vmem:[%s10127_s4 + $0x38] ss:$4 sm:$0x3] %vm10057_vm5, %v1481_v45  ;;  %8191 = vmatprep.subr.msk.bf16.mxu1 %vm438_vm3, %v10085_v46  ;;  %v1530_v24 = vcombine.high %v1520_v42, %v1520_v42  ;;  %v1531_v25 = vcombine.high %v1527_v49, %v1527_v49  ;;  %v1336_v6 = vmax.f32 %v9963_v40, %v1293_v5 }
 0x174   : > { %v1297_v8 = vpop.f32.mrb[10].mxu1  ;;  %7935 = vst.msk [vmem:[%s10127_s4 + $0x48] ss:$4 sm:$0x3] %vm10057_vm5, %v1520_v42  ;;  %v1337_v28 = vmax.f32 %v9968_v18, %v1295_v15  ;;  %v1540_v46 = vrot.slane %v1532_v56, %v10046_v32  ;;  %v1547_v53 = vrot.slane %v1533_v0, %v10046_v32  ;;  %v1406_v17 = vmax.f32 %v1390_v20, 0.0  ;;  %8155 = vmatmul.mubr.msk.bf16.gmra.mrb[36].mxu0 %vm425_vm4, %v9756_v22  ;;  %v10213_v42 = vpop.permute.xlu1 %1371 }
 0x175   : > { %7936 = vst.msk [vmem:[%s10127_s4 + $0x50] ss:$4 sm:$0x3] %vm10057_vm5, %v1528_v23  ;;  %7939 = vst.msk [vmem:[%s10127_s4 + $0x68] ss:$4 sm:$0x3] %vm10057_vm5, %v1527_v49  ;;  %v1392_v39 = vadd.f32 %v10172_v50, %v1336_v6  ;;  %v1338_v40 = vmax.f32 %v9971_v62, %v1297_v8  ;;  %8165 = vmatmul.mubr.msk.bf16.gmra.mrb[36].mxu1 %vm425_vm4, %v10209_v13  ;;  %4575 = vmatprep.mubr.bf16.mxu0 %v9006_v2 }
 0x176   : > { %7940 = vst.msk [vmem:[%s10127_s4 + $0x70] ss:$4 sm:$0x3] %vm10057_vm5, %v1529_v60  ;;  %v1299_v33 = vpop.f32.mrb[11].mxu1  ;;  %v1407_v10 = vmax.f32 %v1391_v57, 0.0  ;;  %v1393_v52 = vadd.f32 %v10172_v50, %v1337_v28  ;;  %v1548_v29 = vcombine.high %v1540_v46, %v1540_v46  ;;  %v1549_v37 = vcombine.high %v1547_v53, %v1547_v53  ;;  %4737 = vmatprep.mubr.bf16.mxu1 %v9006_v2 }
 0x177   : > { %7937 = vst.msk [vmem:[%s10127_s4 + $0x58] ss:$4 sm:$0x3] %vm10057_vm5, %v1530_v24  ;;  %7941 = vst.msk [vmem:[%s10127_s4 + $0x78] ss:$4 sm:$0x3] %vm10057_vm5, %v1531_v25  ;;  %v1339_v18 = vmax.f32 %v9974_v27, %v1299_v33  ;;  %v1556_v45 = vrot.slane %v1540_v46, %v10046_v32  ;;  %v1563_v61 = vrot.slane %v1547_v53, %v10046_v32 }
 0x178   : > { %v1582_v62 = vcombine.low %v1406_v17, %v1407_v10  ;;  %v1583_v27 = vcombine.high %v1406_v17, %v1407_v10  ;;  %v1408_v5 = vmax.f32 %v1392_v39, 0.0  ;;  %v1409_v22 = vmax.f32 %v1393_v52, 0.0  ;;  %v10225_v56 = vpop.f32.mrb[12].mxu1 }
 0x179   : > { %v1570_v49 = vrot.slane %v1548_v29, %v10046_v32  ;;  %v1577_v23 = vrot.slane %v1549_v37, %v10046_v32  ;;  %v1578_v60 = vcombine.high %v1556_v45, %v1556_v45  ;;  %v1579_v15 = vcombine.high %v1563_v61, %v1563_v61  ;;  %7942 = vst.msk [vmem:[%s10127_s4 + $0x80] ss:$4 sm:$0x3] %vm10057_vm5, %v1556_v45  ;;  %v10229_v24 = vpop.f32.mrb[13].mxu1 }
 0x17a   : > { %7946 = vst.msk [vmem:[%s10127_s4 + $0xa0] ss:$4 sm:$0x3] %vm10057_vm5, %v1563_v61  ;;  %v1590_v0 = vrot.slane %v1582_v62, %v10046_v32  ;;  %v1597_v20 = vrot.slane %v1583_v27, %v10046_v32  ;;  %v1632_v57 = vcombine.low %v1408_v5, %v1409_v22  ;;  %v1633_v8 = vcombine.high %v1408_v5, %v1409_v22  ;;  %v10245_v46 = vpop.f32.mrb[14].mxu1  ;;  %v10270_v5 = vld [vmem:[%s11753_s1 + $0x50] sm:$0xff]  }
 0x17b   : > { %v1580_v25 = vcombine.high %v1570_v49, %v1570_v49  ;;  %v1581_v6 = vcombine.high %v1577_v23, %v1577_v23  ;;  %7943 = vst.msk [vmem:[%s10127_s4 + $0x88] ss:$4 sm:$0x3] %vm10057_vm5, %v1570_v49  ;;  %7944 = vst.msk [vmem:[%s10127_s4 + $0x90] ss:$4 sm:$0x3] %vm10057_vm5, %v1578_v60  ;;  %v1394_v28 = vadd.f32 %v10213_v42, %v1338_v40 }
 0x17c   : > { %7947 = vst.msk [vmem:[%s10127_s4 + $0xa8] ss:$4 sm:$0x3] %vm10057_vm5, %v1577_v23  ;;  %7948 = vst.msk [vmem:[%s10127_s4 + $0xb0] ss:$4 sm:$0x3] %vm10057_vm5, %v1579_v15  ;;  %v1395_v33 = vadd.f32 %v10213_v42, %v1339_v18  ;;  %v1598_v53 = vcombine.high %v1590_v0, %v1590_v0  ;;  %v1599_v17 = vcombine.high %v1597_v20, %v1597_v20  ;;  %8156 = vmatmul.mubr.msk.bf16.gmra.mrb[40].mxu0 %vm425_vm4, %v10270_v5 }
 0x17d   : > { %v1606_v10 = vrot.slane %v1590_v0, %v10046_v32  ;;  %v1613_v39 = vrot.slane %v1597_v20, %v10046_v32  ;;  %v10249_v52 = vpop.f32.mrb[15].mxu1  ;;  %7945 = vst.msk [vmem:[%s10127_s4 + $0x98] ss:$4 sm:$0x3] %vm10057_vm5, %v1580_v25  ;;  %v1640_v40 = vrot.slane %v1632_v57, %v10046_v32  ;;  %v1647_v18 = vrot.slane %v1633_v8, %v10046_v32  ;;  %v10279_v15 = vld [vmem:[%s11753_s1 + $0x10] sm:$0xff]  }
 0x17e   : > { %7949 = vst.msk [vmem:[%s10127_s4 + $0xb8] ss:$4 sm:$0x3] %vm10057_vm5, %v1581_v6  ;;  %v1410_v29 = vmax.f32 %v1394_v28, 0.0  ;;  %v1411_v37 = vmax.f32 %v1395_v33, 0.0  ;;  %v1620_v45 = vrot.slane %v1598_v53, %v10046_v32  ;;  %v1627_v61 = vrot.slane %v1599_v17, %v10046_v32  ;;  %8166 = vmatmul.mubr.msk.bf16.gmra.mrb[40].mxu1 %vm425_vm4, %v10279_v15  ;;  %4585 = vmatprep.mubr.bf16.mxu0 %v9006_v2 }
 0x17f   : > { %v1628_v62 = vcombine.high %v1606_v10, %v1606_v10  ;;  %v1629_v27 = vcombine.high %v1613_v39, %v1613_v39  ;;  %7950 = vst.msk [vmem:[%s10127_s4 + $0xc0] ss:$4 sm:$0x3] %vm10057_vm5, %v1606_v10  ;;  %7954 = vst.msk [vmem:[%s10127_s4 + $0xe0] ss:$4 sm:$0x3] %vm10057_vm5, %v1613_v39  ;;  %v1648_v22 = vcombine.high %v1640_v40, %v1640_v40  ;;  %4747 = vmatprep.mubr.bf16.mxu1 %v9006_v2 }
 0x180   : > { %v1649_v49 = vcombine.high %v1647_v18, %v1647_v18  ;;  %v1656_v23 = vrot.slane %v1640_v40, %v10046_v32  ;;  %v1663_v60 = vrot.slane %v1647_v18, %v10046_v32  ;;  %v1630_v0 = vcombine.high %v1620_v45, %v1620_v45  ;;  %7951 = vst.msk [vmem:[%s10127_s4 + $0xc8] ss:$4 sm:$0x3] %vm10057_vm5, %v1620_v45  ;;  %v10317_v40 = vpop.permute.xlu0 %1376  ;;  %v10319_v18 = vpop.permute.xlu1 %1381 }
 0x181   : > { %v1631_v20 = vcombine.high %v1627_v61, %v1627_v61  ;;  %7952 = vst.msk [vmem:[%s10127_s4 + $0xd0] ss:$4 sm:$0x3] %vm10057_vm5, %v1628_v62  ;;  %7955 = vst.msk [vmem:[%s10127_s4 + $0xe8] ss:$4 sm:$0x3] %vm10057_vm5, %v1627_v61  ;;  %v1682_v57 = vcombine.low %v1410_v29, %v1411_v37  ;;  %v1683_v8 = vcombine.high %v1410_v29, %v1411_v37 }
 0x182   : > { %7956 = vst.msk [vmem:[%s10127_s4 + $0xf0] ss:$4 sm:$0x3] %vm10057_vm5, %v1629_v27  ;;  %v1670_v25 = vrot.slane %v1648_v22, %v10046_v32  ;;  %v1677_v6 = vrot.slane %v1649_v49, %v10046_v32  ;;  %v1678_v28 = vcombine.high %v1656_v23, %v1656_v23  ;;  %v1679_v33 = vcombine.high %v1663_v60, %v1663_v60 }
 0x183   : > { %7958 = vst.msk [vmem:[%s10127_s4 + $0x100] ss:$4 sm:$0x3] %vm10057_vm5, %v1656_v23  ;;  %7962 = vst.msk [vmem:[%s10127_s4 + $0x120] ss:$4 sm:$0x3] %vm10057_vm5, %v1663_v60  ;;  %v1690_v53 = vrot.slane %v1682_v57, %v10046_v32  ;;  %v1697_v17 = vrot.slane %v1683_v8, %v10046_v32  ;;  %v1340_v10 = vmax.f32 %v10000_v16, %v10225_v56 }
 0x184   : > { %7953 = vst.msk [vmem:[%s10127_s4 + $0xd8] ss:$4 sm:$0x3] %vm10057_vm5, %v1630_v0  ;;  %7957 = vst.msk [vmem:[%s10127_s4 + $0xf8] ss:$4 sm:$0x3] %vm10057_vm5, %v1631_v20  ;;  %v1341_v39 = vmax.f32 %v10007_v11, %v10229_v24  ;;  %v1680_v29 = vcombine.high %v1670_v25, %v1670_v25  ;;  %v1681_v37 = vcombine.high %v1677_v6, %v1677_v6 }
 0x185   : > { %7959 = vst.msk [vmem:[%s10127_s4 + $0x108] ss:$4 sm:$0x3] %vm10057_vm5, %v1670_v25  ;;  %7960 = vst.msk [vmem:[%s10127_s4 + $0x110] ss:$4 sm:$0x3] %vm10057_vm5, %v1678_v28  ;;  %v1342_v16 = vmax.f32 %v10015_v55, %v10245_v46  ;;  %v1343_v11 = vmax.f32 %v10022_v44, %v10249_v52  ;;  %v1698_v56 = vcombine.high %v1690_v53, %v1690_v53 }
 0x186   : > { %7963 = vst.msk [vmem:[%s10127_s4 + $0x128] ss:$4 sm:$0x3] %vm10057_vm5, %v1677_v6  ;;  %7964 = vst.msk [vmem:[%s10127_s4 + $0x130] ss:$4 sm:$0x3] %vm10057_vm5, %v1679_v33  ;;  %v1699_v24 = vcombine.high %v1697_v17, %v1697_v17  ;;  %v1706_v45 = vrot.slane %v1690_v53, %v10046_v32  ;;  %v1713_v61 = vrot.slane %v1697_v17, %v10046_v32 }
 0x187   : > { %7961 = vst.msk [vmem:[%s10127_s4 + $0x118] ss:$4 sm:$0x3] %vm10057_vm5, %v1680_v29  ;;  %7965 = vst.msk [vmem:[%s10127_s4 + $0x138] ss:$4 sm:$0x3] %vm10057_vm5, %v1681_v37  ;;  %v1396_v62 = vadd.f32 %v10317_v40, %v1340_v10  ;;  %v1397_v55 = vadd.f32 %v10317_v40, %v1341_v39  ;;  %v1398_v46 = vadd.f32 %v10319_v18, %v1342_v16 }
 0x188   : > { %v1399_v44 = vadd.f32 %v10319_v18, %v1343_v11  ;;  %v1720_v52 = vrot.slane %v1698_v56, %v10046_v32  ;;  %v1727_v27 = vrot.slane %v1699_v24, %v10046_v32  ;;  %v1728_v22 = vcombine.high %v1706_v45, %v1706_v45  ;;  %7966 = vst.msk [vmem:[%s10127_s4 + $0x140] ss:$4 sm:$0x3] %vm10057_vm5, %v1706_v45  ;;  %v10360_v23 = vld [vmem:[%s11753_s1 + $0x58] sm:$0xff]  }
 0x189   : > { %v1729_v49 = vcombine.high %v1713_v61, %v1713_v61  ;;  %7970 = vst.msk [vmem:[%s10127_s4 + $0x160] ss:$4 sm:$0x3] %vm10057_vm5, %v1713_v61  ;;  %8157 = vmatmul.mubr.msk.bf16.gmra.mrb[44].mxu0 %vm425_vm4, %v10360_v23  ;;  %v1412_v60 = vmax.f32 %v1396_v62, 0.0  ;;  %v1413_v0 = vmax.f32 %v1397_v55, 0.0  ;;  %v1414_v20 = vmax.f32 %v1398_v46, 0.0 }
 0x18a   : > { %v1415_v57 = vmax.f32 %v1399_v44, 0.0  ;;  %v10367_v8 = vld [vmem:[%s11753_s1 + $0x18] sm:$0xff]   ;;  %4882 = vmatprep.mubr.bf16.mxu0 %v9006_v2  ;;  %v1730_v25 = vcombine.high %v1720_v52, %v1720_v52  ;;  %v1731_v6 = vcombine.high %v1727_v27, %v1727_v27  ;;  %7967 = vst.msk [vmem:[%s10127_s4 + $0x148] ss:$4 sm:$0x3] %vm10057_vm5, %v1720_v52  ;;  %v5389_v28 = vsel %vm415_vm2, %v5388_v41, %v10098_v38  ;;  %v10443_v52 = vld [vmem:[%s11753_s1 + $0x40] sm:$0xff]  }
 0x18b   : > { %8167 = vmatmul.mubr.msk.bf16.gmra.mrb[44].mxu1 %vm425_vm4, %v10367_v8  ;;  %7968 = vst.msk [vmem:[%s10127_s4 + $0x150] ss:$4 sm:$0x3] %vm10057_vm5, %v1728_v22  ;;  %7971 = vst.msk [vmem:[%s10127_s4 + $0x168] ss:$4 sm:$0x3] %vm10057_vm5, %v1727_v27  ;;  %v6282_v33 = vsel %vm415_vm2, %v6281_v31, %v10108_v59  ;;  %v1732_v53 = vcombine.low %v1412_v60, %v1413_v0  ;;  %v1733_v17 = vcombine.high %v1412_v60, %v1413_v0 }
 0x18c   : > { %7972 = vst.msk [vmem:[%s10127_s4 + $0x170] ss:$4 sm:$0x3] %vm10057_vm5, %v1729_v49  ;;  %4971 = vmatprep.mubr.bf16.mxu1 %v9006_v2  ;;  %v1782_v10 = vcombine.low %v1414_v20, %v1415_v57  ;;  %v1783_v39 = vcombine.high %v1414_v20, %v1415_v57  ;;  %7969 = vst.msk [vmem:[%s10127_s4 + $0x158] ss:$4 sm:$0x3] %vm10057_vm5, %v1730_v25  ;;  %v5391_v29 = vpack.c.b16 %v5389_v28, %v5389_v28 }
 0x18d   : > { %7973 = vst.msk [vmem:[%s10127_s4 + $0x178] ss:$4 sm:$0x3] %vm10057_vm5, %v1731_v6  ;;  %v1740_v38 = vrot.slane %v1732_v53, %v10046_v32  ;;  %v1747_v41 = vrot.slane %v1733_v17, %v10046_v32  ;;  %v10411_v37 = vpack.c.b16 %v6282_v33, %v6282_v33  ;;  %v5333_v57 = vrot.slane %v9990_v21, %v9099_v4  ;;  %v10471_v25 = vld [vmem:[%s9104_s30 + $0x14] ss:$8 sm:$0x3] }
 0x18e   : > { %v1790_v31 = vrot.slane %v1782_v10, %v10046_v32  ;;  %v1797_v59 = vrot.slane %v1783_v39, %v10046_v32  ;;  %v6226_v21 = vrot.slane %v10003_v30, %v9099_v4  ;;  %v10490_v33 = vld [vmem:[%s9104_s30 + $0x16] ss:$8 sm:$0x3]  ;;  %v6210_v53 = vrot.slane %v10013_v34, %v9099_v4  ;;  %v10513_v10 = vld [vmem:[%s9104_s30 + $0x24] ss:$8 sm:$0x3] }
 0x18f   : > { %v1748_v12 = vcombine.high %v1740_v38, %v1740_v38  ;;  %v1749_v16 = vcombine.high %v1747_v41, %v1747_v41  ;;  %v1756_v11 = vrot.slane %v1740_v38, %v10046_v32  ;;  %v1763_v56 = vrot.slane %v1747_v41, %v10046_v32  ;;  %v10522_v38 = vld [vmem:[%s9104_s30 + $0x4] ss:$8 sm:$0x3]  ;;  %v10525_v41 = vld [vmem:[%s9104_s30 + $0x26] ss:$8 sm:$0x3] }
 0x190   : > { %v1798_v24 = vcombine.high %v1790_v31, %v1790_v31  ;;  %v1799_v45 = vcombine.high %v1797_v59, %v1797_v59  ;;  %v1806_v61 = vrot.slane %v1790_v31, %v10046_v32  ;;  %v1813_v19 = vrot.slane %v1797_v59, %v10046_v32  ;;  %v10532_v59 = vld [vmem:[%s11753_s1 + $0x68] sm:$0xff]  }
 0x191   : > { %8173 = vmatmul.mubr.msk.bf16.vlgmr.msra.gmra.mrb[32].mxu0 %vm425_vm4, %v10428_v58  ;;  %v1770_v62 = vrot.slane %v1748_v12, %v10046_v32  ;;  %v1777_v55 = vrot.slane %v1749_v16, %v10046_v32  ;;  %v1778_v46 = vcombine.high %v1756_v11, %v1756_v11  ;;  %v1779_v44 = vcombine.high %v1763_v56, %v1763_v56 }
 0x192   : > { %7974 = vst.msk [vmem:[%s10127_s4 + $0x180] ss:$4 sm:$0x3] %vm10057_vm5, %v1756_v11  ;;  %7978 = vst.msk [vmem:[%s10127_s4 + $0x1a0] ss:$4 sm:$0x3] %vm10057_vm5, %v1763_v56  ;;  %v1820_v27 = vrot.slane %v1798_v24, %v10046_v32  ;;  %v1827_v22 = vrot.slane %v1799_v45, %v10046_v32  ;;  %v1828_v49 = vcombine.high %v1806_v61, %v1806_v61  ;;  %5125 = vmatpush1.bf16.msra.mxu0 %v5119_v51 }
 0x193   : > { %8178 = vmatmul.mubr.msk.bf16.vlgmr.msra.gmra.mrb[32].mxu1 %vm425_vm4, %v10443_v52  ;;  %v1829_v60 = vcombine.high %v1813_v19, %v1813_v19  ;;  %7982 = vst.msk [vmem:[%s10127_s4 + $0x1c0] ss:$4 sm:$0x3] %vm10057_vm5, %v1806_v61  ;;  %7986 = vst.msk [vmem:[%s10127_s4 + $0x1e0] ss:$4 sm:$0x3] %vm10057_vm5, %v1813_v19  ;;  %v1780_v0 = vcombine.high %v1770_v62, %v1770_v62  ;;  %v1781_v20 = vcombine.high %v1777_v55, %v1777_v55 }
 0x194   : > { %7975 = vst.msk [vmem:[%s10127_s4 + $0x188] ss:$4 sm:$0x3] %vm10057_vm5, %v1770_v62  ;;  %7976 = vst.msk [vmem:[%s10127_s4 + $0x190] ss:$4 sm:$0x3] %vm10057_vm5, %v1778_v46  ;;  %5214 = vmatpush1.bf16.msra.mxu1 %v5119_v51  ;;  %4892 = vmatprep.mubr.bf16.mxu0 %v9006_v2  ;;  %v1830_v6 = vcombine.high %v1820_v27, %v1820_v27  ;;  %v1831_v28 = vcombine.high %v1827_v22, %v1827_v22 }
 0x195   : > { %7979 = vst.msk [vmem:[%s10127_s4 + $0x1a8] ss:$4 sm:$0x3] %vm10057_vm5, %v1777_v55  ;;  %7980 = vst.msk [vmem:[%s10127_s4 + $0x1b0] ss:$4 sm:$0x3] %vm10057_vm5, %v1779_v44  ;;  %4981 = vmatprep.mubr.bf16.mxu1 %v9006_v2  ;;  %8200 = vmatprep.subr.msk.bf16.mxu1 %vm438_vm3, %v5391_v29  ;;  %v6249_v17 = vpack.c.bf16 %v10419_v7, %v10419_v7  ;;  %v5356_v30 = vpack.c.bf16 %v10415_v1, %v10415_v1 }
 0x196   : > { %7983 = vst.msk [vmem:[%s10127_s4 + $0x1c8] ss:$4 sm:$0x3] %vm10057_vm5, %v1820_v27  ;;  %7984 = vst.msk [vmem:[%s10127_s4 + $0x1d0] ss:$4 sm:$0x3] %vm10057_vm5, %v1828_v49  ;;  %8277 = vmatprep.subr.msk.bf16.mxu0 %vm438_vm3, %v10411_v37  ;;  %v6166_v39 = vrot.slane %v10471_v25, %v9096_v3  ;;  %v5341_v34 = vrot.slane %v9998_v14, %v9099_v4  ;;  %v6234_v51 = vrot.slane %v10020_v35, %v9099_v4 }
 0x197   : > { %7987 = vst.msk [vmem:[%s10127_s4 + $0x1e8] ss:$4 sm:$0x3] %vm10057_vm5, %v1827_v22  ;;  %7988 = vst.msk [vmem:[%s10127_s4 + $0x1f0] ss:$4 sm:$0x3] %vm10057_vm5, %v1829_v60  ;;  %v6496_v31 = vrot.slane %v10490_v33, %v9096_v3  ;;  %v5354_v14 = vpack.c.bf16 %v10405_v47, %v10405_v47  ;;  %v5358_v35 = vpack.c.bf16 %v5333_v57, %v5333_v57  ;;  %v6265_v16 = vunpack.c.l.b16 %v6249_v17 }
 0x198   : > { %7977 = vst.msk [vmem:[%s10127_s4 + $0x198] ss:$4 sm:$0x3] %vm10057_vm5, %v1780_v0  ;;  %7981 = vst.msk [vmem:[%s10127_s4 + $0x1b8] ss:$4 sm:$0x3] %vm10057_vm5, %v1781_v20  ;;  %v6251_v29 = vpack.c.bf16 %v6226_v21, %v6226_v21  ;;  %v6247_v12 = vpack.c.bf16 %v6210_v53, %v6210_v53  ;;  %v6174_v47 = vrot.slane %v10513_v10, %v9096_v3  ;;  %v5372_v56 = vunpack.c.l.b16 %v5356_v30 }
 0x199   : > { %7985 = vst.msk [vmem:[%s10127_s4 + $0x1d8] ss:$4 sm:$0x3] %vm10057_vm5, %v1830_v6  ;;  %7989 = vst.msk [vmem:[%s10127_s4 + $0x1f8] ss:$4 sm:$0x3] %vm10057_vm5, %v1831_v28  ;;  %8174 = vmatmul.mubr.msk.bf16.gmra.mrb[36].mxu0 %vm425_vm4, %v10532_v59  ;;  %v6158_v24 = vrot.slane %v10522_v38, %v9096_v3  ;;  %v6194_v45 = vpack.c.bf16 %v6166_v39, %v6166_v39  ;;  %v6504_v19 = vrot.slane %v10525_v41, %v9096_v3 }
 0x19a   : > { %v10539_v1 = vld [vmem:[%s9104_s30 + $0x6] ss:$8 sm:$0x3]  ;;  %4902 = vmatprep.mubr.bf16.mxu0 %v9006_v2  ;;  %v10550_v11 = vld [vmem:[%s9104_s30 + $0x34] ss:$8 sm:$0x3]  ;;  %v5360_v62 = vpack.c.bf16 %v5341_v34, %v5341_v34  ;;  %v6253_v55 = vpack.c.bf16 %v6234_v51, %v6234_v51  ;;  %v6524_v44 = vpack.c.bf16 %v6496_v31, %v6496_v31  ;;  %v5370_v27 = vunpack.c.l.b16 %v5354_v14 }
 0x19b   : > { %v10544_v7 = vld [vmem:[%s11753_s1 + $0x48] sm:$0xff]   ;;  %v10558_v61 = vld [vmem:[%s9104_s30 + $0x36] ss:$8 sm:$0x3]  ;;  %v6488_v46 = vrot.slane %v10539_v1, %v9096_v3  ;;  %v5374_v22 = vunpack.c.l.b16 %v5358_v35  ;;  %v6267_v49 = vunpack.c.l.b16 %v6251_v29  ;;  %v6182_v60 = vrot.slane %v10550_v11, %v9096_v3 }
 0x19c   : > { %8179 = vmatmul.mubr.msk.bf16.gmra.mrb[36].mxu1 %vm425_vm4, %v10544_v7  ;;  %v6263_v0 = vunpack.c.l.b16 %v6247_v12  ;;  %v6271_v20 = vrot.slane %v6265_v16, 7  ;;  %v6196_v57 = vpack.c.bf16 %v6174_v47, %v6174_v47  ;;  %v6512_v6 = vrot.slane %v10558_v61, %v9096_v3  ;;  %v10571_v51 = vld [vmem:[%s11753_s1 + $0x70] sm:$0xff]  }
 0x19d   : > { %4991 = vmatprep.mubr.bf16.mxu1 %v9006_v2  ;;  %v5378_v28 = vrot.slane %v5372_v56, 7  ;;  %v6192_v21 = vpack.c.bf16 %v6158_v24, %v6158_v24  ;;  %v6375_v53 = vunpack.c.l.b16 %v6194_v45  ;;  %v6526_v17 = vpack.c.bf16 %v6504_v19, %v6504_v19 }
 0x19e   : > { %v6269_v30 = vunpack.c.l.b16 %v6253_v55  ;;  %v6522_v39 = vpack.c.bf16 %v6488_v46, %v6488_v46  ;;  %v6540_v34 = vunpack.c.l.b16 %v6524_v44  ;;  %v5376_v31 = vunpack.c.l.b16 %v5360_v62 }
 0x19f   : > { %v6273_v14 = vrot.slane %v6267_v49, 6  ;;  %v6198_v35 = vpack.c.bf16 %v6182_v60, %v6182_v60  ;;  %v5380_v29 = vrot.slane %v5374_v22, 6  ;;  %v6272_v12 = vsel %vm409_vm0, %v6271_v20, %v6263_v0 }
 0x1a0   : > { %v6377_v16 = vunpack.c.l.b16 %v6196_v57  ;;  %v6528_v47 = vpack.c.bf16 %v6512_v6, %v6512_v6  ;;  %v5379_v56 = vsel %vm409_vm0, %v5378_v28, %v5370_v27  ;;  %v6373_v24 = vunpack.c.l.b16 %v6192_v21  ;;  %v10589_v28 = vld [vmem:[%s11753_s1 + $0x78] sm:$0xff]  }
 0x1a1   : > { %8175 = vmatmul.mubr.msk.bf16.gmra.mrb[40].mxu0 %vm425_vm4, %v10571_v51  ;;  %v6386_v45 = vrot.slane %v6375_v53, 7  ;;  %v6542_v19 = vunpack.c.l.b16 %v6526_v17  ;;  %v6275_v62 = vrot.slane %v6269_v30, 5  ;;  %v6538_v55 = vunpack.c.l.b16 %v6522_v39 }
 0x1a2   : > { %4912 = vmatprep.mubr.bf16.mxu0 %v9006_v2  ;;  %v6551_v46 = vrot.slane %v6540_v34, 7  ;;  %v5382_v44 = vrot.slane %v5376_v31, 5  ;;  %v6379_v49 = vunpack.c.l.b16 %v6198_v35  ;;  %v5381_v22 = vsel %vm412_vm1, %v5380_v29, %v5379_v56 }
 0x1a3   : > { %v6388_v60 = vrot.slane %v6377_v16, 6  ;;  %v6544_v0 = vunpack.c.l.b16 %v6528_v47  ;;  %v6387_v20 = vsel %vm409_vm0, %v6386_v45, %v6373_v24  ;;  %v6553_v57 = vrot.slane %v6542_v19, 6  ;;  %v10609_v16 = vld [vmem:[%s11753_s1 + $0x80] sm:$0xff]  }
 0x1a4   : > { %8180 = vmatmul.mubr.msk.bf16.gmra.mrb[40].mxu1 %vm425_vm4, %v10270_v5  ;;  %v6274_v5 = vsel %vm412_vm1, %v6273_v14, %v6272_v12  ;;  %v6552_v27 = vsel %vm409_vm0, %v6551_v46, %v6538_v55  ;;  %v5383_v21 = vsel %vm415_vm2, %v5382_v44, %v5381_v22  ;;  %v6390_v53 = vrot.slane %v6379_v49, 5  ;;  %v8911_v46 = vld [vmem:[%s11753_s1 + $0x88] sm:$0xff]  }
 0x1a5   : > { %5001 = vmatprep.mubr.bf16.mxu1 %v9006_v2  ;;  %v6276_v6 = vsel %vm415_vm2, %v6275_v62, %v6274_v5  ;;  %v6389_v17 = vsel %vm412_vm1, %v6388_v60, %v6387_v20  ;;  %v6555_v30 = vrot.slane %v6544_v0, 5  ;;  %v6554_v34 = vsel %vm412_vm1, %v6553_v57, %v6552_v27 }
 0x1a6   : > { %v6283_v39 = vpack.c.b16 %v6276_v6, %v6276_v6  ;;  %v5390_v31 = vpack.c.b16 %v5383_v21, %v5383_v21  ;;  %v6391_v14 = vsel %vm415_vm2, %v6390_v53, %v6389_v17  ;;  %v6162_v56 = vrot.slane %v10471_v25, %v9099_v4  ;;  %v8912_v21 = vld [vmem:[%s11753_s1 + $0x90] sm:$0xff]  }
 0x1a7   : > { %v6556_v35 = vsel %vm415_vm2, %v6555_v30, %v6554_v34  ;;  %v6393_v12 = vpack.c.b16 %v6391_v14, %v6391_v14  ;;  %v6492_v24 = vrot.slane %v10490_v33, %v9099_v4  ;;  %v6154_v45 = vrot.slane %v10522_v38, %v9099_v4 }
 0x1a8   : > { %v10603_v29 = vsel %vm438_vm3, %v6283_v39, 0  ;;  %v10613_v47 = vpack.c.b16 %v6556_v35, %v6556_v35  ;;  %v6193_v25 = vpack.c.bf16 %v6162_v56, %v6162_v56  ;;  %v6500_v19 = vrot.slane %v10525_v41, %v9099_v4  ;;  %v8913_v56 = vld [vmem:[%s11753_s1 + $0x98] sm:$0xff]  }
 0x1a9   : > { %8176 = vmatmul.mubr.msk.bf16.gmra.mrb[44].mxu0 %vm425_vm4, %v10589_v28  ;;  %v6484_v33 = vrot.slane %v10539_v1, %v9099_v4  ;;  %v6523_v62 = vpack.c.bf16 %v6492_v24, %v6492_v24  ;;  %v6178_v55 = vrot.slane %v10550_v11, %v9099_v4  ;;  %v6508_v38 = vrot.slane %v10558_v61, %v9099_v4 }
 0x1aa   : > { %5156 = vmatprep.mubr.bf16.mxu0 %v9006_v2  ;;  %v6191_v41 = vpack.c.bf16 %v6154_v45, %v6154_v45  ;;  %v6374_v1 = vunpack.c.l.b16 %v6193_v25  ;;  %v6525_v44 = vpack.c.bf16 %v6500_v19, %v6500_v19 }
 0x1ab   : > { %v6521_v11 = vpack.c.bf16 %v6484_v33, %v6484_v33  ;;  %v6539_v5 = vunpack.c.l.b16 %v6523_v62  ;;  %v6197_v49 = vpack.c.bf16 %v6178_v55, %v6178_v55  ;;  %v6527_v60 = vpack.c.bf16 %v6508_v38, %v6508_v38  ;;  %v8914_v33 = vld [vmem:[%s11753_s1 + $0x20] sm:$0xff]   ;;  %v8307_v62 = vld [vmem:[%s9104_s30 + $0x17] ss:$8 sm:$0x3] }
 0x1ac   : > { %8181 = vmatmul.mubr.msk.bf16.gmra.mrb[44].mxu1 %vm425_vm4, %v10360_v23  ;;  %v5393_v23 = vsel %vm438_vm3, %v5390_v31, 0  ;;  %v6372_v0 = vunpack.c.l.b16 %v6191_v41  ;;  %v6380_v20 = vrot.slane %v6374_v1, 7  ;;  %v6541_v57 = vunpack.c.l.b16 %v6525_v44  ;;  %v8308_v55 = vld [vmem:[%s9104_s30 + $0x27] ss:$8 sm:$0x3] }
 0x1ad   : > { %5245 = vmatprep.mubr.bf16.mxu1 %v9006_v2  ;;  %v6537_v6 = vunpack.c.l.b16 %v6521_v11  ;;  %v6545_v61 = vrot.slane %v6539_v5, 7  ;;  %v6378_v27 = vunpack.c.l.b16 %v6197_v49  ;;  %v6543_v17 = vunpack.c.l.b16 %v6527_v60  ;;  %v8306_v38 = vld [vmem:[%s9104_s30 + $0x7] ss:$8 sm:$0x3] }
 0x1ae   : > { %v6381_v30 = vsel %vm409_vm0, %v6380_v20, %v6372_v0  ;;  %v6547_v39 = vrot.slane %v6541_v57, 6  ;;  %v8309_v41 = vld [vmem:[%s9104_s30 + $0x37] ss:$8 sm:$0x3] }
 0x1af   : > { %v6546_v34 = vsel %vm409_vm0, %v6545_v61, %v6537_v6  ;;  %v6384_v31 = vrot.slane %v6378_v27, 5  ;;  %v6549_v35 = vrot.slane %v6543_v17, 5  ;;  %v6839_v44 = vrot.slane %v8309_v41, %v9096_v3 }
 0x1b1   : > { %8187 = vmatmul.mubr.msk.bf16.vlgmr.msra.gmra.mrb[32].mxu0 %vm425_vm4, %v10609_v16 }
 0x1b2   : > { %6292 = vmatpush1.bf16.msra.mxu0 %v10603_v29  ;;  %5166 = vmatprep.mubr.bf16.mxu0 %v9006_v2 }
 0x1b3   : > { %8282 = vmatprep.subr.msk.bf16.mxu0 %vm438_vm3, %v6393_v12 }
 0x1b4   : > { %8192 = vmatmul.mubr.msk.bf16.vlgmr.msra.gmra.mrb[32].mxu1 %vm425_vm4, %v10428_v58  ;;  %v6170_v58 = vrot.slane %v10513_v10, %v9099_v4 }
 0x1b5   : > { %5399 = vmatpush1.bf16.msra.mxu1 %v5393_v23  ;;  %5255 = vmatprep.mubr.bf16.mxu1 %v9006_v2  ;;  %v6548_v23 = vsel %vm412_vm1, %v6547_v39, %v6546_v34 }
 0x1b6   : > { %8296 = vmatprep.subr.msk.bf16.mxu1 %vm438_vm3, %v10613_v47  ;;  %v6195_v10 = vpack.c.bf16 %v6170_v58, %v6170_v58  ;;  %v6550_v24 = vsel %vm415_vm2, %v6549_v35, %v6548_v23  ;;  %v6819_v23 = vrot.slane %v8307_v62, %v9099_v4 }
 0x1b7   : > { %v6557_v45 = vpack.c.b16 %v6550_v24, %v6550_v24 }
 0x1b8   : > { %v6376_v22 = vunpack.c.l.b16 %v6195_v10  ;;  %v6823_v10 = vrot.slane %v8307_v62, %v9096_v3 }
 0x1b9   : > { %8188 = vmatmul.mubr.msk.bf16.gmra.mrb[36].mxu0 %vm425_vm4, %v8911_v46  ;;  %v6560_v19 = vsel %vm438_vm3, %v6557_v45, 0  ;;  %v6850_v45 = vpack.c.bf16 %v6819_v23, %v6819_v23 }
 0x1ba   : > { %5176 = vmatprep.mubr.bf16.mxu0 %v9006_v2  ;;  %v6382_v53 = vrot.slane %v6376_v22, 6  ;;  %v6851_v1 = vpack.c.bf16 %v6823_v10, %v6823_v10  ;;  %v10701_v22 = vld [vmem:[%s11753_s1 + $0x30] sm:$0xff]  }
 0x1bb   : > { %v6866_v62 = vunpack.c.l.b16 %v6850_v45 }
 0x1bc   : > { %8193 = vmatmul.mubr.msk.bf16.gmra.mrb[36].mxu1 %vm425_vm4, %v10532_v59  ;;  %v6383_v14 = vsel %vm412_vm1, %v6382_v53, %v6381_v30  ;;  %v6867_v49 = vunpack.c.l.b16 %v6851_v1 }
 0x1bd   : > { %5265 = vmatprep.mubr.bf16.mxu1 %v9006_v2  ;;  %v6385_v12 = vsel %vm415_vm2, %v6384_v31, %v6383_v14 }
 0x1be   : > { %v6392_v58 = vpack.c.b16 %v6385_v12, %v6385_v12  ;;  %v6878_v0 = vrot.slane %v6867_v49, 7 }
 0x1c0   : > { %v6395_v25 = vsel %vm438_vm3, %v6392_v58, 0  ;;  %v6811_v58 = vrot.slane %v8306_v38, %v9099_v4 }
 0x1c1   : > { %8189 = vmatmul.mubr.msk.bf16.gmra.mrb[40].mxu0 %vm425_vm4, %v8912_v21 }
 0x1c2   : > { %5186 = vmatprep.mubr.bf16.mxu0 %v9006_v2 }
 0x1c4   : > { %8194 = vmatmul.mubr.msk.bf16.gmra.mrb[40].mxu1 %vm425_vm4, %v10571_v51 }
 0x1c5   : > { %5275 = vmatprep.mubr.bf16.mxu1 %v9006_v2 }
 0x1c9   : > { %8190 = vmatmul.mubr.msk.bf16.gmra.mrb[44].mxu0 %vm425_vm4, %v8913_v56 }
 0x1ca   : > { %6323 = vmatprep.mubr.bf16.mxu0 %v9006_v2 }
 0x1cc   : > { %8195 = vmatmul.mubr.msk.bf16.gmra.mrb[44].mxu1 %vm425_vm4, %v10589_v28 }
 0x1cd   : > { %5430 = vmatprep.mubr.bf16.mxu1 %v9006_v2 }
 0x1d1   : > { %8278 = vmatmul.mubr.msk.bf16.vlgmr.msra.gmra.mrb[48].mxu0 %vm425_vm4, %v8914_v33 }
 0x1d2   : > { %6401 = vmatpush1.bf16.msra.mxu0 %v6395_v25  ;;  %6333 = vmatprep.mubr.bf16.mxu0 %v9006_v2  ;;  %v6835_v25 = vrot.slane %v8309_v41, %v9099_v4  ;;  %v6872_v41 = vrot.slane %v6866_v62, 7 }
 0x1d3   : > { %8291 = vmatprep.subr.msk.bf16.mxu0 %vm438_vm3, %v10613_v47  ;;  %v6831_v47 = vrot.slane %v8308_v55, %v9096_v3 }
 0x1d4   : > { %8201 = vmatmul.mubr.msk.bf16.vlgmr.msra.gmra.mrb[32].mxu1 %vm425_vm4, %v10609_v16  ;;  %v8915_v16 = vld [vmem:[%s11753_s1 + $0x28] sm:$0xff]   ;;  %v6854_v10 = vpack.c.bf16 %v6835_v25, %v6835_v25 }
 0x1d5   : > { %6655 = vmatpush1.bf16.msra.mxu1 %v6560_v19  ;;  %5440 = vmatprep.mubr.bf16.mxu1 %v9006_v2  ;;  %v6853_v11 = vpack.c.bf16 %v6831_v47, %v6831_v47 }
 0x1d6   : > { %8301 = vmatprep.subr.msk.bf16.mxu1 %vm438_vm3, %v10411_v37  ;;  %v6815_v37 = vrot.slane %v8306_v38, %v9096_v3  ;;  %v6870_v1 = vunpack.c.l.b16 %v6854_v10 }
 0x1d7   : > { %v6869_v60 = vunpack.c.l.b16 %v6853_v11 }
 0x1d8   : > { %v6849_v5 = vpack.c.bf16 %v6815_v37, %v6815_v37 }
 0x1d9   : > { %8279 = vmatmul.mubr.msk.bf16.gmra.mrb[52].mxu0 %vm425_vm4, %v8915_v16  ;;  %v6880_v27 = vrot.slane %v6869_v60, 6 }
 0x1da   : > { %6343 = vmatprep.mubr.bf16.mxu0 %v9006_v2  ;;  %v6865_v3 = vunpack.c.l.b16 %v6849_v5  ;;  %v6876_v5 = vrot.slane %v6870_v1, 5 }
 0x1dc   : > { %8202 = vmatmul.mubr.msk.bf16.gmra.mrb[36].mxu1 %vm425_vm4, %v8911_v46  ;;  %v6855_v46 = vpack.c.bf16 %v6839_v44, %v6839_v44  ;;  %v6879_v17 = vsel %vm409_vm0, %v6878_v0, %v6865_v3 }
 0x1dd   : > { %5450 = vmatprep.mubr.bf16.mxu1 %v9006_v2  ;;  %v6881_v30 = vsel %vm412_vm1, %v6880_v27, %v6879_v17 }
 0x1de   : > { %v6871_v6 = vunpack.c.l.b16 %v6855_v46 }
 0x1df   : > { %v10708_v20 = vpop.f32.mrb[16].mxu0 }
 0x1e0   : > { %v10710_v57 = vpop.f32.mrb[17].mxu0 }
 0x1e1   : > { %8280 = vmatmul.mubr.msk.bf16.gmra.mrb[56].mxu0 %vm425_vm4, %v10701_v22  ;;  %v10712_v61 = vpop.f32.mrb[18].mxu0 }
 0x1e2   : > { %6353 = vmatprep.mubr.bf16.mxu0 %v9006_v2  ;;  %v10714_v53 = vpop.f32.mrb[19].mxu0 }
 0x1e4   : > { %8203 = vmatmul.mubr.msk.bf16.gmra.mrb[40].mxu1 %vm425_vm4, %v8912_v21  ;;  %v6882_v21 = vrot.slane %v6871_v6, 5 }
 0x1e5   : > { %5460 = vmatprep.mubr.bf16.mxu1 %v9006_v2 }
 0x1e6   : > { %v6883_v31 = vsel %vm415_vm2, %v6882_v21, %v6881_v30 }
 0x1e7   : > { %v10723_v39 = vpop.f32.mrb[20].mxu0 }
 0x1e8   : > { %v10725_v34 = vpop.f32.mrb[21].mxu0 }
 0x1e9   : > { %8281 = vmatmul.mubr.msk.bf16.gmra.mrb[60].mxu0 %vm425_vm4, %v10074_v43  ;;  %v10728_v14 = vpop.f32.mrb[22].mxu0  ;;  %v6885_v43 = vpack.c.b16 %v6883_v31, %v6883_v31 }
 0x1ea   : > { %6432 = vmatprep.mubr.bf16.mxu0 %v9006_v2  ;;  %v10730_v35 = vpop.f32.mrb[23].mxu0 }
 0x1ec   : > { %8204 = vmatmul.mubr.msk.bf16.gmra.mrb[44].mxu1 %vm425_vm4, %v8913_v56 }
 0x1ed   : > { %6686 = vmatprep.mubr.bf16.mxu1 %v9006_v2 }
 0x1ef   : > { %v10738_v12 = vpop.f32.mrb[24].mxu0 }
 0x1f0   : > { %v10742_v56 = vpop.f32.mrb[25].mxu0 }
 0x1f1   : > { %8283 = vmatmul.mubr.msk.bf16.vlgmr.msra.gmra.mrb[48].mxu0 %vm425_vm4, %v10120_v48  ;;  %v6827_v48 = vrot.slane %v8308_v55, %v9099_v4  ;;  %v10746_v24 = vpop.f32.mrb[26].mxu0 }
 0x1f2   : > { %6566 = vmatpush1.bf16.msra.mxu0 %v6560_v19  ;;  %6442 = vmatprep.mubr.bf16.mxu0 %v9006_v2 }
 0x1f3   : > { %8310 = vmatprep.subr.msk.bf16.mxu0 %vm438_vm3, %v6885_v43  ;;  %v6852_v19 = vpack.c.bf16 %v6827_v48, %v6827_v48 }
 0x1f4   : > { %8297 = vmatmul.mubr.msk.bf16.vlgmr.msra.gmra.mrb[48].mxu1 %vm425_vm4, %v8914_v33  ;;  %v6848_v33 = vpack.c.bf16 %v6811_v58, %v6811_v58 }
 0x1f5   : > { %6728 = vmatpush1.bf16.msra.mxu1 %v10603_v29  ;;  %6696 = vmatprep.mubr.bf16.mxu1 %v9006_v2  ;;  %v10749_v29 = vpop.f32.mrb[27].mxu0  ;;  %v6868_v47 = vunpack.c.l.b16 %v6852_v19 }
 0x1f6   : > { %8315 = vmatprep.subr.msk.bf16.mxu1 %vm438_vm3, %v6885_v43  ;;  %v6864_v4 = vunpack.c.l.b16 %v6848_v33 }
 0x1f7   : > { %v10757_v55 = vpop.f32.mrb[28].mxu0 }
 0x1f8   : > { %v10759_v38 = vpop.f32.mrb[29].mxu0  ;;  %v6873_v44 = vsel %vm409_vm0, %v6872_v41, %v6864_v4 }
 0x1f9   : > { %8284 = vmatmul.mubr.msk.bf16.gmra.mrb[52].mxu0 %vm425_vm4, %v10209_v13  ;;  %v10761_v37 = vpop.f32.mrb[30].mxu0 }
 0x1fa   : > { %6452 = vmatprep.mubr.bf16.mxu0 %v9006_v2  ;;  %v10763_v13 = vpop.f32.mrb[31].mxu0 }
 0x1fc   : > { %8298 = vmatmul.mubr.msk.bf16.gmra.mrb[52].mxu1 %vm425_vm4, %v8915_v16  ;;  %v6874_v16 = vrot.slane %v6868_v47, 6 }
 0x1fd   : > { %6706 = vmatprep.mubr.bf16.mxu1 %v9006_v2 }
 0x1fe   : > { %v6875_v60 = vsel %vm412_vm1, %v6874_v16, %v6873_v44 }
 0x1ff   : > { %v3390_v11 = vpop.f32.mrb[16].mxu1  ;;  %v6877_v21 = vsel %vm415_vm2, %v6876_v5, %v6875_v60 }
 0x200   : > { %v3445_v49 = vmax.f32 %v10708_v20, %v3390_v11  ;;  %v3392_v46 = vpop.f32.mrb[17].mxu1  ;;  %v6884_v43 = vpack.c.b16 %v6877_v21, %v6877_v21 }
 0x201   : > { %8285 = vmatmul.mubr.msk.bf16.gmra.mrb[56].mxu0 %vm425_vm4, %v10279_v15  ;;  %v3446_v3 = vmax.f32 %v10710_v57, %v3392_v46  ;;  %v3394_v15 = vpop.f32.mrb[18].mxu1 }
 0x202   : > { %6462 = vmatprep.mubr.bf16.mxu0 %v9006_v2  ;;  %v3461_v0 = vadd.f32 %v3445_v49, %v10029_v9  ;;  %v3396_v6 = vpop.f32.mrb[19].mxu1  ;;  %v6887_v44 = vsel %vm438_vm3, %v6884_v43, 0 }
 0x203   : > { %v3462_v27 = vadd.f32 %v3446_v3, %v10029_v9  ;;  %v3448_v17 = vmax.f32 %v10714_v53, %v3396_v6 }
 0x204   : > { %8299 = vmatmul.mubr.msk.bf16.gmra.mrb[56].mxu1 %vm425_vm4, %v10701_v22  ;;  %v3447_v22 = vmax.f32 %v10712_v61, %v3394_v15  ;;  %v3477_v30 = vmax.f32 %v3461_v0, 0.0  ;;  %v8917_v61 = vld [vmem:[%s11753_s1 + $0x38] sm:$0xff]  }
 0x205   : > { %6716 = vmatprep.mubr.bf16.mxu1 %v9006_v2  ;;  %v3478_v31 = vmax.f32 %v3462_v27, 0.0  ;;  %v3464_v57 = vadd.f32 %v3448_v17, %v10051_v36 }
 0x206   : > { %v3463_v20 = vadd.f32 %v3447_v22, %v10051_v36 }
 0x207   : > { %v3509_v23 = vcombine.low %v3477_v30, %v3478_v31  ;;  %v3510_v48 = vcombine.high %v3477_v30, %v3478_v31  ;;  %v3480_v58 = vmax.f32 %v3464_v57, 0.0  ;;  %v3400_v45 = vpop.f32.mrb[20].mxu1 }
 0x208   : > { %v3479_v53 = vmax.f32 %v3463_v20, 0.0  ;;  %v3402_v25 = vpop.f32.mrb[21].mxu1 }
 0x209   : > { %8286 = vmatmul.mubr.msk.bf16.gmra.mrb[60].mxu0 %vm425_vm4, %v10367_v8  ;;  %v3449_v8 = vmax.f32 %v10723_v39, %v3400_v45  ;;  %v3517_v19 = vrot.slane %v3509_v23, %v10046_v32  ;;  %v3524_v33 = vrot.slane %v3510_v48, %v10046_v32  ;;  %v3404_v47 = vpop.f32.mrb[22].mxu1  ;;  %v3450_v41 = vmax.f32 %v10725_v34, %v3402_v25 }
 0x20a   : > { %6597 = vmatprep.mubr.bf16.mxu0 %v9006_v2  ;;  %v3559_v62 = vcombine.low %v3479_v53, %v3480_v58  ;;  %v3560_v10 = vcombine.high %v3479_v53, %v3480_v58  ;;  %v3451_v1 = vmax.f32 %v10728_v14, %v3404_v47  ;;  %v3406_v16 = vpop.f32.mrb[23].mxu1 }
 0x20b   : > { %v3465_v4 = vadd.f32 %v3449_v8, %v10094_v26  ;;  %v3525_v39 = vcombine.high %v3517_v19, %v3517_v19  ;;  %v3526_v11 = vcombine.high %v3524_v33, %v3524_v33  ;;  %v3533_v5 = vrot.slane %v3517_v19, %v10046_v32 }
 0x20c   : > { %8300 = vmatmul.mubr.msk.bf16.gmra.mrb[60].mxu1 %vm425_vm4, %v8917_v61  ;;  %v3540_v49 = vrot.slane %v3524_v33, %v10046_v32  ;;  %v3567_v46 = vrot.slane %v3559_v62, %v10046_v32  ;;  %v3574_v60 = vrot.slane %v3560_v10, %v10046_v32  ;;  %v3466_v34 = vadd.f32 %v3450_v41, %v10094_v26 }
 0x20d   : > { %6759 = vmatprep.mubr.bf16.mxu1 %v9006_v2  ;;  %v3481_v3 = vmax.f32 %v3465_v4, 0.0  ;;  %v3547_v14 = vrot.slane %v3525_v39, %v10046_v32  ;;  %v3554_v15 = vrot.slane %v3526_v11, %v10046_v32  ;;  %v3555_v0 = vcombine.high %v3533_v5, %v3533_v5  ;;  %8067 = vst.msk [vmem:[%s10127_s4 + $0x1] ss:$4 sm:$0x3] %vm10057_vm5, %v3533_v5 }
 0x20e   : > { %v3556_v22 = vcombine.high %v3540_v49, %v3540_v49  ;;  %8071 = vst.msk [vmem:[%s10127_s4 + $0x21] ss:$4 sm:$0x3] %vm10057_vm5, %v3540_v49  ;;  %v3575_v6 = vcombine.high %v3567_v46, %v3567_v46  ;;  %v3576_v27 = vcombine.high %v3574_v60, %v3574_v60  ;;  %v3583_v17 = vrot.slane %v3567_v46, %v10046_v32  ;;  %v8919_v46 = vld [vmem:[%s11753_s1 + $0x8] sm:$0xff]  }
 0x20f   : > { %v3590_v21 = vrot.slane %v3574_v60, %v10046_v32  ;;  %v3557_v30 = vcombine.high %v3547_v14, %v3547_v14  ;;  %v3558_v20 = vcombine.high %v3554_v15, %v3554_v15  ;;  %8068 = vst.msk [vmem:[%s10127_s4 + $0x9] ss:$4 sm:$0x3] %vm10057_vm5, %v3547_v14  ;;  %8069 = vst.msk [vmem:[%s10127_s4 + $0x11] ss:$4 sm:$0x3] %vm10057_vm5, %v3555_v0 }
 0x210   : > { %8072 = vst.msk [vmem:[%s10127_s4 + $0x29] ss:$4 sm:$0x3] %vm10057_vm5, %v3554_v15  ;;  %8073 = vst.msk [vmem:[%s10127_s4 + $0x31] ss:$4 sm:$0x3] %vm10057_vm5, %v3556_v22  ;;  %v3467_v57 = vadd.f32 %v3451_v1, %v10137_v54  ;;  %v3597_v53 = vrot.slane %v3575_v6, %v10046_v32  ;;  %v3604_v43 = vrot.slane %v3576_v27, %v10046_v32 }
 0x211   : > { %8292 = vmatmul.mubr.msk.bf16.vlgmr.msra.gmra.mrb[48].mxu0 %vm425_vm4, %v10443_v52  ;;  %v8918_v52 = vld [vmem:[%s11753_s1] sm:$0xff]   ;;  %v3482_v31 = vmax.f32 %v3466_v34, 0.0  ;;  %v3410_v61 = vpop.f32.mrb[24].mxu1  ;;  %v3605_v23 = vcombine.high %v3583_v17, %v3583_v17  ;;  %v3606_v48 = vcombine.high %v3590_v21, %v3590_v21  ;;  %8075 = vst.msk [vmem:[%s10127_s4 + $0x41] ss:$4 sm:$0x3] %vm10057_vm5, %v3583_v17  ;;  %v3452_v25 = vmax.f32 %v10730_v35, %v3406_v16 }
 0x212   : > { %6893 = vmatpush1.bf16.msra.mxu0 %v6887_v44  ;;  %6607 = vmatprep.mubr.bf16.mxu0 %v9006_v2  ;;  %8079 = vst.msk [vmem:[%s10127_s4 + $0x61] ss:$4 sm:$0x3] %vm10057_vm5, %v3590_v21  ;;  %v3412_v58 = vpop.f32.mrb[25].mxu1  ;;  %v3607_v33 = vcombine.high %v3597_v53, %v3597_v53  ;;  %v3608_v62 = vcombine.high %v3604_v43, %v3604_v43 }
 0x213   : > { %8070 = vst.msk [vmem:[%s10127_s4 + $0x19] ss:$4 sm:$0x3] %vm10057_vm5, %v3557_v30  ;;  %8074 = vst.msk [vmem:[%s10127_s4 + $0x39] ss:$4 sm:$0x3] %vm10057_vm5, %v3558_v20  ;;  %v3609_v45 = vcombine.low %v3481_v3, %v3482_v31  ;;  %v3610_v8 = vcombine.high %v3481_v3, %v3482_v31  ;;  %v3453_v10 = vmax.f32 %v10738_v12, %v3410_v61 }
 0x214   : > { %8302 = vmatmul.mubr.msk.bf16.vlgmr.msra.gmra.mrb[48].mxu1 %vm425_vm4, %v8918_v52  ;;  %v3414_v19 = vpop.f32.mrb[26].mxu1  ;;  %8076 = vst.msk [vmem:[%s10127_s4 + $0x49] ss:$4 sm:$0x3] %vm10057_vm5, %v3597_v53  ;;  %v3454_v35 = vmax.f32 %v10742_v56, %v3412_v58  ;;  %v3468_v1 = vadd.f32 %v3452_v25, %v10137_v54 }
 0x215   : > { %6982 = vmatpush1.bf16.msra.mxu1 %v6887_v44  ;;  %6769 = vmatprep.mubr.bf16.mxu1 %v9006_v2  ;;  %8077 = vst.msk [vmem:[%s10127_s4 + $0x51] ss:$4 sm:$0x3] %vm10057_vm5, %v3605_v23  ;;  %8080 = vst.msk [vmem:[%s10127_s4 + $0x69] ss:$4 sm:$0x3] %vm10057_vm5, %v3604_v43  ;;  %v3617_v4 = vrot.slane %v3609_v45, %v10046_v32  ;;  %v3624_v41 = vrot.slane %v3610_v8, %v10046_v32 }
 0x216   : > { %8081 = vst.msk [vmem:[%s10127_s4 + $0x71] ss:$4 sm:$0x3] %vm10057_vm5, %v3606_v48  ;;  %v3416_v47 = vpop.f32.mrb[27].mxu1  ;;  %v3455_v16 = vmax.f32 %v10746_v24, %v3414_v19  ;;  %v3483_v44 = vmax.f32 %v3467_v57, 0.0  ;;  %v3469_v12 = vadd.f32 %v3453_v10, %v10172_v50  ;;  %v3470_v56 = vadd.f32 %v3454_v35, %v10172_v50 }
 0x217   : > { %8078 = vst.msk [vmem:[%s10127_s4 + $0x59] ss:$4 sm:$0x3] %vm10057_vm5, %v3607_v33  ;;  %8082 = vst.msk [vmem:[%s10127_s4 + $0x79] ss:$4 sm:$0x3] %vm10057_vm5, %v3608_v62  ;;  %v3456_v39 = vmax.f32 %v10749_v29, %v3416_v47  ;;  %v3625_v11 = vcombine.high %v3617_v4, %v3617_v4  ;;  %v3626_v5 = vcombine.high %v3624_v41, %v3624_v41 }
 0x218   : > { %v3633_v24 = vrot.slane %v3617_v4, %v10046_v32  ;;  %v3640_v49 = vrot.slane %v3624_v41, %v10046_v32  ;;  %v3484_v60 = vmax.f32 %v3468_v1, 0.0  ;;  %v3485_v3 = vmax.f32 %v3469_v12, 0.0  ;;  %v10896_v52 = vpop.f32.mrb[28].mxu1  ;;  %v10936_v4 = vld [vmem:[%s11753_s1 + $0x50] sm:$0xff]  }
 0x219   : > { %8293 = vmatmul.mubr.msk.bf16.gmra.mrb[52].mxu0 %vm425_vm4, %v10544_v7  ;;  %v3486_v29 = vmax.f32 %v3470_v56, 0.0  ;;  %v10884_v34 = vadd.f32 %v3455_v16, %v10213_v42  ;;  %v3647_v14 = vrot.slane %v3625_v11, %v10046_v32  ;;  %v3654_v15 = vrot.slane %v3626_v5, %v10046_v32  ;;  %v10898_v30 = vpop.f32.mrb[29].mxu1  ;;  %v8921_v1 = vld [vmem:[%s11753_s1 + $0x10] sm:$0xff]  }
 0x21a   : > { %6617 = vmatprep.mubr.bf16.mxu0 %v9006_v2  ;;  %v3655_v0 = vcombine.high %v3633_v24, %v3633_v24  ;;  %v3656_v22 = vcombine.high %v3640_v49, %v3640_v49  ;;  %8083 = vst.msk [vmem:[%s10127_s4 + $0x81] ss:$4 sm:$0x3] %vm10057_vm5, %v3633_v24  ;;  %8087 = vst.msk [vmem:[%s10127_s4 + $0xa1] ss:$4 sm:$0x3] %vm10057_vm5, %v3640_v49  ;;  %v3659_v6 = vcombine.low %v3483_v44, %v3484_v60 }
 0x21b   : > { %v3660_v27 = vcombine.high %v3483_v44, %v3484_v60  ;;  %v3709_v17 = vcombine.low %v3485_v3, %v3486_v29  ;;  %v3710_v21 = vcombine.high %v3485_v3, %v3486_v29  ;;  %v3657_v20 = vcombine.high %v3647_v14, %v3647_v14  ;;  %8084 = vst.msk [vmem:[%s10127_s4 + $0x89] ss:$4 sm:$0x3] %vm10057_vm5, %v3647_v14  ;;  %v3424_v53 = vpop.f32.mrb[30].mxu1 }
 0x21c   : > { %8303 = vmatmul.mubr.msk.bf16.gmra.mrb[52].mxu1 %vm425_vm4, %v8919_v46  ;;  %v3658_v31 = vcombine.high %v3654_v15, %v3654_v15  ;;  %8085 = vst.msk [vmem:[%s10127_s4 + $0x91] ss:$4 sm:$0x3] %vm10057_vm5, %v3655_v0  ;;  %8088 = vst.msk [vmem:[%s10127_s4 + $0xa9] ss:$4 sm:$0x3] %vm10057_vm5, %v3654_v15  ;;  %v3472_v61 = vadd.f32 %v3456_v39, %v10213_v42  ;;  %v3667_v43 = vrot.slane %v3659_v6, %v10046_v32 }
 0x21d   : > { %6779 = vmatprep.mubr.bf16.mxu1 %v9006_v2  ;;  %8089 = vst.msk [vmem:[%s10127_s4 + $0xb1] ss:$4 sm:$0x3] %vm10057_vm5, %v3656_v22  ;;  %v3487_v57 = vmax.f32 %v10884_v34, 0.0  ;;  %v3674_v23 = vrot.slane %v3660_v27, %v10046_v32  ;;  %v3717_v48 = vrot.slane %v3709_v17, %v10046_v32  ;;  %v3724_v58 = vrot.slane %v3710_v21, %v10046_v32  ;;  %v10918_v45 = vpop.f32.mrb[31].mxu1 }
 0x21e   : > { %8086 = vst.msk [vmem:[%s10127_s4 + $0x99] ss:$4 sm:$0x3] %vm10057_vm5, %v3657_v20  ;;  %8090 = vst.msk [vmem:[%s10127_s4 + $0xb9] ss:$4 sm:$0x3] %vm10057_vm5, %v3658_v31  ;;  %v3457_v25 = vmax.f32 %v10757_v55, %v10896_v52  ;;  %v3458_v19 = vmax.f32 %v10759_v38, %v10898_v30  ;;  %v3459_v33 = vmax.f32 %v10761_v37, %v3424_v53 }
 0x21f   : > { %v3488_v8 = vmax.f32 %v3472_v61, 0.0  ;;  %v3675_v62 = vcombine.high %v3667_v43, %v3667_v43  ;;  %v3676_v10 = vcombine.high %v3674_v23, %v3674_v23  ;;  %v3683_v35 = vrot.slane %v3667_v43, %v10046_v32 }
 0x220   : > { %v3690_v47 = vrot.slane %v3674_v23, %v10046_v32  ;;  %v3725_v55 = vcombine.high %v3717_v48, %v3717_v48  ;;  %v3726_v38 = vcombine.high %v3724_v58, %v3724_v58  ;;  %v3733_v37 = vrot.slane %v3717_v48, %v10046_v32  ;;  %v8923_v23 = vld [vmem:[%s11753_s1 + $0x18] sm:$0xff]  }
 0x221   : > { %8294 = vmatmul.mubr.msk.bf16.gmra.mrb[56].mxu0 %vm425_vm4, %v10936_v4  ;;  %v3740_v41 = vrot.slane %v3724_v58, %v10046_v32  ;;  %v3697_v16 = vrot.slane %v3675_v62, %v10046_v32  ;;  %v3704_v44 = vrot.slane %v3676_v10, %v10046_v32  ;;  %v3705_v12 = vcombine.high %v3683_v35, %v3683_v35 }
 0x222   : > { %v3706_v56 = vcombine.high %v3690_v47, %v3690_v47  ;;  %8091 = vst.msk [vmem:[%s10127_s4 + $0xc1] ss:$4 sm:$0x3] %vm10057_vm5, %v3683_v35  ;;  %8095 = vst.msk [vmem:[%s10127_s4 + $0xe1] ss:$4 sm:$0x3] %vm10057_vm5, %v3690_v47  ;;  %6627 = vmatprep.mubr.bf16.mxu0 %v9006_v2  ;;  %v3747_v39 = vrot.slane %v3725_v55, %v10046_v32  ;;  %v3754_v11 = vrot.slane %v3726_v38, %v10046_v32 }
 0x223   : > { %v3755_v5 = vcombine.high %v3733_v37, %v3733_v37  ;;  %v3756_v24 = vcombine.high %v3740_v41, %v3740_v41  ;;  %8099 = vst.msk [vmem:[%s10127_s4 + $0x101] ss:$4 sm:$0x3] %vm10057_vm5, %v3733_v37  ;;  %8103 = vst.msk [vmem:[%s10127_s4 + $0x121] ss:$4 sm:$0x3] %vm10057_vm5, %v3740_v41  ;;  %v3707_v49 = vcombine.high %v3697_v16, %v3697_v16 }
 0x224   : > { %8304 = vmatmul.mubr.msk.bf16.gmra.mrb[56].mxu1 %vm425_vm4, %v8921_v1  ;;  %v3708_v46 = vcombine.high %v3704_v44, %v3704_v44  ;;  %8092 = vst.msk [vmem:[%s10127_s4 + $0xc9] ss:$4 sm:$0x3] %vm10057_vm5, %v3697_v16  ;;  %8093 = vst.msk [vmem:[%s10127_s4 + $0xd1] ss:$4 sm:$0x3] %vm10057_vm5, %v3705_v12  ;;  %v3759_v60 = vcombine.low %v3487_v57, %v3488_v8  ;;  %v3760_v3 = vcombine.high %v3487_v57, %v3488_v8 }
 0x225   : > { %6789 = vmatprep.mubr.bf16.mxu1 %v9006_v2  ;;  %8096 = vst.msk [vmem:[%s10127_s4 + $0xe9] ss:$4 sm:$0x3] %vm10057_vm5, %v3704_v44  ;;  %8097 = vst.msk [vmem:[%s10127_s4 + $0xf1] ss:$4 sm:$0x3] %vm10057_vm5, %v3706_v56  ;;  %v3757_v29 = vcombine.high %v3747_v39, %v3747_v39  ;;  %v3758_v34 = vcombine.high %v3754_v11, %v3754_v11  ;;  %v3473_v14 = vadd.f32 %v3457_v25, %v10317_v40 }
 0x226   : > { %8100 = vst.msk [vmem:[%s10127_s4 + $0x109] ss:$4 sm:$0x3] %vm10057_vm5, %v3747_v39  ;;  %8101 = vst.msk [vmem:[%s10127_s4 + $0x111] ss:$4 sm:$0x3] %vm10057_vm5, %v3755_v5  ;;  %v3474_v15 = vadd.f32 %v3458_v19, %v10317_v40  ;;  %v3767_v0 = vrot.slane %v3759_v60, %v10046_v32  ;;  %v3774_v22 = vrot.slane %v3760_v3, %v10046_v32 }
 0x227   : > { %8104 = vst.msk [vmem:[%s10127_s4 + $0x129] ss:$4 sm:$0x3] %vm10057_vm5, %v3754_v11  ;;  %8105 = vst.msk [vmem:[%s10127_s4 + $0x131] ss:$4 sm:$0x3] %vm10057_vm5, %v3756_v24  ;;  %v3475_v52 = vadd.f32 %v3459_v33, %v10319_v18  ;;  %v3460_v6 = vmax.f32 %v10763_v13, %v10918_v45 }
 0x228   : > { %8094 = vst.msk [vmem:[%s10127_s4 + $0xd9] ss:$4 sm:$0x3] %vm10057_vm5, %v3707_v49  ;;  %8098 = vst.msk [vmem:[%s10127_s4 + $0xf9] ss:$4 sm:$0x3] %vm10057_vm5, %v3708_v46  ;;  %v3775_v21 = vcombine.high %v3767_v0, %v3767_v0  ;;  %v3776_v30 = vcombine.high %v3774_v22, %v3774_v22  ;;  %v3783_v20 = vrot.slane %v3767_v0, %v10046_v32 }
 0x229   : > { %8102 = vst.msk [vmem:[%s10127_s4 + $0x119] ss:$4 sm:$0x3] %vm10057_vm5, %v3757_v29  ;;  %8106 = vst.msk [vmem:[%s10127_s4 + $0x139] ss:$4 sm:$0x3] %vm10057_vm5, %v3758_v34  ;;  %v3790_v31 = vrot.slane %v3774_v22, %v10046_v32  ;;  %v3476_v43 = vadd.f32 %v3460_v6, %v10319_v18 }
 0x22a   : > { %v3489_v27 = vmax.f32 %v3473_v14, 0.0  ;;  %v3490_v17 = vmax.f32 %v3474_v15, 0.0  ;;  %v11012_v13 = vld [vmem:[%s11753_s1 + $0x58] sm:$0xff]   ;;  %v3491_v53 = vmax.f32 %v3475_v52, 0.0  ;;  %v3797_v48 = vrot.slane %v3775_v21, %v10046_v32  ;;  %v8924_v11 = vld [vmem:[%s11753_s1 + $0x60] sm:$0xff]  }
 0x22b   : > { %8295 = vmatmul.mubr.msk.bf16.gmra.mrb[60].mxu0 %vm425_vm4, %v11012_v13  ;;  %v3804_v58 = vrot.slane %v3776_v30, %v10046_v32  ;;  %v3805_v45 = vcombine.high %v3783_v20, %v3783_v20  ;;  %v3806_v8 = vcombine.high %v3790_v31, %v3790_v31  ;;  %8107 = vst.msk [vmem:[%s10127_s4 + $0x141] ss:$4 sm:$0x3] %vm10057_vm5, %v3783_v20  ;;  %8111 = vst.msk [vmem:[%s10127_s4 + $0x161] ss:$4 sm:$0x3] %vm10057_vm5, %v3790_v31 }
 0x22c   : > { %v3809_v57 = vcombine.low %v3489_v27, %v3490_v17  ;;  %v3810_v61 = vcombine.high %v3489_v27, %v3490_v17  ;;  %8305 = vmatmul.mubr.msk.bf16.gmra.mrb[60].mxu1 %vm425_vm4, %v8923_v23  ;;  %6924 = vmatprep.mubr.bf16.mxu0 %v9006_v2  ;;  %v3492_v33 = vmax.f32 %v3476_v43, 0.0  ;;  %v3807_v62 = vcombine.high %v3797_v48, %v3797_v48  ;;  %v8925_v49 = vld [vmem:[%s11753_s1 + $0x40] sm:$0xff]  }
 0x22d   : > { %7013 = vmatprep.mubr.bf16.mxu1 %v9006_v2  ;;  %v3808_v10 = vcombine.high %v3804_v58, %v3804_v58  ;;  %8108 = vst.msk [vmem:[%s10127_s4 + $0x149] ss:$4 sm:$0x3] %vm10057_vm5, %v3797_v48  ;;  %8109 = vst.msk [vmem:[%s10127_s4 + $0x151] ss:$4 sm:$0x3] %vm10057_vm5, %v3805_v45 }
 0x22e   : > { %v3817_v25 = vrot.slane %v3809_v57, %v10046_v32  ;;  %v3824_v19 = vrot.slane %v3810_v61, %v10046_v32  ;;  %8112 = vst.msk [vmem:[%s10127_s4 + $0x169] ss:$4 sm:$0x3] %vm10057_vm5, %v3804_v58  ;;  %8113 = vst.msk [vmem:[%s10127_s4 + $0x171] ss:$4 sm:$0x3] %vm10057_vm5, %v3806_v8  ;;  %v3859_v37 = vcombine.low %v3491_v53, %v3492_v33 }
 0x22f   : > { %8110 = vst.msk [vmem:[%s10127_s4 + $0x159] ss:$4 sm:$0x3] %vm10057_vm5, %v3807_v62  ;;  %8114 = vst.msk [vmem:[%s10127_s4 + $0x179] ss:$4 sm:$0x3] %vm10057_vm5, %v3808_v10  ;;  %v3860_v41 = vcombine.high %v3491_v53, %v3492_v33 }
 0x230   : > { %v3825_v35 = vcombine.high %v3817_v25, %v3817_v25  ;;  %v3826_v47 = vcombine.high %v3824_v19, %v3824_v19  ;;  %v3833_v55 = vrot.slane %v3817_v25, %v10046_v32  ;;  %v3840_v38 = vrot.slane %v3824_v19, %v10046_v32 }
 0x231   : > { %v3867_v56 = vrot.slane %v3859_v37, %v10046_v32  ;;  %v3874_v39 = vrot.slane %v3860_v41, %v10046_v32 }
 0x232   : > { %v3847_v1 = vrot.slane %v3825_v35, %v10046_v32  ;;  %v3854_v16 = vrot.slane %v3826_v47, %v10046_v32  ;;  %v3855_v44 = vcombine.high %v3833_v55, %v3833_v55  ;;  %v3856_v12 = vcombine.high %v3840_v38, %v3840_v38  ;;  %8115 = vst.msk [vmem:[%s10127_s4 + $0x181] ss:$4 sm:$0x3] %vm10057_vm5, %v3833_v55 }
 0x233   : > { %8119 = vst.msk [vmem:[%s10127_s4 + $0x1a1] ss:$4 sm:$0x3] %vm10057_vm5, %v3840_v38  ;;  %8311 = vmatmul.mubr.msk.bf16.vlgmr.msra.gmra.mrb[48].mxu0 %vm425_vm4, %v8924_v11  ;;  %v3875_v46 = vcombine.high %v3867_v56, %v3867_v56  ;;  %v3876_v60 = vcombine.high %v3874_v39, %v3874_v39  ;;  %v3883_v3 = vrot.slane %v3867_v56, %v10046_v32 }
 0x234   : > { %v3857_v5 = vcombine.high %v3847_v1, %v3847_v1  ;;  %v3858_v24 = vcombine.high %v3854_v16, %v3854_v16  ;;  %8116 = vst.msk [vmem:[%s10127_s4 + $0x189] ss:$4 sm:$0x3] %vm10057_vm5, %v3847_v1  ;;  %8117 = vst.msk [vmem:[%s10127_s4 + $0x191] ss:$4 sm:$0x3] %vm10057_vm5, %v3855_v44  ;;  %8316 = vmatmul.mubr.msk.bf16.vlgmr.msra.gmra.mrb[48].mxu1 %vm425_vm4, %v8925_v49  ;;  %6934 = vmatprep.mubr.bf16.mxu0 %v9006_v2 }
 0x235   : > { %8120 = vst.msk [vmem:[%s10127_s4 + $0x1a9] ss:$4 sm:$0x3] %vm10057_vm5, %v3854_v16  ;;  %8121 = vst.msk [vmem:[%s10127_s4 + $0x1b1] ss:$4 sm:$0x3] %vm10057_vm5, %v3856_v12  ;;  %v3890_v29 = vrot.slane %v3874_v39, %v10046_v32  ;;  %7023 = vmatprep.mubr.bf16.mxu1 %v9006_v2  ;;  %v3897_v34 = vrot.slane %v3875_v46, %v10046_v32  ;;  %v3904_v14 = vrot.slane %v3876_v60, %v10046_v32 }
 0x236   : > { %8118 = vst.msk [vmem:[%s10127_s4 + $0x199] ss:$4 sm:$0x3] %vm10057_vm5, %v3857_v5  ;;  %8122 = vst.msk [vmem:[%s10127_s4 + $0x1b9] ss:$4 sm:$0x3] %vm10057_vm5, %v3858_v24  ;;  %v3905_v15 = vcombine.high %v3883_v3, %v3883_v3 }
 0x237   : > { %v3906_v0 = vcombine.high %v3890_v29, %v3890_v29  ;;  %8123 = vst.msk [vmem:[%s10127_s4 + $0x1c1] ss:$4 sm:$0x3] %vm10057_vm5, %v3883_v3  ;;  %8127 = vst.msk [vmem:[%s10127_s4 + $0x1e1] ss:$4 sm:$0x3] %vm10057_vm5, %v3890_v29  ;;  %v3907_v22 = vcombine.high %v3897_v34, %v3897_v34  ;;  %v3908_v52 = vcombine.high %v3904_v14, %v3904_v14 }
 0x238   : > { %8124 = vst.msk [vmem:[%s10127_s4 + $0x1c9] ss:$4 sm:$0x3] %vm10057_vm5, %v3897_v34  ;;  %8125 = vst.msk [vmem:[%s10127_s4 + $0x1d1] ss:$4 sm:$0x3] %vm10057_vm5, %v3905_v15 }
 0x239   : > { %8128 = vst.msk [vmem:[%s10127_s4 + $0x1e9] ss:$4 sm:$0x3] %vm10057_vm5, %v3904_v14  ;;  %8129 = vst.msk [vmem:[%s10127_s4 + $0x1f1] ss:$4 sm:$0x3] %vm10057_vm5, %v3906_v0 }
 0x23a   : > { %8126 = vst.msk [vmem:[%s10127_s4 + $0x1d9] ss:$4 sm:$0x3] %vm10057_vm5, %v3907_v22  ;;  %8130 = vst.msk [vmem:[%s10127_s4 + $0x1f9] ss:$4 sm:$0x3] %vm10057_vm5, %v3908_v52 }
 0x23b   : > { %8312 = vmatmul.mubr.msk.bf16.gmra.mrb[52].mxu0 %vm425_vm4, %v10532_v59 }
 0x23c   : > { %8317 = vmatmul.mubr.msk.bf16.gmra.mrb[52].mxu1 %vm425_vm4, %v10544_v7  ;;  %6944 = vmatprep.mubr.bf16.mxu0 %v9006_v2 }
 0x23d   : > { %7033 = vmatprep.mubr.bf16.mxu1 %v9006_v2 }
 0x243   : > { %8313 = vmatmul.mubr.msk.bf16.gmra.mrb[56].mxu0 %vm425_vm4, %v10571_v51 }
 0x244   : > { %8318 = vmatmul.mubr.msk.bf16.gmra.mrb[56].mxu1 %vm425_vm4, %v10936_v4  ;;  %6954 = vmatprep.mubr.bf16.mxu0 %v9006_v2 }
 0x245   : > { %7043 = vmatprep.mubr.bf16.mxu1 %v9006_v2 }
 0x24b   : > { %8314 = vmatmul.mubr.msk.bf16.gmra.mrb[60].mxu0 %vm425_vm4, %v10589_v28 }
 0x24c   : > { %8319 = vmatmul.mubr.msk.bf16.gmra.mrb[60].mxu1 %vm425_vm4, %v11012_v13 }
 0x284   : > { %v5158_v59 = vpop.f32.mrb[32].mxu0 }
 0x285   : > { %v5160_v7 = vpop.f32.mrb[33].mxu0 }
 0x286   : > { %v5162_v6 = vpop.f32.mrb[34].mxu0 }
 0x287   : > { %v5164_v27 = vpop.f32.mrb[35].mxu0 }
 0x28c   : > { %v5168_v17 = vpop.f32.mrb[36].mxu0 }
 0x28d   : > { %v5170_v21 = vpop.f32.mrb[37].mxu0 }
 0x28e   : > { %v11135_v51 = vpop.f32.mrb[38].mxu0 }
 0x28f   : > { %v11137_v30 = vpop.f32.mrb[39].mxu0 }
 0x294   : > { %v11139_v4 = vpop.f32.mrb[40].mxu0 }
 0x295   : > { %v11141_v20 = vpop.f32.mrb[41].mxu0 }
 0x296   : > { %v11143_v2 = vpop.f32.mrb[42].mxu0 }
 0x297   : > { %v11145_v28 = vpop.f32.mrb[43].mxu0 }
 0x29c   : > { %v11147_v31 = vpop.f32.mrb[44].mxu0 }
 0x29d   : > { %v11149_v13 = vpop.f32.mrb[45].mxu0 }
 0x29e   : > { %v11151_v57 = vpop.f32.mrb[46].mxu0 }
 0x29f   : > { %v11153_v61 = vpop.f32.mrb[47].mxu0 }
 0x2a7   : > { %v5432_v53 = vpop.f32.mrb[32].mxu1 }
 0x2a8   : > { %v5487_v43 = vmax.f32 %v5158_v59, %v5432_v53  ;;  %v5434_v23 = vpop.f32.mrb[33].mxu1 }
 0x2a9   : > { %v5488_v48 = vmax.f32 %v5160_v7, %v5434_v23  ;;  %v5436_v58 = vpop.f32.mrb[34].mxu1 }
 0x2aa   : > { %v5503_v45 = vadd.f32 %v5487_v43, %v10029_v9  ;;  %v5489_v8 = vmax.f32 %v5162_v6, %v5436_v58  ;;  %v5438_v25 = vpop.f32.mrb[35].mxu1 }
 0x2ab   : > { %v5504_v19 = vadd.f32 %v5488_v48, %v10029_v9  ;;  %v5490_v33 = vmax.f32 %v5164_v27, %v5438_v25 }
 0x2ac   : > { %v5519_v62 = vmax.f32 %v5503_v45, 0.0  ;;  %v5505_v10 = vadd.f32 %v5489_v8, %v10051_v36 }
 0x2ad   : > { %v5520_v35 = vmax.f32 %v5504_v19, 0.0  ;;  %v5506_v47 = vadd.f32 %v5490_v33, %v10051_v36 }
 0x2ae   : > { %v5521_v55 = vmax.f32 %v5505_v10, 0.0 }
 0x2af   : > { %v5551_v38 = vcombine.low %v5519_v62, %v5520_v35  ;;  %v5552_v37 = vcombine.high %v5519_v62, %v5520_v35  ;;  %v5522_v41 = vmax.f32 %v5506_v47, 0.0  ;;  %v5442_v1 = vpop.f32.mrb[36].mxu1 }
 0x2b0   : > { %v5491_v16 = vmax.f32 %v5168_v17, %v5442_v1  ;;  %v5444_v44 = vpop.f32.mrb[37].mxu1 }
 0x2b1   : > { %v5559_v12 = vrot.slane %v5551_v38, %v10046_v32  ;;  %v5566_v56 = vrot.slane %v5552_v37, %v10046_v32  ;;  %v5601_v39 = vcombine.low %v5521_v55, %v5522_v41  ;;  %v5602_v11 = vcombine.high %v5521_v55, %v5522_v41  ;;  %v5446_v5 = vpop.f32.mrb[38].mxu1 }
 0x2b2   : > { %v5507_v24 = vadd.f32 %v5491_v16, %v10094_v26  ;;  %v5492_v49 = vmax.f32 %v5170_v21, %v5444_v44  ;;  %v5493_v46 = vmax.f32 %v11135_v51, %v5446_v5  ;;  %v5448_v60 = vpop.f32.mrb[39].mxu1 }
 0x2b3   : > { %v5567_v3 = vcombine.high %v5559_v12, %v5559_v12  ;;  %v5568_v29 = vcombine.high %v5566_v56, %v5566_v56  ;;  %v5575_v34 = vrot.slane %v5559_v12, %v10046_v32  ;;  %v5582_v14 = vrot.slane %v5566_v56, %v10046_v32 }
 0x2b4   : > { %v5609_v15 = vrot.slane %v5601_v39, %v10046_v32  ;;  %v5616_v0 = vrot.slane %v5602_v11, %v10046_v32  ;;  %v5523_v22 = vmax.f32 %v5507_v24, 0.0  ;;  %v5508_v52 = vadd.f32 %v5492_v49, %v10094_v26 }
 0x2b5   : > { %v5589_v59 = vrot.slane %v5567_v3, %v10046_v32  ;;  %v5596_v7 = vrot.slane %v5568_v29, %v10046_v32  ;;  %v5597_v6 = vcombine.high %v5575_v34, %v5575_v34  ;;  %v5598_v27 = vcombine.high %v5582_v14, %v5582_v14  ;;  %8205 = vst.msk [vmem:[%s10127_s4 + $0x2] ss:$4 sm:$0x3] %vm10057_vm5, %v5575_v34 }
 0x2b6   : > { %8209 = vst.msk [vmem:[%s10127_s4 + $0x22] ss:$4 sm:$0x3] %vm10057_vm5, %v5582_v14  ;;  %v5617_v17 = vcombine.high %v5609_v15, %v5609_v15  ;;  %v5618_v21 = vcombine.high %v5616_v0, %v5616_v0  ;;  %v5625_v51 = vrot.slane %v5609_v15, %v10046_v32  ;;  %v5632_v53 = vrot.slane %v5616_v0, %v10046_v32 }
 0x2b7   : > { %v5599_v43 = vcombine.high %v5589_v59, %v5589_v59  ;;  %v5600_v23 = vcombine.high %v5596_v7, %v5596_v7  ;;  %8206 = vst.msk [vmem:[%s10127_s4 + $0xa] ss:$4 sm:$0x3] %vm10057_vm5, %v5589_v59  ;;  %8207 = vst.msk [vmem:[%s10127_s4 + $0x12] ss:$4 sm:$0x3] %vm10057_vm5, %v5597_v6  ;;  %v5509_v58 = vadd.f32 %v5493_v46, %v10137_v54 }
 0x2b8   : > { %8210 = vst.msk [vmem:[%s10127_s4 + $0x2a] ss:$4 sm:$0x3] %vm10057_vm5, %v5596_v7  ;;  %8211 = vst.msk [vmem:[%s10127_s4 + $0x32] ss:$4 sm:$0x3] %vm10057_vm5, %v5598_v27  ;;  %v5639_v8 = vrot.slane %v5617_v17, %v10046_v32  ;;  %v5646_v25 = vrot.slane %v5618_v21, %v10046_v32  ;;  %v5647_v19 = vcombine.high %v5625_v51, %v5625_v51 }
 0x2b9   : > { %v5524_v48 = vmax.f32 %v5508_v52, 0.0  ;;  %v5452_v45 = vpop.f32.mrb[40].mxu1  ;;  %v5648_v33 = vcombine.high %v5632_v53, %v5632_v53  ;;  %8213 = vst.msk [vmem:[%s10127_s4 + $0x42] ss:$4 sm:$0x3] %vm10057_vm5, %v5625_v51  ;;  %v5494_v47 = vmax.f32 %v11137_v30, %v5448_v60  ;;  %v5525_v39 = vmax.f32 %v5509_v58, 0.0 }
 0x2ba   : > { %8217 = vst.msk [vmem:[%s10127_s4 + $0x62] ss:$4 sm:$0x3] %vm10057_vm5, %v5632_v53  ;;  %v5454_v62 = vpop.f32.mrb[41].mxu1  ;;  %v5649_v38 = vcombine.high %v5639_v8, %v5639_v8  ;;  %v5650_v37 = vcombine.high %v5646_v25, %v5646_v25  ;;  %v5495_v41 = vmax.f32 %v11139_v4, %v5452_v45 }
 0x2bb   : > { %8208 = vst.msk [vmem:[%s10127_s4 + $0x1a] ss:$4 sm:$0x3] %vm10057_vm5, %v5599_v43  ;;  %8212 = vst.msk [vmem:[%s10127_s4 + $0x3a] ss:$4 sm:$0x3] %vm10057_vm5, %v5600_v23  ;;  %v5651_v10 = vcombine.low %v5523_v22, %v5524_v48  ;;  %v5652_v35 = vcombine.high %v5523_v22, %v5524_v48  ;;  %v5496_v30 = vmax.f32 %v11141_v20, %v5454_v62 }
 0x2bc   : > { %v5456_v55 = vpop.f32.mrb[42].mxu1  ;;  %8214 = vst.msk [vmem:[%s10127_s4 + $0x4a] ss:$4 sm:$0x3] %vm10057_vm5, %v5639_v8  ;;  %v5510_v12 = vadd.f32 %v5494_v47, %v10137_v54  ;;  %v5511_v4 = vadd.f32 %v5495_v41, %v10172_v50 }
 0x2bd   : > { %8215 = vst.msk [vmem:[%s10127_s4 + $0x52] ss:$4 sm:$0x3] %vm10057_vm5, %v5647_v19  ;;  %8218 = vst.msk [vmem:[%s10127_s4 + $0x6a] ss:$4 sm:$0x3] %vm10057_vm5, %v5646_v25  ;;  %v5659_v16 = vrot.slane %v5651_v10, %v10046_v32  ;;  %v5666_v44 = vrot.slane %v5652_v35, %v10046_v32  ;;  %v5497_v56 = vmax.f32 %v11143_v2, %v5456_v55 }
 0x2be   : > { %8219 = vst.msk [vmem:[%s10127_s4 + $0x72] ss:$4 sm:$0x3] %vm10057_vm5, %v5648_v33  ;;  %v5458_v1 = vpop.f32.mrb[43].mxu1  ;;  %v5512_v20 = vadd.f32 %v5496_v30, %v10172_v50  ;;  %v5526_v46 = vmax.f32 %v5510_v12, 0.0  ;;  %v5527_v60 = vmax.f32 %v5511_v4, 0.0 }
 0x2bf   : > { %8216 = vst.msk [vmem:[%s10127_s4 + $0x5a] ss:$4 sm:$0x3] %vm10057_vm5, %v5649_v38  ;;  %8220 = vst.msk [vmem:[%s10127_s4 + $0x7a] ss:$4 sm:$0x3] %vm10057_vm5, %v5650_v37  ;;  %v5498_v11 = vmax.f32 %v11145_v28, %v5458_v1  ;;  %v5667_v5 = vcombine.high %v5659_v16, %v5659_v16  ;;  %v5668_v24 = vcombine.high %v5666_v44, %v5666_v44 }
 0x2c0   : > { %v5675_v49 = vrot.slane %v5659_v16, %v10046_v32  ;;  %v5682_v2 = vrot.slane %v5666_v44, %v10046_v32  ;;  %v5528_v3 = vmax.f32 %v5512_v20, 0.0  ;;  %v5513_v29 = vadd.f32 %v5497_v56, %v10213_v42  ;;  %v5462_v0 = vpop.f32.mrb[44].mxu1 }
 0x2c1   : > { %v5689_v34 = vrot.slane %v5667_v5, %v10046_v32  ;;  %v5696_v14 = vrot.slane %v5668_v24, %v10046_v32  ;;  %v5701_v22 = vcombine.low %v5525_v39, %v5526_v46  ;;  %v5702_v52 = vcombine.high %v5525_v39, %v5526_v46  ;;  %v5464_v6 = vpop.f32.mrb[45].mxu1 }
 0x2c2   : > { %v5697_v28 = vcombine.high %v5675_v49, %v5675_v49  ;;  %v5698_v15 = vcombine.high %v5682_v2, %v5682_v2  ;;  %8221 = vst.msk [vmem:[%s10127_s4 + $0x82] ss:$4 sm:$0x3] %vm10057_vm5, %v5675_v49  ;;  %8225 = vst.msk [vmem:[%s10127_s4 + $0xa2] ss:$4 sm:$0x3] %vm10057_vm5, %v5682_v2  ;;  %v5751_v59 = vcombine.low %v5527_v60, %v5528_v3 }
 0x2c3   : > { %v5752_v7 = vcombine.high %v5527_v60, %v5528_v3  ;;  %v5699_v27 = vcombine.high %v5689_v34, %v5689_v34  ;;  %v5700_v17 = vcombine.high %v5696_v14, %v5696_v14  ;;  %8222 = vst.msk [vmem:[%s10127_s4 + $0x8a] ss:$4 sm:$0x3] %vm10057_vm5, %v5689_v34  ;;  %8226 = vst.msk [vmem:[%s10127_s4 + $0xaa] ss:$4 sm:$0x3] %vm10057_vm5, %v5696_v14 }
 0x2c4   : > { %8223 = vst.msk [vmem:[%s10127_s4 + $0x92] ss:$4 sm:$0x3] %vm10057_vm5, %v5697_v28  ;;  %8227 = vst.msk [vmem:[%s10127_s4 + $0xb2] ss:$4 sm:$0x3] %vm10057_vm5, %v5698_v15  ;;  %v5514_v51 = vadd.f32 %v5498_v11, %v10213_v42  ;;  %v5709_v43 = vrot.slane %v5701_v22, %v10046_v32  ;;  %v5716_v23 = vrot.slane %v5702_v52, %v10046_v32 }
 0x2c5   : > { %v5529_v21 = vmax.f32 %v5513_v29, 0.0  ;;  %v5466_v53 = vpop.f32.mrb[46].mxu1  ;;  %v5759_v48 = vrot.slane %v5751_v59, %v10046_v32  ;;  %v5766_v58 = vrot.slane %v5752_v7, %v10046_v32  ;;  %8224 = vst.msk [vmem:[%s10127_s4 + $0x9a] ss:$4 sm:$0x3] %vm10057_vm5, %v5699_v27  ;;  %v5499_v25 = vmax.f32 %v11147_v31, %v5462_v0 }
 0x2c6   : > { %v5468_v45 = vpop.f32.mrb[47].mxu1  ;;  %8228 = vst.msk [vmem:[%s10127_s4 + $0xba] ss:$4 sm:$0x3] %vm10057_vm5, %v5700_v17  ;;  %v5530_v8 = vmax.f32 %v5514_v51, 0.0  ;;  %v5500_v19 = vmax.f32 %v11149_v13, %v5464_v6  ;;  %v5501_v33 = vmax.f32 %v11151_v57, %v5466_v53  ;;  %v5717_v62 = vcombine.high %v5709_v43, %v5709_v43 }
 0x2c7   : > { %v5718_v10 = vcombine.high %v5716_v23, %v5716_v23  ;;  %v5725_v35 = vrot.slane %v5709_v43, %v10046_v32  ;;  %v5732_v47 = vrot.slane %v5716_v23, %v10046_v32  ;;  %v5767_v55 = vcombine.high %v5759_v48, %v5759_v48 }
 0x2c8   : > { %v5768_v38 = vcombine.high %v5766_v58, %v5766_v58  ;;  %v5775_v37 = vrot.slane %v5759_v48, %v10046_v32  ;;  %v5782_v31 = vrot.slane %v5766_v58, %v10046_v32  ;;  %v5739_v13 = vrot.slane %v5717_v62, %v10046_v32 }
 0x2c9   : > { %v5746_v57 = vrot.slane %v5718_v10, %v10046_v32  ;;  %v5747_v41 = vcombine.high %v5725_v35, %v5725_v35  ;;  %v5748_v30 = vcombine.high %v5732_v47, %v5732_v47  ;;  %8229 = vst.msk [vmem:[%s10127_s4 + $0xc2] ss:$4 sm:$0x3] %vm10057_vm5, %v5725_v35  ;;  %8233 = vst.msk [vmem:[%s10127_s4 + $0xe2] ss:$4 sm:$0x3] %vm10057_vm5, %v5732_v47 }
 0x2ca   : > { %v5789_v1 = vrot.slane %v5767_v55, %v10046_v32  ;;  %v5796_v16 = vrot.slane %v5768_v38, %v10046_v32  ;;  %v5797_v44 = vcombine.high %v5775_v37, %v5775_v37  ;;  %v5798_v12 = vcombine.high %v5782_v31, %v5782_v31  ;;  %8237 = vst.msk [vmem:[%s10127_s4 + $0x102] ss:$4 sm:$0x3] %vm10057_vm5, %v5775_v37 }
 0x2cb   : > { %8241 = vst.msk [vmem:[%s10127_s4 + $0x122] ss:$4 sm:$0x3] %vm10057_vm5, %v5782_v31  ;;  %v5749_v56 = vcombine.high %v5739_v13, %v5739_v13  ;;  %v5750_v39 = vcombine.high %v5746_v57, %v5746_v57  ;;  %8230 = vst.msk [vmem:[%s10127_s4 + $0xca] ss:$4 sm:$0x3] %vm10057_vm5, %v5739_v13  ;;  %v5801_v4 = vcombine.low %v5529_v21, %v5530_v8 }
 0x2cc   : > { %8231 = vst.msk [vmem:[%s10127_s4 + $0xd2] ss:$4 sm:$0x3] %vm10057_vm5, %v5747_v41  ;;  %8234 = vst.msk [vmem:[%s10127_s4 + $0xea] ss:$4 sm:$0x3] %vm10057_vm5, %v5746_v57  ;;  %v5802_v20 = vcombine.high %v5529_v21, %v5530_v8  ;;  %v5799_v11 = vcombine.high %v5789_v1, %v5789_v1  ;;  %v5800_v5 = vcombine.high %v5796_v16, %v5796_v16 }
 0x2cd   : > { %8235 = vst.msk [vmem:[%s10127_s4 + $0xf2] ss:$4 sm:$0x3] %vm10057_vm5, %v5748_v30  ;;  %8238 = vst.msk [vmem:[%s10127_s4 + $0x10a] ss:$4 sm:$0x3] %vm10057_vm5, %v5789_v1  ;;  %v5515_v24 = vadd.f32 %v5499_v25, %v10317_v40  ;;  %v5516_v49 = vadd.f32 %v5500_v19, %v10317_v40  ;;  %v5809_v2 = vrot.slane %v5801_v4, %v10046_v32 }
 0x2ce   : > { %8239 = vst.msk [vmem:[%s10127_s4 + $0x112] ss:$4 sm:$0x3] %vm10057_vm5, %v5797_v44  ;;  %8242 = vst.msk [vmem:[%s10127_s4 + $0x12a] ss:$4 sm:$0x3] %vm10057_vm5, %v5796_v16  ;;  %v5816_v46 = vrot.slane %v5802_v20, %v10046_v32  ;;  %v5517_v60 = vadd.f32 %v5501_v33, %v10319_v18  ;;  %v5502_v3 = vmax.f32 %v11153_v61, %v5468_v45 }
 0x2cf   : > { %8243 = vst.msk [vmem:[%s10127_s4 + $0x132] ss:$4 sm:$0x3] %vm10057_vm5, %v5798_v12  ;;  %8232 = vst.msk [vmem:[%s10127_s4 + $0xda] ss:$4 sm:$0x3] %vm10057_vm5, %v5749_v56  ;;  %v5817_v14 = vcombine.high %v5809_v2, %v5809_v2  ;;  %v5825_v15 = vrot.slane %v5809_v2, %v10046_v32 }
 0x2d0   : > { %8236 = vst.msk [vmem:[%s10127_s4 + $0xfa] ss:$4 sm:$0x3] %vm10057_vm5, %v5750_v39  ;;  %8240 = vst.msk [vmem:[%s10127_s4 + $0x11a] ss:$4 sm:$0x3] %vm10057_vm5, %v5799_v11  ;;  %v5818_v28 = vcombine.high %v5816_v46, %v5816_v46  ;;  %v5832_v0 = vrot.slane %v5816_v46, %v10046_v32  ;;  %v5518_v59 = vadd.f32 %v5502_v3, %v10319_v18 }
 0x2d1   : > { %8244 = vst.msk [vmem:[%s10127_s4 + $0x13a] ss:$4 sm:$0x3] %vm10057_vm5, %v5800_v5  ;;  %v5531_v29 = vmax.f32 %v5515_v24, 0.0  ;;  %v5532_v34 = vmax.f32 %v5516_v49, 0.0  ;;  %v5533_v52 = vmax.f32 %v5517_v60, 0.0  ;;  %v5839_v7 = vrot.slane %v5817_v14, %v10046_v32 }
 0x2d2   : > { %v5846_v6 = vrot.slane %v5818_v28, %v10046_v32  ;;  %v5847_v27 = vcombine.high %v5825_v15, %v5825_v15  ;;  %v5848_v17 = vcombine.high %v5832_v0, %v5832_v0  ;;  %8245 = vst.msk [vmem:[%s10127_s4 + $0x142] ss:$4 sm:$0x3] %vm10057_vm5, %v5825_v15  ;;  %8249 = vst.msk [vmem:[%s10127_s4 + $0x162] ss:$4 sm:$0x3] %vm10057_vm5, %v5832_v0 }
 0x2d3   : > { %v5851_v22 = vcombine.low %v5531_v29, %v5532_v34  ;;  %v5852_v61 = vcombine.high %v5531_v29, %v5532_v34  ;;  %v5534_v53 = vmax.f32 %v5518_v59, 0.0  ;;  %v5849_v43 = vcombine.high %v5839_v7, %v5839_v7  ;;  %8246 = vst.msk [vmem:[%s10127_s4 + $0x14a] ss:$4 sm:$0x3] %vm10057_vm5, %v5839_v7 }
 0x2d4   : > { %v5850_v23 = vcombine.high %v5846_v6, %v5846_v6  ;;  %8247 = vst.msk [vmem:[%s10127_s4 + $0x152] ss:$4 sm:$0x3] %vm10057_vm5, %v5847_v27  ;;  %8250 = vst.msk [vmem:[%s10127_s4 + $0x16a] ss:$4 sm:$0x3] %vm10057_vm5, %v5846_v6 }
 0x2d5   : > { %v5859_v21 = vrot.slane %v5851_v22, %v10046_v32  ;;  %v5866_v51 = vrot.slane %v5852_v61, %v10046_v32  ;;  %8251 = vst.msk [vmem:[%s10127_s4 + $0x172] ss:$4 sm:$0x3] %vm10057_vm5, %v5848_v17  ;;  %8248 = vst.msk [vmem:[%s10127_s4 + $0x15a] ss:$4 sm:$0x3] %vm10057_vm5, %v5849_v43  ;;  %v5901_v25 = vcombine.low %v5533_v52, %v5534_v53 }
 0x2d6   : > { %8252 = vst.msk [vmem:[%s10127_s4 + $0x17a] ss:$4 sm:$0x3] %vm10057_vm5, %v5850_v23  ;;  %v5902_v19 = vcombine.high %v5533_v52, %v5534_v53 }
 0x2d7   : > { %v5867_v48 = vcombine.high %v5859_v21, %v5859_v21  ;;  %v5868_v58 = vcombine.high %v5866_v51, %v5866_v51  ;;  %v5875_v45 = vrot.slane %v5859_v21, %v10046_v32  ;;  %v5882_v8 = vrot.slane %v5866_v51, %v10046_v32 }
 0x2d8   : > { %v5909_v47 = vrot.slane %v5901_v25, %v10046_v32  ;;  %v5916_v55 = vrot.slane %v5902_v19, %v10046_v32 }
 0x2d9   : > { %v5889_v33 = vrot.slane %v5867_v48, %v10046_v32  ;;  %v5896_v62 = vrot.slane %v5868_v58, %v10046_v32  ;;  %v5897_v10 = vcombine.high %v5875_v45, %v5875_v45  ;;  %v5898_v35 = vcombine.high %v5882_v8, %v5882_v8  ;;  %8253 = vst.msk [vmem:[%s10127_s4 + $0x182] ss:$4 sm:$0x3] %vm10057_vm5, %v5875_v45 }
 0x2da   : > { %8257 = vst.msk [vmem:[%s10127_s4 + $0x1a2] ss:$4 sm:$0x3] %vm10057_vm5, %v5882_v8  ;;  %v5917_v31 = vcombine.high %v5909_v47, %v5909_v47  ;;  %v5918_v13 = vcombine.high %v5916_v55, %v5916_v55  ;;  %v5925_v57 = vrot.slane %v5909_v47, %v10046_v32  ;;  %v5932_v41 = vrot.slane %v5916_v55, %v10046_v32 }
 0x2db   : > { %v5899_v38 = vcombine.high %v5889_v33, %v5889_v33  ;;  %v5900_v37 = vcombine.high %v5896_v62, %v5896_v62  ;;  %8254 = vst.msk [vmem:[%s10127_s4 + $0x18a] ss:$4 sm:$0x3] %vm10057_vm5, %v5889_v33  ;;  %8255 = vst.msk [vmem:[%s10127_s4 + $0x192] ss:$4 sm:$0x3] %vm10057_vm5, %v5897_v10 }
 0x2dc   : > { %8258 = vst.msk [vmem:[%s10127_s4 + $0x1aa] ss:$4 sm:$0x3] %vm10057_vm5, %v5896_v62  ;;  %8259 = vst.msk [vmem:[%s10127_s4 + $0x1b2] ss:$4 sm:$0x3] %vm10057_vm5, %v5898_v35  ;;  %v5939_v30 = vrot.slane %v5917_v31, %v10046_v32  ;;  %v5946_v1 = vrot.slane %v5918_v13, %v10046_v32  ;;  %v5947_v16 = vcombine.high %v5925_v57, %v5925_v57 }
 0x2dd   : > { %8256 = vst.msk [vmem:[%s10127_s4 + $0x19a] ss:$4 sm:$0x3] %vm10057_vm5, %v5899_v38  ;;  %8260 = vst.msk [vmem:[%s10127_s4 + $0x1ba] ss:$4 sm:$0x3] %vm10057_vm5, %v5900_v37  ;;  %v5948_v44 = vcombine.high %v5932_v41, %v5932_v41 }
 0x2de   : > { %8261 = vst.msk [vmem:[%s10127_s4 + $0x1c2] ss:$4 sm:$0x3] %vm10057_vm5, %v5925_v57  ;;  %8265 = vst.msk [vmem:[%s10127_s4 + $0x1e2] ss:$4 sm:$0x3] %vm10057_vm5, %v5932_v41  ;;  %v5949_v12 = vcombine.high %v5939_v30, %v5939_v30  ;;  %v5950_v56 = vcombine.high %v5946_v1, %v5946_v1 }
 0x2df   : > { %8262 = vst.msk [vmem:[%s10127_s4 + $0x1ca] ss:$4 sm:$0x3] %vm10057_vm5, %v5939_v30  ;;  %8263 = vst.msk [vmem:[%s10127_s4 + $0x1d2] ss:$4 sm:$0x3] %vm10057_vm5, %v5947_v16 }
 0x2e0   : > { %8266 = vst.msk [vmem:[%s10127_s4 + $0x1ea] ss:$4 sm:$0x3] %vm10057_vm5, %v5946_v1  ;;  %8267 = vst.msk [vmem:[%s10127_s4 + $0x1f2] ss:$4 sm:$0x3] %vm10057_vm5, %v5948_v44 }
 0x2e1   : > { %8264 = vst.msk [vmem:[%s10127_s4 + $0x1da] ss:$4 sm:$0x3] %vm10057_vm5, %v5949_v12  ;;  %8268 = vst.msk [vmem:[%s10127_s4 + $0x1fa] ss:$4 sm:$0x3] %vm10057_vm5, %v5950_v56 }
 0x306   : > { %v6926_v39 = vpop.f32.mrb[48].mxu0 }
 0x307   : > { %v7015_v4 = vpop.f32.mrb[48].mxu1  ;;  %v6928_v20 = vpop.f32.mrb[49].mxu0 }
 0x308   : > { %v7070_v11 = vmax.f32 %v6926_v39, %v7015_v4  ;;  %v7017_v5 = vpop.f32.mrb[49].mxu1  ;;  %v6930_v24 = vpop.f32.mrb[50].mxu0 }
 0x309   : > { %v7071_v49 = vmax.f32 %v6928_v20, %v7017_v5  ;;  %v7019_v2 = vpop.f32.mrb[50].mxu1  ;;  %v6932_v46 = vpop.f32.mrb[51].mxu0 }
 0x30a   : > { %v7086_v60 = vadd.f32 %v7070_v11, %v10029_v9  ;;  %v7072_v3 = vmax.f32 %v6930_v24, %v7019_v2  ;;  %v7021_v29 = vpop.f32.mrb[51].mxu1 }
 0x30b   : > { %v7087_v34 = vadd.f32 %v7071_v49, %v10029_v9  ;;  %v7073_v14 = vmax.f32 %v6932_v46, %v7021_v29 }
 0x30c   : > { %v7102_v28 = vmax.f32 %v7086_v60, 0.0  ;;  %v7088_v15 = vadd.f32 %v7072_v3, %v10051_v36 }
 0x30d   : > { %v7103_v0 = vmax.f32 %v7087_v34, 0.0  ;;  %v7089_v22 = vadd.f32 %v7073_v14, %v10051_v36 }
 0x30e   : > { %v7104_v61 = vmax.f32 %v7088_v15, 0.0  ;;  %v6936_v52 = vpop.f32.mrb[52].mxu0 }
 0x30f   : > { %v7134_v59 = vcombine.low %v7102_v28, %v7103_v0  ;;  %v7135_v7 = vcombine.high %v7102_v28, %v7103_v0  ;;  %v7105_v6 = vmax.f32 %v7089_v22, 0.0  ;;  %v7025_v27 = vpop.f32.mrb[52].mxu1  ;;  %v6938_v17 = vpop.f32.mrb[53].mxu0 }
 0x310   : > { %v7074_v21 = vmax.f32 %v6936_v52, %v7025_v27  ;;  %v7027_v51 = vpop.f32.mrb[53].mxu1  ;;  %v6940_v53 = vpop.f32.mrb[54].mxu0 }
 0x311   : > { %v7142_v43 = vrot.slane %v7134_v59, %v10046_v32  ;;  %v7149_v9 = vrot.slane %v7135_v7, %v10046_v32  ;;  %v7184_v23 = vcombine.low %v7104_v61, %v7105_v6  ;;  %v7185_v48 = vcombine.high %v7104_v61, %v7105_v6  ;;  %v7029_v58 = vpop.f32.mrb[54].mxu1  ;;  %v6942_v45 = vpop.f32.mrb[55].mxu0 }
 0x312   : > { %v7090_v36 = vadd.f32 %v7074_v21, %v10094_v26  ;;  %v7075_v8 = vmax.f32 %v6938_v17, %v7027_v51  ;;  %v7076_v25 = vmax.f32 %v6940_v53, %v7029_v58  ;;  %v7031_v19 = vpop.f32.mrb[55].mxu1 }
 0x313   : > { %v7150_v33 = vcombine.high %v7142_v43, %v7142_v43  ;;  %v7151_v62 = vcombine.high %v7149_v9, %v7149_v9  ;;  %v7158_v10 = vrot.slane %v7142_v43, %v10046_v32  ;;  %v7165_v35 = vrot.slane %v7149_v9, %v10046_v32 }
 0x314   : > { %v7192_v47 = vrot.slane %v7184_v23, %v10046_v32  ;;  %v7199_v55 = vrot.slane %v7185_v48, %v10046_v32  ;;  %v7106_v38 = vmax.f32 %v7090_v36, 0.0  ;;  %v7091_v37 = vadd.f32 %v7075_v8, %v10094_v26 }
 0x315   : > { %v7172_v31 = vrot.slane %v7150_v33, %v10046_v32  ;;  %v7179_v13 = vrot.slane %v7151_v62, %v10046_v32  ;;  %v7180_v57 = vcombine.high %v7158_v10, %v7158_v10  ;;  %v7181_v41 = vcombine.high %v7165_v35, %v7165_v35  ;;  %8320 = vst.msk [vmem:[%s10127_s4 + $0x3] ss:$4 sm:$0x3] %vm10057_vm5, %v7158_v10 }
 0x316   : > { %8324 = vst.msk [vmem:[%s10127_s4 + $0x23] ss:$4 sm:$0x3] %vm10057_vm5, %v7165_v35  ;;  %v7200_v30 = vcombine.high %v7192_v47, %v7192_v47  ;;  %v7201_v1 = vcombine.high %v7199_v55, %v7199_v55  ;;  %v7208_v16 = vrot.slane %v7192_v47, %v10046_v32  ;;  %v7215_v26 = vrot.slane %v7199_v55, %v10046_v32  ;;  %v6946_v44 = vpop.f32.mrb[56].mxu0 }
 0x317   : > { %v7182_v12 = vcombine.high %v7172_v31, %v7172_v31  ;;  %v7183_v56 = vcombine.high %v7179_v13, %v7179_v13  ;;  %8321 = vst.msk [vmem:[%s10127_s4 + $0xb] ss:$4 sm:$0x3] %vm10057_vm5, %v7172_v31  ;;  %8322 = vst.msk [vmem:[%s10127_s4 + $0x13] ss:$4 sm:$0x3] %vm10057_vm5, %v7180_v57  ;;  %v7092_v4 = vadd.f32 %v7076_v25, %v10137_v54 }
 0x318   : > { %8325 = vst.msk [vmem:[%s10127_s4 + $0x2b] ss:$4 sm:$0x3] %vm10057_vm5, %v7179_v13  ;;  %8326 = vst.msk [vmem:[%s10127_s4 + $0x33] ss:$4 sm:$0x3] %vm10057_vm5, %v7181_v41  ;;  %v7222_v5 = vrot.slane %v7200_v30, %v10046_v32  ;;  %v7229_v24 = vrot.slane %v7201_v1, %v10046_v32  ;;  %v7230_v49 = vcombine.high %v7208_v16, %v7208_v16 }
 0x319   : > { %v7107_v39 = vmax.f32 %v7091_v37, 0.0  ;;  %v7035_v20 = vpop.f32.mrb[56].mxu1  ;;  %v6948_v11 = vpop.f32.mrb[57].mxu0  ;;  %v7231_v2 = vcombine.high %v7215_v26, %v7215_v26  ;;  %8328 = vst.msk [vmem:[%s10127_s4 + $0x43] ss:$4 sm:$0x3] %vm10057_vm5, %v7208_v16  ;;  %v7077_v34 = vmax.f32 %v6942_v45, %v7031_v19 }
 0x31a   : > { %8332 = vst.msk [vmem:[%s10127_s4 + $0x63] ss:$4 sm:$0x3] %vm10057_vm5, %v7215_v26  ;;  %v7037_v46 = vpop.f32.mrb[57].mxu1  ;;  %v6950_v60 = vpop.f32.mrb[58].mxu0  ;;  %v7232_v15 = vcombine.high %v7222_v5, %v7222_v5  ;;  %v7233_v0 = vcombine.high %v7229_v24, %v7229_v24  ;;  %v7078_v22 = vmax.f32 %v6946_v44, %v7035_v20  ;;  %v7108_v17 = vmax.f32 %v7092_v4, 0.0 }
 0x31b   : > { %8323 = vst.msk [vmem:[%s10127_s4 + $0x1b] ss:$4 sm:$0x3] %vm10057_vm5, %v7182_v12  ;;  %8327 = vst.msk [vmem:[%s10127_s4 + $0x3b] ss:$4 sm:$0x3] %vm10057_vm5, %v7183_v56  ;;  %v7234_v3 = vcombine.low %v7106_v38, %v7107_v39  ;;  %v7235_v29 = vcombine.high %v7106_v38, %v7107_v39  ;;  %v7079_v61 = vmax.f32 %v6948_v11, %v7037_v46 }
 0x31c   : > { %v7039_v14 = vpop.f32.mrb[58].mxu1  ;;  %v6952_v28 = vpop.f32.mrb[59].mxu0  ;;  %8329 = vst.msk [vmem:[%s10127_s4 + $0x4b] ss:$4 sm:$0x3] %vm10057_vm5, %v7222_v5  ;;  %v7093_v6 = vadd.f32 %v7077_v34, %v10137_v54  ;;  %v7094_v21 = vadd.f32 %v7078_v22, %v10172_v50 }
 0x31d   : > { %8330 = vst.msk [vmem:[%s10127_s4 + $0x53] ss:$4 sm:$0x3] %vm10057_vm5, %v7230_v49  ;;  %8333 = vst.msk [vmem:[%s10127_s4 + $0x6b] ss:$4 sm:$0x3] %vm10057_vm5, %v7229_v24  ;;  %v7242_v59 = vrot.slane %v7234_v3, %v10046_v32  ;;  %v7249_v7 = vrot.slane %v7235_v29, %v10046_v32  ;;  %v7080_v27 = vmax.f32 %v6950_v60, %v7039_v14 }
 0x31e   : > { %8334 = vst.msk [vmem:[%s10127_s4 + $0x73] ss:$4 sm:$0x3] %vm10057_vm5, %v7231_v2  ;;  %v7041_v52 = vpop.f32.mrb[59].mxu1  ;;  %v7095_v51 = vadd.f32 %v7079_v61, %v10172_v50  ;;  %v7109_v48 = vmax.f32 %v7093_v6, 0.0  ;;  %v7110_v58 = vmax.f32 %v7094_v21, 0.0 }
 0x31f   : > { %8331 = vst.msk [vmem:[%s10127_s4 + $0x5b] ss:$4 sm:$0x3] %vm10057_vm5, %v7232_v15  ;;  %8335 = vst.msk [vmem:[%s10127_s4 + $0x7b] ss:$4 sm:$0x3] %vm10057_vm5, %v7233_v0  ;;  %v7081_v53 = vmax.f32 %v6952_v28, %v7041_v52  ;;  %v7250_v43 = vcombine.high %v7242_v59, %v7242_v59  ;;  %v7251_v9 = vcombine.high %v7249_v7, %v7249_v7 }
 0x320   : > { %v7258_v23 = vrot.slane %v7242_v59, %v10046_v32  ;;  %v7265_v54 = vrot.slane %v7249_v7, %v10046_v32  ;;  %v7111_v45 = vmax.f32 %v7095_v51, 0.0  ;;  %v11496_v36 = vadd.f32 %v7080_v27, %v10213_v42  ;;  %v11498_v8 = vpop.f32.mrb[60].mxu0  ;;  %v11508_v62 = vpop.f32.mrb[60].mxu1 }
 0x321   : > { %v7272_v25 = vrot.slane %v7250_v43, %v10046_v32  ;;  %v7279_v50 = vrot.slane %v7251_v9, %v10046_v32  ;;  %v11510_v10 = vpop.f32.mrb[61].mxu0  ;;  %v7284_v35 = vcombine.low %v7108_v17, %v7109_v48  ;;  %v7285_v47 = vcombine.high %v7108_v17, %v7109_v48  ;;  %v7047_v37 = vpop.f32.mrb[61].mxu1 }
 0x322   : > { %v7280_v19 = vcombine.high %v7258_v23, %v7258_v23  ;;  %v7281_v33 = vcombine.high %v7265_v54, %v7265_v54  ;;  %8336 = vst.msk [vmem:[%s10127_s4 + $0x83] ss:$4 sm:$0x3] %vm10057_vm5, %v7258_v23  ;;  %8340 = vst.msk [vmem:[%s10127_s4 + $0xa3] ss:$4 sm:$0x3] %vm10057_vm5, %v7265_v54  ;;  %v7334_v55 = vcombine.low %v7110_v58, %v7111_v45 }
 0x323   : > { %v7335_v38 = vcombine.high %v7110_v58, %v7111_v45  ;;  %v11512_v31 = vpop.f32.mrb[62].mxu0  ;;  %v7282_v13 = vcombine.high %v7272_v25, %v7272_v25  ;;  %v7283_v57 = vcombine.high %v7279_v50, %v7279_v50  ;;  %8337 = vst.msk [vmem:[%s10127_s4 + $0x8b] ss:$4 sm:$0x3] %vm10057_vm5, %v7272_v25  ;;  %v7112_v41 = vmax.f32 %v11496_v36, 0.0  ;;  %v7049_v1 = vpop.f32.mrb[62].mxu1 }
 0x324   : > { %8338 = vst.msk [vmem:[%s10127_s4 + $0x93] ss:$4 sm:$0x3] %vm10057_vm5, %v7280_v19  ;;  %8341 = vst.msk [vmem:[%s10127_s4 + $0xab] ss:$4 sm:$0x3] %vm10057_vm5, %v7279_v50  ;;  %v7097_v30 = vadd.f32 %v7081_v53, %v10213_v42  ;;  %v7292_v26 = vrot.slane %v7284_v35, %v10046_v32  ;;  %v7299_v44 = vrot.slane %v7285_v47, %v10046_v32 }
 0x325   : > { %8342 = vst.msk [vmem:[%s10127_s4 + $0xb3] ss:$4 sm:$0x3] %vm10057_vm5, %v7281_v33  ;;  %v11528_v16 = vpop.f32.mrb[63].mxu0  ;;  %v7342_v12 = vrot.slane %v7334_v55, %v10046_v32  ;;  %v7349_v56 = vrot.slane %v7335_v38, %v10046_v32  ;;  %v7051_v39 = vpop.f32.mrb[63].mxu1  ;;  %v7082_v42 = vmax.f32 %v11498_v8, %v11508_v62  ;;  %v7083_v20 = vmax.f32 %v11510_v10, %v7047_v37 }
 0x326   : > { %8339 = vst.msk [vmem:[%s10127_s4 + $0x9b] ss:$4 sm:$0x3] %vm10057_vm5, %v7282_v13  ;;  %8343 = vst.msk [vmem:[%s10127_s4 + $0xbb] ss:$4 sm:$0x3] %vm10057_vm5, %v7283_v57  ;;  %v7084_v11 = vmax.f32 %v11512_v31, %v7049_v1  ;;  %v7300_v5 = vcombine.high %v7292_v26, %v7292_v26  ;;  %v7301_v24 = vcombine.high %v7299_v44, %v7299_v44 }
 0x327   : > { %v7113_v4 = vmax.f32 %v7097_v30, 0.0  ;;  %v7308_v49 = vrot.slane %v7292_v26, %v10046_v32  ;;  %v7315_v2 = vrot.slane %v7299_v44, %v10046_v32  ;;  %v7350_v46 = vcombine.high %v7342_v12, %v7342_v12 }
 0x328   : > { %v7351_v60 = vcombine.high %v7349_v56, %v7349_v56  ;;  %v7358_v3 = vrot.slane %v7342_v12, %v10046_v32  ;;  %v7365_v29 = vrot.slane %v7349_v56, %v10046_v32  ;;  %v7322_v34 = vrot.slane %v7300_v5, %v10046_v32 }
 0x329   : > { %v7329_v14 = vrot.slane %v7301_v24, %v10046_v32  ;;  %v7330_v28 = vcombine.high %v7308_v49, %v7308_v49  ;;  %v7331_v15 = vcombine.high %v7315_v2, %v7315_v2  ;;  %8344 = vst.msk [vmem:[%s10127_s4 + $0xc3] ss:$4 sm:$0x3] %vm10057_vm5, %v7308_v49  ;;  %8348 = vst.msk [vmem:[%s10127_s4 + $0xe3] ss:$4 sm:$0x3] %vm10057_vm5, %v7315_v2 }
 0x32a   : > { %v7372_v0 = vrot.slane %v7350_v46, %v10046_v32  ;;  %v7379_v22 = vrot.slane %v7351_v60, %v10046_v32  ;;  %v7380_v61 = vcombine.high %v7358_v3, %v7358_v3  ;;  %v7381_v52 = vcombine.high %v7365_v29, %v7365_v29  ;;  %8352 = vst.msk [vmem:[%s10127_s4 + $0x103] ss:$4 sm:$0x3] %vm10057_vm5, %v7358_v3 }
 0x32b   : > { %8356 = vst.msk [vmem:[%s10127_s4 + $0x123] ss:$4 sm:$0x3] %vm10057_vm5, %v7365_v29  ;;  %v7332_v59 = vcombine.high %v7322_v34, %v7322_v34  ;;  %v7333_v7 = vcombine.high %v7329_v14, %v7329_v14  ;;  %8345 = vst.msk [vmem:[%s10127_s4 + $0xcb] ss:$4 sm:$0x3] %vm10057_vm5, %v7322_v34  ;;  %v7384_v6 = vcombine.low %v7112_v41, %v7113_v4 }
 0x32c   : > { %8346 = vst.msk [vmem:[%s10127_s4 + $0xd3] ss:$4 sm:$0x3] %vm10057_vm5, %v7330_v28  ;;  %8349 = vst.msk [vmem:[%s10127_s4 + $0xeb] ss:$4 sm:$0x3] %vm10057_vm5, %v7329_v14  ;;  %v7385_v27 = vcombine.high %v7112_v41, %v7113_v4  ;;  %v7382_v17 = vcombine.high %v7372_v0, %v7372_v0  ;;  %v7383_v21 = vcombine.high %v7379_v22, %v7379_v22 }
 0x32d   : > { %8350 = vst.msk [vmem:[%s10127_s4 + $0xf3] ss:$4 sm:$0x3] %vm10057_vm5, %v7331_v15  ;;  %8353 = vst.msk [vmem:[%s10127_s4 + $0x10b] ss:$4 sm:$0x3] %vm10057_vm5, %v7372_v0  ;;  %v7098_v51 = vadd.f32 %v7082_v42, %v10317_v40  ;;  %v7099_v53 = vadd.f32 %v7083_v20, %v10317_v40  ;;  %v7392_v43 = vrot.slane %v7384_v6, %v10046_v32 }
 0x32e   : > { %8354 = vst.msk [vmem:[%s10127_s4 + $0x113] ss:$4 sm:$0x3] %vm10057_vm5, %v7380_v61  ;;  %8357 = vst.msk [vmem:[%s10127_s4 + $0x12b] ss:$4 sm:$0x3] %vm10057_vm5, %v7379_v22  ;;  %v7399_v9 = vrot.slane %v7385_v27, %v10046_v32  ;;  %v7100_v23 = vadd.f32 %v7084_v11, %v10319_v18  ;;  %v7085_v54 = vmax.f32 %v11528_v16, %v7051_v39 }
 0x32f   : > { %8358 = vst.msk [vmem:[%s10127_s4 + $0x133] ss:$4 sm:$0x3] %vm10057_vm5, %v7381_v52  ;;  %8347 = vst.msk [vmem:[%s10127_s4 + $0xdb] ss:$4 sm:$0x3] %vm10057_vm5, %v7332_v59  ;;  %v7400_v58 = vcombine.high %v7392_v43, %v7392_v43  ;;  %v7408_v36 = vrot.slane %v7392_v43, %v10046_v32 }
 0x330   : > { %8351 = vst.msk [vmem:[%s10127_s4 + $0xfb] ss:$4 sm:$0x3] %vm10057_vm5, %v7333_v7  ;;  %8355 = vst.msk [vmem:[%s10127_s4 + $0x11b] ss:$4 sm:$0x3] %vm10057_vm5, %v7382_v17  ;;  %v7401_v45 = vcombine.high %v7399_v9, %v7399_v9  ;;  %v7415_v8 = vrot.slane %v7399_v9, %v10046_v32  ;;  %v7101_v33 = vadd.f32 %v7085_v54, %v10319_v18 }
 0x331   : > { %8359 = vst.msk [vmem:[%s10127_s4 + $0x13b] ss:$4 sm:$0x3] %vm10057_vm5, %v7383_v21  ;;  %v7114_v40 = vmax.f32 %v7098_v51, 0.0  ;;  %v7115_v48 = vmax.f32 %v7099_v53, 0.0  ;;  %v7116_v19 = vmax.f32 %v7100_v23, 0.0  ;;  %v7422_v62 = vrot.slane %v7400_v58, %v10046_v32 }
 0x332   : > { %v7429_v10 = vrot.slane %v7401_v45, %v10046_v32  ;;  %v7430_v35 = vcombine.high %v7408_v36, %v7408_v36  ;;  %v7431_v47 = vcombine.high %v7415_v8, %v7415_v8  ;;  %8360 = vst.msk [vmem:[%s10127_s4 + $0x143] ss:$4 sm:$0x3] %vm10057_vm5, %v7408_v36  ;;  %8364 = vst.msk [vmem:[%s10127_s4 + $0x163] ss:$4 sm:$0x3] %vm10057_vm5, %v7415_v8 }
 0x333   : > { %v7434_v25 = vcombine.low %v7114_v40, %v7115_v48  ;;  %v7435_v50 = vcombine.high %v7114_v40, %v7115_v48  ;;  %v7117_v37 = vmax.f32 %v7101_v33, 0.0  ;;  %v7432_v18 = vcombine.high %v7422_v62, %v7422_v62  ;;  %8361 = vst.msk [vmem:[%s10127_s4 + $0x14b] ss:$4 sm:$0x3] %vm10057_vm5, %v7422_v62 }
 0x334   : > { %v7433_v31 = vcombine.high %v7429_v10, %v7429_v10  ;;  %8362 = vst.msk [vmem:[%s10127_s4 + $0x153] ss:$4 sm:$0x3] %vm10057_vm5, %v7430_v35  ;;  %8365 = vst.msk [vmem:[%s10127_s4 + $0x16b] ss:$4 sm:$0x3] %vm10057_vm5, %v7429_v10 }
 0x335   : > { %v7442_v55 = vrot.slane %v7434_v25, %v10046_v32  ;;  %v7449_v38 = vrot.slane %v7435_v50, %v10046_v32  ;;  %8366 = vst.msk [vmem:[%s10127_s4 + $0x173] ss:$4 sm:$0x3] %vm10057_vm5, %v7431_v47  ;;  %8363 = vst.msk [vmem:[%s10127_s4 + $0x15b] ss:$4 sm:$0x3] %vm10057_vm5, %v7432_v18  ;;  %v7484_v1 = vcombine.low %v7116_v19, %v7117_v37 }
 0x336   : > { %8367 = vst.msk [vmem:[%s10127_s4 + $0x17b] ss:$4 sm:$0x3] %vm10057_vm5, %v7433_v31  ;;  %v7485_v16 = vcombine.high %v7116_v19, %v7117_v37 }
 0x337   : > { %v7450_v13 = vcombine.high %v7442_v55, %v7442_v55  ;;  %v7451_v57 = vcombine.high %v7449_v38, %v7449_v38  ;;  %v7458_v41 = vrot.slane %v7442_v55, %v10046_v32  ;;  %v7465_v30 = vrot.slane %v7449_v38, %v10046_v32 }
 0x338   : > { %v7492_v39 = vrot.slane %v7484_v1, %v10046_v32  ;;  %v7499_v4 = vrot.slane %v7485_v16, %v10046_v32 }
 0x339   : > { %v7472_v26 = vrot.slane %v7450_v13, %v10046_v32  ;;  %v7479_v44 = vrot.slane %v7451_v57, %v10046_v32  ;;  %v7480_v12 = vcombine.high %v7458_v41, %v7458_v41  ;;  %v7481_v56 = vcombine.high %v7465_v30, %v7465_v30  ;;  %8368 = vst.msk [vmem:[%s10127_s4 + $0x183] ss:$4 sm:$0x3] %vm10057_vm5, %v7458_v41 }
 0x33a   : > { %8372 = vst.msk [vmem:[%s10127_s4 + $0x1a3] ss:$4 sm:$0x3] %vm10057_vm5, %v7465_v30  ;;  %v7500_v11 = vcombine.high %v7492_v39, %v7492_v39  ;;  %v7501_v5 = vcombine.high %v7499_v4, %v7499_v4  ;;  %v7508_v24 = vrot.slane %v7492_v39, %v10046_v32  ;;  %v7515_v49 = vrot.slane %v7499_v4, %v10046_v32 }
 0x33b   : > { %v7482_v42 = vcombine.high %v7472_v26, %v7472_v26  ;;  %v7483_v20 = vcombine.high %v7479_v44, %v7479_v44  ;;  %8369 = vst.msk [vmem:[%s10127_s4 + $0x18b] ss:$4 sm:$0x3] %vm10057_vm5, %v7472_v26  ;;  %8370 = vst.msk [vmem:[%s10127_s4 + $0x193] ss:$4 sm:$0x3] %vm10057_vm5, %v7480_v12 }
 0x33c   : > { %8373 = vst.msk [vmem:[%s10127_s4 + $0x1ab] ss:$4 sm:$0x3] %vm10057_vm5, %v7479_v44  ;;  %8374 = vst.msk [vmem:[%s10127_s4 + $0x1b3] ss:$4 sm:$0x3] %vm10057_vm5, %v7481_v56  ;;  %v7522_v2 = vrot.slane %v7500_v11, %v10046_v32  ;;  %v7529_v46 = vrot.slane %v7501_v5, %v10046_v32  ;;  %v7530_v60 = vcombine.high %v7508_v24, %v7508_v24 }
 0x33d   : > { %8371 = vst.msk [vmem:[%s10127_s4 + $0x19b] ss:$4 sm:$0x3] %vm10057_vm5, %v7482_v42  ;;  %8375 = vst.msk [vmem:[%s10127_s4 + $0x1bb] ss:$4 sm:$0x3] %vm10057_vm5, %v7483_v20  ;;  %v7531_v3 = vcombine.high %v7515_v49, %v7515_v49 }
 0x33e   : > { %8376 = vst.msk [vmem:[%s10127_s4 + $0x1c3] ss:$4 sm:$0x3] %vm10057_vm5, %v7508_v24  ;;  %8380 = vst.msk [vmem:[%s10127_s4 + $0x1e3] ss:$4 sm:$0x3] %vm10057_vm5, %v7515_v49  ;;  %v7532_v29 = vcombine.high %v7522_v2, %v7522_v2  ;;  %v7533_v32 = vcombine.high %v7529_v46, %v7529_v46 }
 0x33f   : > { %8377 = vst.msk [vmem:[%s10127_s4 + $0x1cb] ss:$4 sm:$0x3] %vm10057_vm5, %v7522_v2  ;;  %8378 = vst.msk [vmem:[%s10127_s4 + $0x1d3] ss:$4 sm:$0x3] %vm10057_vm5, %v7530_v60 }
 0x340   : > { %8381 = vst.msk [vmem:[%s10127_s4 + $0x1eb] ss:$4 sm:$0x3] %vm10057_vm5, %v7529_v46  ;;  %8382 = vst.msk [vmem:[%s10127_s4 + $0x1f3] ss:$4 sm:$0x3] %vm10057_vm5, %v7531_v3 }
 0x341   : > { %8379 = vst.msk [vmem:[%s10127_s4 + $0x1db] ss:$4 sm:$0x3] %vm10057_vm5, %v7532_v29  ;;  %8383 = vst.msk [vmem:[%s10127_s4 + $0x1fb] ss:$4 sm:$0x3] %vm10057_vm5, %v7533_v32 }
 0x342   : > { %8939 = shalt.err (!%p8936_p5)
}
 0x343   : > { %s8940_s21 = scalar_lea.hbm %s11682_s29, 8192  ;;  %s8944_s11 = scalar_lea.hbm %s11755_s3, 16384 }
 0x344   : > { %p8941_p6 = scmp.ne.s32.totalorder %s11682_s29, %s8940_s21  ;;  %p8945_p10 = scmp.lt.u32.totalorder %s11682_s29, %s11755_s3 }
 0x345   : > { %p8946_p11 = scmp.lt.u32.totalorder %s8944_s11, %s8940_s21  ;;  %p8948_p13 = scmp.lt.u32.totalorder %s8940_s21, %s11682_s29 }
 0x346   : > { %p8942_p7 = pnand %p8941_p6, %p9071_p4 }
 0x347   : > { %p8947_p12 = por %p8946_p11, %p8945_p10 }
 0x348   : > { %p8943_p9 = pneg %p8942_p7 }
 0x349   : > { %p8949_p0 = por %p8948_p13, %p8947_p12 }
 0x34b   : > { %p8950_p1 = pnand %p8949_p0, %p8943_p9 }
 0x34d   : > { %8953 = shalt.err (!%p8950_p1)
}
 0x34e   : > { %s9009_s19 = smov 128   ;;  %s9010_s23 = smov 8  }
 0x34f   : > { %8807 = dma.vmem_to_hbm [thread:$0]  (%p9071_p4), %s11684_s27, 8192, %s11682_s29, %s11706_s5, %s9009_s19, %s9009_s19, %s9010_s23  }
 0x350 PF: > { %p8813_p2 = scmp.ge.s32.totalorder %s9004_s17, 2  ;;  %s7757_s26 = sand.u32 1, %s8984_s12  }
 0x351   : > { %s7758_s15 = scalar_lea.sflag [#allocation3], %s7757_s26 }
 0x352   : > { %p8810_p3 = pnand %p8813_p2, %p9078_p8 }
 0x354   : > { %8979 = dma.done.wait (!%p8810_p3), %s7758_s15, 8192  }
 0x355   : > { %8981 = vsyncadd (!%p8810_p3), %s7758_s15, 4294959104  ;;  %s16_s17 = sadd.s32 1, %s9004_s17   ;;  %s11760_s12 = smov %s8988_s13 }
 0x356   : > { %p13_p5 = scmp.ge.s32.totalorder %s16_s17, 4   ;;  %s11761_s13 = smov %s8992_s14 }
 0x357   : > { %s11762_s14 = smov %s9084_s25  ;;  %s11763_s15 = smov %s9000_s16 }
 0x358   : > { %s11764_s16 = smov %s11766_s20  ;;  %15 = sbr.rel (!%p13_p5) target bundleno = 4 (0x4), region = 357 }
 0x35f   :  { %7763 = vsyncpa [#allocation3], 1 }
 0x360   :  { %7765 = vsyncpa [#allocation3 + $0x1], 1 }

</bundles_post_ra>
